<compile_context>
chip_gen: v7x
topology: tpu7x:2x2x1
jax: 0.10.0
libtpu: 0.0.40
codegen_flags: <defaults>
</compile_context>

<pallas_src>
import functools

import numpy as np
import jax
import jax.numpy as jnp
from jax import lax
from jax.experimental import pallas as pl
from jax.experimental.pallas import tpu as pltpu

_EPS = 1e-6
_INV_SQRT2 = 0.7071067811865476
N_LEVELS = 4


# ---------------------------- in-kernel helpers ----------------------------

def _gelu(x):
    # exact (erf-based) GELU, matching torch.nn.GELU() default
    return 0.5 * x * (1.0 + lax.erf(x * _INV_SQRT2))


def _layernorm(v, w, b):
    # channels_first LayerNorm; channels are on axis 0 (sublanes) here
    u = jnp.mean(v, axis=0, keepdims=True)
    d = v - u
    var = jnp.mean(d * d, axis=0, keepdims=True)
    return (d / jnp.sqrt(var + _EPS)) * w + b


def _make_shifter(v, n):
    """Cyclic lane shift: sh(t)[..., q] == v[..., (q + t) % n]."""
    vv = jnp.concatenate([v, v], axis=-1)          # aligned lane concat

    def sh(t):
        t = t % n
        return vv[:, t:t + n]                      # static (possibly unaligned) slice

    return sh


# ---------------------------- fused kernel ----------------------------

def _dafm_kernel(H, W, x_ref, n1w_ref, n1b_ref, n2w_ref, n2b_ref,
                 dww_ref, dwb_ref, aw_ref, ab_ref,
                 w1_ref, b1_ref, w2_ref, b2_ref,
                 cmask_ref, pmask_ref, o_ref):
    HW = H * W
    C = x_ref.shape[0]
    chunk = C // N_LEVELS
    n_pool = N_LEVELS - 1            # butterfly rounds stored per axis in pmask

    x = x_ref[...]                                     # (C, HW)
    xn = _layernorm(x, n1w_ref[...], n1b_ref[...])     # norm1

    # ---- DAFM: per-level (max pool -> depthwise 3x3 -> nearest upsample),
    # fused with the 1x1 aggr conv accumulated per level so the channel
    # concat is never materialized. ----
    aw = aw_ref[...]                                   # (C, C)
    aggr = jnp.zeros((C, HW), jnp.float32)
    for i in range(N_LEVELS):
        k = 1 << i
        p = xn[i * chunk:(i + 1) * chunk, :]           # (chunk, HW)

        # cell-aligned k x k max pool, kept replicated at full resolution
        for j in range(i):                             # horizontal rounds
            s = 1 << j
            m = pmask_ref[j:j + 1, :]
            sh = _make_shifter(p, HW)
            p = jnp.maximum(p, m * sh(s) + (1.0 - m) * sh(-s))
        for j in range(i):                             # vertical rounds
            s = (1 << j) * W
            m = pmask_ref[n_pool + j:n_pool + j + 1, :]
            sh = _make_shifter(p, HW)
            p = jnp.maximum(p, m * sh(s) + (1.0 - m) * sh(-s))

        # depthwise 3x3 on the pooled image + nearest upsample, all at full res
        wl = dww_ref[i]                                # (chunk, 9)
        bl = dwb_ref[i]                                # (chunk, 1)
        ml = cmask_ref[i]                              # (9, HW) validity masks
        sh = _make_shifter(p, HW)
        acc = jnp.zeros((chunk, HW), jnp.float32)
        for t in range(9):
            dy, dx = t // 3 - 1, t % 3 - 1
            acc = acc + wl[:, t:t + 1] * (sh(k * (dy * W + dx)) * ml[t:t + 1, :])
        s_lvl = acc + bl

        # this level's slice of the 1x1 aggr conv (lane-dense N = HW output)
        aggr = aggr + jnp.dot(aw[:, i * chunk:(i + 1) * chunk], s_lvl,
                              preferred_element_type=jnp.float32)

    y1 = _gelu(aggr + ab_ref[...]) * xn + x            # gate + residual

    # ---- norm2 + CCM (3x3 conv -> GELU -> 1x1 conv) + residual ----
    xn2 = _layernorm(y1, n2w_ref[...], n2b_ref[...])
    cm0 = cmask_ref[0]                                 # plain 3x3 masks (k=1)
    sh = _make_shifter(xn2, HW)
    patches = jnp.concatenate(
        [sh((t // 3 - 1) * W + (t % 3 - 1)) * cm0[t:t + 1, :] for t in range(9)],
        axis=0)                                        # (9*C, HW) in-kernel im2col
    h = _gelu(jnp.dot(w1_ref[...], patches, preferred_element_type=jnp.float32)
              + b1_ref[...])
    y2 = jnp.dot(w2_ref[...], h, preferred_element_type=jnp.float32) + b2_ref[...]
    o_ref[...] = (y2 + y1).astype(o_ref.dtype)


# ---------------------------- host-side mask constants ----------------------------

def _conv_masks(H, W):
    # cmask[i, t, p] = validity of 3x3 tap t for level i (on the pooled grid)
    yy, xx = np.divmod(np.arange(H * W), W)
    m = np.zeros((N_LEVELS, 9, H * W), np.float32)
    for i in range(N_LEVELS):
        k = 1 << i
        Hp, Wp = H // k, W // k
        Y, X = yy // k, xx // k
        for t in range(9):
            dy, dx = t // 3 - 1, t % 3 - 1
            ok = (Y + dy >= 0) & (Y + dy < Hp) & (X + dx >= 0) & (X + dx < Wp)
            m[i, t] = ok
    return jnp.asarray(m)


def _pool_masks(H, W):
    # parity masks for the cell-aligned butterfly max (x rounds then y rounds)
    yy, xx = np.divmod(np.arange(H * W), W)
    n_pool = N_LEVELS - 1
    rows = [((xx % (2 << j)) < (1 << j)) for j in range(n_pool)]
    rows += [((yy % (2 << j)) < (1 << j)) for j in range(n_pool)]
    return jnp.asarray(np.stack(rows).astype(np.float32))


# ---------------------------- pallas_call wrapper ----------------------------

def dafm_block_forward(x, params):
    # x: (B, C, H, W) -> (B, C, H, W)
    B, C, H, W = x.shape
    HW = H * W
    chunk = C // N_LEVELS
    hidden = params['ccm1_w'].shape[0]

    x_flat = x.reshape(B, C, HW)                       # NCHW flatten (no transpose)

    n1w = params['norm1_w'].reshape(C, 1)
    n1b = params['norm1_b'].reshape(C, 1)
    n2w = params['norm2_w'].reshape(C, 1)
    n2b = params['norm2_b'].reshape(C, 1)
    dww = jnp.stack(params['mfr2_w'])[:, :, 0].reshape(N_LEVELS, chunk, 9)
    dwb = jnp.stack(params['mfr2_b']).reshape(N_LEVELS, chunk, 1)
    aw = params['aggr_w'][:, :, 0, 0]                   # (C, C)
    ab = params['aggr_b'].reshape(C, 1)
    w1 = jnp.transpose(params['ccm1_w'], (0, 2, 3, 1)).reshape(hidden, 9 * C)
    b1 = params['ccm1_b'].reshape(hidden, 1)
    w2 = params['ccm2_w'][:, :, 0, 0]                   # (C, hidden)
    b2 = params['ccm2_b'].reshape(C, 1)
    cmask = _conv_masks(H, W)
    pmask = _pool_masks(H, W)

    inputs = (x_flat, n1w, n1b, n2w, n2b, dww, dwb, aw, ab,
              w1, b1, w2, b2, cmask, pmask)

    def _param_spec(a):
        nd = a.ndim
        return pl.BlockSpec(a.shape, lambda b, _nd=nd: (0,) * _nd)

    in_specs = [pl.BlockSpec((None, C, HW), lambda b: (b, 0, 0))]
    in_specs += [_param_spec(a) for a in inputs[1:]]

    param_bytes = sum(int(np.prod(a.shape)) for a in inputs[1:]) * 4
    cost = pl.CostEstimate(
        flops=int(B * 2 * HW * (9 * C * hidden + hidden * C + C * C + 18 * C)),
        transcendentals=int(B * HW * (C + hidden)),
        bytes_accessed=int(8 * B * C * HW + param_bytes),
    )

    out = pl.pallas_call(
        functools.partial(_dafm_kernel, H, W),
        out_shape=jax.ShapeDtypeStruct((B, C, HW), x.dtype),
        grid=(B,),
        in_specs=in_specs,
        out_specs=pl.BlockSpec((None, C, HW), lambda b: (b, 0, 0)),
        compiler_params=pltpu.CompilerParams(
            dimension_semantics=("parallel",)),
        cost_estimate=cost,
    )(*inputs)
    return out.reshape(B, C, H, W)


# ---------------------------- params + pure-JAX reference ----------------------------

def init_params(key, dim=16, ffn_scale=2.0):
    hidden = int(dim * ffn_scale)
    chunk = dim // N_LEVELS
    ks = jax.random.split(key, 18)
    w = lambda k, shp, s=0.1: jax.random.normal(k, shp, jnp.float32) * s
    return dict(
        norm1_w=1.0 + w(ks[0], (dim,)),
        norm1_b=w(ks[1], (dim,)),
        norm2_w=1.0 + w(ks[2], (dim,)),
        norm2_b=w(ks[3], (dim,)),
        mfr2_w=[w(ks[4 + i], (chunk, 1, 3, 3)) for i in range(N_LEVELS)],
        mfr2_b=[w(ks[8 + i], (chunk,)) for i in range(N_LEVELS)],
        aggr_w=w(ks[12], (dim, dim, 1, 1)),
        aggr_b=w(ks[13], (dim,)),
        ccm1_w=w(ks[14], (hidden, dim, 3, 3)),
        ccm1_b=w(ks[15], (hidden,)),
        ccm2_w=w(ks[16], (dim, hidden, 1, 1)),
        ccm2_b=w(ks[17], (dim,)),
    )


def ref_forward(x, params):
    def ln(y, w, b):
        u = jnp.mean(y, axis=1, keepdims=True)
        s = jnp.mean((y - u) ** 2, axis=1, keepdims=True)
        yn = (y - u) / jnp.sqrt(s + _EPS)
        return w[None, :, None, None] * yn + b[None, :, None, None]

    def conv(y, w, b, pad, groups=1):
        out = lax.conv_general_dilated(
            y, w, (1, 1), [(pad, pad), (pad, pad)],
            dimension_numbers=('NCHW', 'OIHW', 'NCHW'),
            feature_group_count=groups)
        return out + b[None, :, None, None]

    gelu = lambda z: jax.nn.gelu(z, approximate=False)
    B, C, H, W = x.shape
    chunk = C // N_LEVELS
    xn = ln(x, params['norm1_w'], params['norm1_b'])
    outs = []
    for i in range(N_LEVELS):
        xc = xn[:, i * chunk:(i + 1) * chunk]
        if i == 0:
            s = conv(xc, params['mfr2_w'][0], params['mfr2_b'][0], 1, groups=chunk)
        else:
            k = 2 ** i
            p = lax.reduce_window(xc, -jnp.inf, lax.max,
                                  (1, 1, k, k), (1, 1, k, k), 'VALID')
            s = conv(p, params['mfr2_w'][i], params['mfr2_b'][i], 1, groups=chunk)
            s = jnp.repeat(jnp.repeat(s, k, axis=2), k, axis=3)
        outs.append(s)
    agg = conv(jnp.concatenate(outs, axis=1), params['aggr_w'], params['aggr_b'], 0)
    y1 = gelu(agg) * xn + x
    xn2 = ln(y1, params['norm2_w'], params['norm2_b'])
    h = gelu(conv(xn2, params['ccm1_w'], params['ccm1_b'], 1))
    return conv(h, params['ccm2_w'], params['ccm2_b'], 0) + y1


if __name__ == "__main__":
    key = jax.random.PRNGKey(0)
    pkey, xkey = jax.random.split(key)
    dim, H, W, B = 16, 16, 16, 2
    params = init_params(pkey, dim=dim, ffn_scale=2.0)
    x = jax.random.normal(xkey, (B, dim, H, W), jnp.float32)

    out = jax.jit(dafm_block_forward)(x, params)
    out = jax.block_until_ready(out)

    ref = ref_forward(x, params)
    err = float(jnp.max(jnp.abs(out - ref)))
    assert out.shape == (B, dim, H, W)
    assert err < 2e-3, f"max abs err too large: {err}"
    print("KERNEL_OK")
</pallas_src>

<mosaic_0001>
module attributes {stable_mosaic.version = 11 : i64} {
  func.func @_dafm_kernel(%arg0: i32, %arg1: memref<1x16x256xf32, #tpu.memory_space<vmem>>, %arg2: memref<16x1xf32, #tpu.memory_space<vmem>>, %arg3: memref<16x1xf32, #tpu.memory_space<vmem>>, %arg4: memref<16x1xf32, #tpu.memory_space<vmem>>, %arg5: memref<16x1xf32, #tpu.memory_space<vmem>>, %arg6: memref<4x4x9xf32, #tpu.memory_space<vmem>>, %arg7: memref<4x4x1xf32, #tpu.memory_space<vmem>>, %arg8: memref<16x16xf32, #tpu.memory_space<vmem>>, %arg9: memref<16x1xf32, #tpu.memory_space<vmem>>, %arg10: memref<32x144xf32, #tpu.memory_space<vmem>>, %arg11: memref<32x1xf32, #tpu.memory_space<vmem>>, %arg12: memref<16x32xf32, #tpu.memory_space<vmem>>, %arg13: memref<16x1xf32, #tpu.memory_space<vmem>>, %arg14: memref<4x9x256xf32, #tpu.memory_space<vmem>>, %arg15: memref<6x256xf32, #tpu.memory_space<vmem>>, %arg16: memref<1x16x256xf32, #tpu.memory_space<vmem>>) attributes {dimension_semantics = [#tpu.dimension_semantics<parallel>], iteration_bounds = array<i64: 2>, scalar_prefetch = 0 : i64, scratch_operands = 0 : i64, tpu.core_type = #tpu.core_type<tc>, window_params = [{transform_indices = @transform_0, window_bounds = array<i64: 1, 16, 256>}, {pipeline_mode = #tpu.pipeline_mode<synchronous>, transform_indices = @transform_1, window_bounds = array<i64: 16, 1>}, {pipeline_mode = #tpu.pipeline_mode<synchronous>, transform_indices = @transform_2, window_bounds = array<i64: 16, 1>}, {pipeline_mode = #tpu.pipeline_mode<synchronous>, transform_indices = @transform_3, window_bounds = array<i64: 16, 1>}, {pipeline_mode = #tpu.pipeline_mode<synchronous>, transform_indices = @transform_4, window_bounds = array<i64: 16, 1>}, {pipeline_mode = #tpu.pipeline_mode<synchronous>, transform_indices = @transform_5, window_bounds = array<i64: 4, 4, 9>}, {pipeline_mode = #tpu.pipeline_mode<synchronous>, transform_indices = @transform_6, window_bounds = array<i64: 4, 4, 1>}, {pipeline_mode = #tpu.pipeline_mode<synchronous>, transform_indices = @transform_7, window_bounds = array<i64: 16, 16>}, {pipeline_mode = #tpu.pipeline_mode<synchronous>, transform_indices = @transform_8, window_bounds = array<i64: 16, 1>}, {pipeline_mode = #tpu.pipeline_mode<synchronous>, transform_indices = @transform_9, window_bounds = array<i64: 32, 144>}, {pipeline_mode = #tpu.pipeline_mode<synchronous>, transform_indices = @transform_10, window_bounds = array<i64: 32, 1>}, {pipeline_mode = #tpu.pipeline_mode<synchronous>, transform_indices = @transform_11, window_bounds = array<i64: 16, 32>}, {pipeline_mode = #tpu.pipeline_mode<synchronous>, transform_indices = @transform_12, window_bounds = array<i64: 16, 1>}, {pipeline_mode = #tpu.pipeline_mode<synchronous>, transform_indices = @transform_13, window_bounds = array<i64: 4, 9, 256>}, {pipeline_mode = #tpu.pipeline_mode<synchronous>, transform_indices = @transform_14, window_bounds = array<i64: 6, 256>}, {transform_indices = @transform_15, window_bounds = array<i64: 1, 16, 256>}]} {
    %c0 = arith.constant 0 : index
    %c0_0 = arith.constant 0 : index
    %c0_1 = arith.constant 0 : index
    %0 = vector.load %arg1[%c0, %c0_0, %c0_1] : memref<1x16x256xf32, #tpu.memory_space<vmem>>, vector<1x16x256xf32>
    %1 = vector.shape_cast %0 : vector<1x16x256xf32> to vector<16x256xf32>
    %c0_2 = arith.constant 0 : index
    %c0_3 = arith.constant 0 : index
    %2 = vector.load %arg2[%c0_2, %c0_3] : memref<16x1xf32, #tpu.memory_space<vmem>>, vector<16x1xf32>
    %c0_4 = arith.constant 0 : index
    %c0_5 = arith.constant 0 : index
    %3 = vector.load %arg3[%c0_4, %c0_5] : memref<16x1xf32, #tpu.memory_space<vmem>>, vector<16x1xf32>
    %cst = arith.constant dense<0.000000e+00> : vector<256xf32>
    %4 = vector.multi_reduction <add>, %1, %cst [0] : vector<16x256xf32> to vector<256xf32>
    %5 = vector.shape_cast %4 : vector<256xf32> to vector<1x256xf32>
    %cst_6 = arith.constant 1.600000e+01 : f32
    %6 = vector.broadcast %cst_6 : f32 to vector<1x256xf32>
    %7 = arith.divf %5, %6 : vector<1x256xf32>
    %8 = vector.broadcast %7 : vector<1x256xf32> to vector<16x256xf32>
    %9 = arith.subf %1, %8 : vector<16x256xf32>
    %10 = arith.mulf %9, %9 : vector<16x256xf32>
    %cst_7 = arith.constant dense<0.000000e+00> : vector<256xf32>
    %11 = vector.multi_reduction <add>, %10, %cst_7 [0] : vector<16x256xf32> to vector<256xf32>
    %12 = vector.shape_cast %11 : vector<256xf32> to vector<1x256xf32>
    %cst_8 = arith.constant 1.600000e+01 : f32
    %13 = vector.broadcast %cst_8 : f32 to vector<1x256xf32>
    %14 = arith.divf %12, %13 : vector<1x256xf32>
    %cst_9 = arith.constant 9.99999997E-7 : f32
    %15 = vector.broadcast %cst_9 : f32 to vector<1x256xf32>
    %16 = arith.addf %14, %15 : vector<1x256xf32>
    %17 = math.sqrt %16 : vector<1x256xf32>
    %18 = vector.broadcast %17 : vector<1x256xf32> to vector<16x256xf32>
    %19 = arith.divf %9, %18 : vector<16x256xf32>
    %20 = vector.broadcast %2 : vector<16x1xf32> to vector<16x256xf32>
    %21 = arith.mulf %19, %20 : vector<16x256xf32>
    %22 = vector.broadcast %3 : vector<16x1xf32> to vector<16x256xf32>
    %23 = arith.addf %21, %22 : vector<16x256xf32>
    %c0_10 = arith.constant 0 : index
    %c0_11 = arith.constant 0 : index
    %24 = vector.load %arg8[%c0_10, %c0_11] : memref<16x16xf32, #tpu.memory_space<vmem>>, vector<16x16xf32>
    %cst_12 = arith.constant 0.000000e+00 : f32
    %25 = vector.broadcast %cst_12 : f32 to vector<16x256xf32>
    %26 = vector.extract_strided_slice %23 {offsets = [0, 0], sizes = [4, 256], strides = [1, 1]} : vector<16x256xf32> to vector<4x256xf32>
    %c0_13 = arith.constant 0 : index
    %c0_14 = arith.constant 0 : index
    %c0_15 = arith.constant 0 : index
    %27 = vector.load %arg6[%c0_13, %c0_14, %c0_15] : memref<4x4x9xf32, #tpu.memory_space<vmem>>, vector<1x4x9xf32>
    %28 = vector.shape_cast %27 : vector<1x4x9xf32> to vector<4x9xf32>
    %c0_16 = arith.constant 0 : index
    %c0_17 = arith.constant 0 : index
    %c0_18 = arith.constant 0 : index
    %29 = vector.load %arg7[%c0_16, %c0_17, %c0_18] : memref<4x4x1xf32, #tpu.memory_space<vmem>>, vector<1x4x1xf32>
    %30 = vector.shape_cast %29 : vector<1x4x1xf32> to vector<4x1xf32>
    %c0_19 = arith.constant 0 : index
    %c0_20 = arith.constant 0 : index
    %c0_21 = arith.constant 0 : index
    %31 = vector.load %arg14[%c0_19, %c0_20, %c0_21] : memref<4x9x256xf32, #tpu.memory_space<vmem>>, vector<1x9x256xf32>
    %32 = vector.shape_cast %31 : vector<1x9x256xf32> to vector<9x256xf32>
    %33 = tpu.concatenate %26, %26 in 1 : vector<4x256xf32>, vector<4x256xf32> -> vector<4x512xf32>
    %cst_22 = arith.constant 0.000000e+00 : f32
    %34 = vector.broadcast %cst_22 : f32 to vector<4x256xf32>
    %35 = vector.extract_strided_slice %28 {offsets = [0, 0], sizes = [4, 1], strides = [1, 1]} : vector<4x9xf32> to vector<4x1xf32>
    %36 = vector.extract_strided_slice %33 {offsets = [0, 239], sizes = [4, 256], strides = [1, 1]} : vector<4x512xf32> to vector<4x256xf32>
    %37 = vector.extract_strided_slice %32 {offsets = [0, 0], sizes = [1, 256], strides = [1, 1]} : vector<9x256xf32> to vector<1x256xf32>
    %38 = vector.broadcast %37 : vector<1x256xf32> to vector<4x256xf32>
    %39 = arith.mulf %36, %38 : vector<4x256xf32>
    %40 = vector.broadcast %35 : vector<4x1xf32> to vector<4x256xf32>
    %41 = arith.mulf %40, %39 : vector<4x256xf32>
    %42 = arith.addf %34, %41 : vector<4x256xf32>
    %43 = vector.extract_strided_slice %28 {offsets = [0, 1], sizes = [4, 1], strides = [1, 1]} : vector<4x9xf32> to vector<4x1xf32>
    %44 = vector.extract_strided_slice %33 {offsets = [0, 240], sizes = [4, 256], strides = [1, 1]} : vector<4x512xf32> to vector<4x256xf32>
    %45 = vector.extract_strided_slice %32 {offsets = [1, 0], sizes = [1, 256], strides = [1, 1]} : vector<9x256xf32> to vector<1x256xf32>
    %46 = vector.broadcast %45 : vector<1x256xf32> to vector<4x256xf32>
    %47 = arith.mulf %44, %46 : vector<4x256xf32>
    %48 = vector.broadcast %43 : vector<4x1xf32> to vector<4x256xf32>
    %49 = arith.mulf %48, %47 : vector<4x256xf32>
    %50 = arith.addf %42, %49 : vector<4x256xf32>
    %51 = vector.extract_strided_slice %28 {offsets = [0, 2], sizes = [4, 1], strides = [1, 1]} : vector<4x9xf32> to vector<4x1xf32>
    %52 = vector.extract_strided_slice %33 {offsets = [0, 241], sizes = [4, 256], strides = [1, 1]} : vector<4x512xf32> to vector<4x256xf32>
    %53 = vector.extract_strided_slice %32 {offsets = [2, 0], sizes = [1, 256], strides = [1, 1]} : vector<9x256xf32> to vector<1x256xf32>
    %54 = vector.broadcast %53 : vector<1x256xf32> to vector<4x256xf32>
    %55 = arith.mulf %52, %54 : vector<4x256xf32>
    %56 = vector.broadcast %51 : vector<4x1xf32> to vector<4x256xf32>
    %57 = arith.mulf %56, %55 : vector<4x256xf32>
    %58 = arith.addf %50, %57 : vector<4x256xf32>
    %59 = vector.extract_strided_slice %28 {offsets = [0, 3], sizes = [4, 1], strides = [1, 1]} : vector<4x9xf32> to vector<4x1xf32>
    %60 = vector.extract_strided_slice %33 {offsets = [0, 255], sizes = [4, 256], strides = [1, 1]} : vector<4x512xf32> to vector<4x256xf32>
    %61 = vector.extract_strided_slice %32 {offsets = [3, 0], sizes = [1, 256], strides = [1, 1]} : vector<9x256xf32> to vector<1x256xf32>
    %62 = vector.broadcast %61 : vector<1x256xf32> to vector<4x256xf32>
    %63 = arith.mulf %60, %62 : vector<4x256xf32>
    %64 = vector.broadcast %59 : vector<4x1xf32> to vector<4x256xf32>
    %65 = arith.mulf %64, %63 : vector<4x256xf32>
    %66 = arith.addf %58, %65 : vector<4x256xf32>
    %67 = vector.extract_strided_slice %28 {offsets = [0, 4], sizes = [4, 1], strides = [1, 1]} : vector<4x9xf32> to vector<4x1xf32>
    %68 = vector.extract_strided_slice %33 {offsets = [0, 0], sizes = [4, 256], strides = [1, 1]} : vector<4x512xf32> to vector<4x256xf32>
    %69 = vector.extract_strided_slice %32 {offsets = [4, 0], sizes = [1, 256], strides = [1, 1]} : vector<9x256xf32> to vector<1x256xf32>
    %70 = vector.broadcast %69 : vector<1x256xf32> to vector<4x256xf32>
    %71 = arith.mulf %68, %70 : vector<4x256xf32>
    %72 = vector.broadcast %67 : vector<4x1xf32> to vector<4x256xf32>
    %73 = arith.mulf %72, %71 : vector<4x256xf32>
    %74 = arith.addf %66, %73 : vector<4x256xf32>
    %75 = vector.extract_strided_slice %28 {offsets = [0, 5], sizes = [4, 1], strides = [1, 1]} : vector<4x9xf32> to vector<4x1xf32>
    %76 = vector.extract_strided_slice %33 {offsets = [0, 1], sizes = [4, 256], strides = [1, 1]} : vector<4x512xf32> to vector<4x256xf32>
    %77 = vector.extract_strided_slice %32 {offsets = [5, 0], sizes = [1, 256], strides = [1, 1]} : vector<9x256xf32> to vector<1x256xf32>
    %78 = vector.broadcast %77 : vector<1x256xf32> to vector<4x256xf32>
    %79 = arith.mulf %76, %78 : vector<4x256xf32>
    %80 = vector.broadcast %75 : vector<4x1xf32> to vector<4x256xf32>
    %81 = arith.mulf %80, %79 : vector<4x256xf32>
    %82 = arith.addf %74, %81 : vector<4x256xf32>
    %83 = vector.extract_strided_slice %28 {offsets = [0, 6], sizes = [4, 1], strides = [1, 1]} : vector<4x9xf32> to vector<4x1xf32>
    %84 = vector.extract_strided_slice %33 {offsets = [0, 15], sizes = [4, 256], strides = [1, 1]} : vector<4x512xf32> to vector<4x256xf32>
    %85 = vector.extract_strided_slice %32 {offsets = [6, 0], sizes = [1, 256], strides = [1, 1]} : vector<9x256xf32> to vector<1x256xf32>
    %86 = vector.broadcast %85 : vector<1x256xf32> to vector<4x256xf32>
    %87 = arith.mulf %84, %86 : vector<4x256xf32>
    %88 = vector.broadcast %83 : vector<4x1xf32> to vector<4x256xf32>
    %89 = arith.mulf %88, %87 : vector<4x256xf32>
    %90 = arith.addf %82, %89 : vector<4x256xf32>
    %91 = vector.extract_strided_slice %28 {offsets = [0, 7], sizes = [4, 1], strides = [1, 1]} : vector<4x9xf32> to vector<4x1xf32>
    %92 = vector.extract_strided_slice %33 {offsets = [0, 16], sizes = [4, 256], strides = [1, 1]} : vector<4x512xf32> to vector<4x256xf32>
    %93 = vector.extract_strided_slice %32 {offsets = [7, 0], sizes = [1, 256], strides = [1, 1]} : vector<9x256xf32> to vector<1x256xf32>
    %94 = vector.broadcast %93 : vector<1x256xf32> to vector<4x256xf32>
    %95 = arith.mulf %92, %94 : vector<4x256xf32>
    %96 = vector.broadcast %91 : vector<4x1xf32> to vector<4x256xf32>
    %97 = arith.mulf %96, %95 : vector<4x256xf32>
    %98 = arith.addf %90, %97 : vector<4x256xf32>
    %99 = vector.extract_strided_slice %28 {offsets = [0, 8], sizes = [4, 1], strides = [1, 1]} : vector<4x9xf32> to vector<4x1xf32>
    %100 = vector.extract_strided_slice %33 {offsets = [0, 17], sizes = [4, 256], strides = [1, 1]} : vector<4x512xf32> to vector<4x256xf32>
    %101 = vector.extract_strided_slice %32 {offsets = [8, 0], sizes = [1, 256], strides = [1, 1]} : vector<9x256xf32> to vector<1x256xf32>
    %102 = vector.broadcast %101 : vector<1x256xf32> to vector<4x256xf32>
    %103 = arith.mulf %100, %102 : vector<4x256xf32>
    %104 = vector.broadcast %99 : vector<4x1xf32> to vector<4x256xf32>
    %105 = arith.mulf %104, %103 : vector<4x256xf32>
    %106 = arith.addf %98, %105 : vector<4x256xf32>
    %107 = vector.broadcast %30 : vector<4x1xf32> to vector<4x256xf32>
    %108 = arith.addf %106, %107 : vector<4x256xf32>
    %109 = vector.extract_strided_slice %24 {offsets = [0, 0], sizes = [16, 4], strides = [1, 1]} : vector<16x16xf32> to vector<16x4xf32>
    %cst_23 = arith.constant dense<0.000000e+00> : vector<16x256xf32>
    %110 = tpu.matmul %109, %108, %cst_23 {dimension_numbers = #tpu.dot_dimension_numbers<[1], [0], [0], [1], [0, 0, 1, 1], [], []>} : vector<16x4xf32>, vector<4x256xf32>, vector<16x256xf32> -> vector<16x256xf32>
    %111 = arith.addf %25, %110 : vector<16x256xf32>
    %112 = vector.extract_strided_slice %23 {offsets = [4, 0], sizes = [4, 256], strides = [1, 1]} : vector<16x256xf32> to vector<4x256xf32>
    %c0_24 = arith.constant 0 : index
    %c0_25 = arith.constant 0 : index
    %113 = vector.load %arg15[%c0_24, %c0_25] : memref<6x256xf32, #tpu.memory_space<vmem>>, vector<1x256xf32>
    %114 = tpu.concatenate %112, %112 in 1 : vector<4x256xf32>, vector<4x256xf32> -> vector<4x512xf32>
    %115 = vector.extract_strided_slice %114 {offsets = [0, 1], sizes = [4, 256], strides = [1, 1]} : vector<4x512xf32> to vector<4x256xf32>
    %116 = vector.broadcast %113 : vector<1x256xf32> to vector<4x256xf32>
    %117 = arith.mulf %116, %115 : vector<4x256xf32>
    %cst_26 = arith.constant 1.000000e+00 : f32
    %118 = vector.broadcast %cst_26 : f32 to vector<1x256xf32>
    %119 = arith.subf %118, %113 : vector<1x256xf32>
    %120 = vector.extract_strided_slice %114 {offsets = [0, 255], sizes = [4, 256], strides = [1, 1]} : vector<4x512xf32> to vector<4x256xf32>
    %121 = vector.broadcast %119 : vector<1x256xf32> to vector<4x256xf32>
    %122 = arith.mulf %121, %120 : vector<4x256xf32>
    %123 = arith.addf %117, %122 : vector<4x256xf32>
    %124 = arith.maximumf %112, %123 : vector<4x256xf32>
    %c3 = arith.constant 3 : index
    %c0_27 = arith.constant 0 : index
    %125 = vector.load %arg15[%c3, %c0_27] : memref<6x256xf32, #tpu.memory_space<vmem>>, vector<1x256xf32>
    %126 = tpu.concatenate %124, %124 in 1 : vector<4x256xf32>, vector<4x256xf32> -> vector<4x512xf32>
    %127 = vector.extract_strided_slice %126 {offsets = [0, 16], sizes = [4, 256], strides = [1, 1]} : vector<4x512xf32> to vector<4x256xf32>
    %128 = vector.broadcast %125 : vector<1x256xf32> to vector<4x256xf32>
    %129 = arith.mulf %128, %127 : vector<4x256xf32>
    %cst_28 = arith.constant 1.000000e+00 : f32
    %130 = vector.broadcast %cst_28 : f32 to vector<1x256xf32>
    %131 = arith.subf %130, %125 : vector<1x256xf32>
    %132 = vector.extract_strided_slice %126 {offsets = [0, 240], sizes = [4, 256], strides = [1, 1]} : vector<4x512xf32> to vector<4x256xf32>
    %133 = vector.broadcast %131 : vector<1x256xf32> to vector<4x256xf32>
    %134 = arith.mulf %133, %132 : vector<4x256xf32>
    %135 = arith.addf %129, %134 : vector<4x256xf32>
    %136 = arith.maximumf %124, %135 : vector<4x256xf32>
    %c1 = arith.constant 1 : index
    %c0_29 = arith.constant 0 : index
    %c0_30 = arith.constant 0 : index
    %137 = vector.load %arg6[%c1, %c0_29, %c0_30] : memref<4x4x9xf32, #tpu.memory_space<vmem>>, vector<1x4x9xf32>
    %138 = vector.shape_cast %137 : vector<1x4x9xf32> to vector<4x9xf32>
    %c1_31 = arith.constant 1 : index
    %c0_32 = arith.constant 0 : index
    %c0_33 = arith.constant 0 : index
    %139 = vector.load %arg7[%c1_31, %c0_32, %c0_33] : memref<4x4x1xf32, #tpu.memory_space<vmem>>, vector<1x4x1xf32>
    %140 = vector.shape_cast %139 : vector<1x4x1xf32> to vector<4x1xf32>
    %c1_34 = arith.constant 1 : index
    %c0_35 = arith.constant 0 : index
    %c0_36 = arith.constant 0 : index
    %141 = vector.load %arg14[%c1_34, %c0_35, %c0_36] : memref<4x9x256xf32, #tpu.memory_space<vmem>>, vector<1x9x256xf32>
    %142 = vector.shape_cast %141 : vector<1x9x256xf32> to vector<9x256xf32>
    %143 = tpu.concatenate %136, %136 in 1 : vector<4x256xf32>, vector<4x256xf32> -> vector<4x512xf32>
    %cst_37 = arith.constant 0.000000e+00 : f32
    %144 = vector.broadcast %cst_37 : f32 to vector<4x256xf32>
    %145 = vector.extract_strided_slice %138 {offsets = [0, 0], sizes = [4, 1], strides = [1, 1]} : vector<4x9xf32> to vector<4x1xf32>
    %146 = vector.extract_strided_slice %143 {offsets = [0, 222], sizes = [4, 256], strides = [1, 1]} : vector<4x512xf32> to vector<4x256xf32>
    %147 = vector.extract_strided_slice %142 {offsets = [0, 0], sizes = [1, 256], strides = [1, 1]} : vector<9x256xf32> to vector<1x256xf32>
    %148 = vector.broadcast %147 : vector<1x256xf32> to vector<4x256xf32>
    %149 = arith.mulf %146, %148 : vector<4x256xf32>
    %150 = vector.broadcast %145 : vector<4x1xf32> to vector<4x256xf32>
    %151 = arith.mulf %150, %149 : vector<4x256xf32>
    %152 = arith.addf %144, %151 : vector<4x256xf32>
    %153 = vector.extract_strided_slice %138 {offsets = [0, 1], sizes = [4, 1], strides = [1, 1]} : vector<4x9xf32> to vector<4x1xf32>
    %154 = vector.extract_strided_slice %143 {offsets = [0, 224], sizes = [4, 256], strides = [1, 1]} : vector<4x512xf32> to vector<4x256xf32>
    %155 = vector.extract_strided_slice %142 {offsets = [1, 0], sizes = [1, 256], strides = [1, 1]} : vector<9x256xf32> to vector<1x256xf32>
    %156 = vector.broadcast %155 : vector<1x256xf32> to vector<4x256xf32>
    %157 = arith.mulf %154, %156 : vector<4x256xf32>
    %158 = vector.broadcast %153 : vector<4x1xf32> to vector<4x256xf32>
    %159 = arith.mulf %158, %157 : vector<4x256xf32>
    %160 = arith.addf %152, %159 : vector<4x256xf32>
    %161 = vector.extract_strided_slice %138 {offsets = [0, 2], sizes = [4, 1], strides = [1, 1]} : vector<4x9xf32> to vector<4x1xf32>
    %162 = vector.extract_strided_slice %143 {offsets = [0, 226], sizes = [4, 256], strides = [1, 1]} : vector<4x512xf32> to vector<4x256xf32>
    %163 = vector.extract_strided_slice %142 {offsets = [2, 0], sizes = [1, 256], strides = [1, 1]} : vector<9x256xf32> to vector<1x256xf32>
    %164 = vector.broadcast %163 : vector<1x256xf32> to vector<4x256xf32>
    %165 = arith.mulf %162, %164 : vector<4x256xf32>
    %166 = vector.broadcast %161 : vector<4x1xf32> to vector<4x256xf32>
    %167 = arith.mulf %166, %165 : vector<4x256xf32>
    %168 = arith.addf %160, %167 : vector<4x256xf32>
    %169 = vector.extract_strided_slice %138 {offsets = [0, 3], sizes = [4, 1], strides = [1, 1]} : vector<4x9xf32> to vector<4x1xf32>
    %170 = vector.extract_strided_slice %143 {offsets = [0, 254], sizes = [4, 256], strides = [1, 1]} : vector<4x512xf32> to vector<4x256xf32>
    %171 = vector.extract_strided_slice %142 {offsets = [3, 0], sizes = [1, 256], strides = [1, 1]} : vector<9x256xf32> to vector<1x256xf32>
    %172 = vector.broadcast %171 : vector<1x256xf32> to vector<4x256xf32>
    %173 = arith.mulf %170, %172 : vector<4x256xf32>
    %174 = vector.broadcast %169 : vector<4x1xf32> to vector<4x256xf32>
    %175 = arith.mulf %174, %173 : vector<4x256xf32>
    %176 = arith.addf %168, %175 : vector<4x256xf32>
    %177 = vector.extract_strided_slice %138 {offsets = [0, 4], sizes = [4, 1], strides = [1, 1]} : vector<4x9xf32> to vector<4x1xf32>
    %178 = vector.extract_strided_slice %143 {offsets = [0, 0], sizes = [4, 256], strides = [1, 1]} : vector<4x512xf32> to vector<4x256xf32>
    %179 = vector.extract_strided_slice %142 {offsets = [4, 0], sizes = [1, 256], strides = [1, 1]} : vector<9x256xf32> to vector<1x256xf32>
    %180 = vector.broadcast %179 : vector<1x256xf32> to vector<4x256xf32>
    %181 = arith.mulf %178, %180 : vector<4x256xf32>
    %182 = vector.broadcast %177 : vector<4x1xf32> to vector<4x256xf32>
    %183 = arith.mulf %182, %181 : vector<4x256xf32>
    %184 = arith.addf %176, %183 : vector<4x256xf32>
    %185 = vector.extract_strided_slice %138 {offsets = [0, 5], sizes = [4, 1], strides = [1, 1]} : vector<4x9xf32> to vector<4x1xf32>
    %186 = vector.extract_strided_slice %143 {offsets = [0, 2], sizes = [4, 256], strides = [1, 1]} : vector<4x512xf32> to vector<4x256xf32>
    %187 = vector.extract_strided_slice %142 {offsets = [5, 0], sizes = [1, 256], strides = [1, 1]} : vector<9x256xf32> to vector<1x256xf32>
    %188 = vector.broadcast %187 : vector<1x256xf32> to vector<4x256xf32>
    %189 = arith.mulf %186, %188 : vector<4x256xf32>
    %190 = vector.broadcast %185 : vector<4x1xf32> to vector<4x256xf32>
    %191 = arith.mulf %190, %189 : vector<4x256xf32>
    %192 = arith.addf %184, %191 : vector<4x256xf32>
    %193 = vector.extract_strided_slice %138 {offsets = [0, 6], sizes = [4, 1], strides = [1, 1]} : vector<4x9xf32> to vector<4x1xf32>
    %194 = vector.extract_strided_slice %143 {offsets = [0, 30], sizes = [4, 256], strides = [1, 1]} : vector<4x512xf32> to vector<4x256xf32>
    %195 = vector.extract_strided_slice %142 {offsets = [6, 0], sizes = [1, 256], strides = [1, 1]} : vector<9x256xf32> to vector<1x256xf32>
    %196 = vector.broadcast %195 : vector<1x256xf32> to vector<4x256xf32>
    %197 = arith.mulf %194, %196 : vector<4x256xf32>
    %198 = vector.broadcast %193 : vector<4x1xf32> to vector<4x256xf32>
    %199 = arith.mulf %198, %197 : vector<4x256xf32>
    %200 = arith.addf %192, %199 : vector<4x256xf32>
    %201 = vector.extract_strided_slice %138 {offsets = [0, 7], sizes = [4, 1], strides = [1, 1]} : vector<4x9xf32> to vector<4x1xf32>
    %202 = vector.extract_strided_slice %143 {offsets = [0, 32], sizes = [4, 256], strides = [1, 1]} : vector<4x512xf32> to vector<4x256xf32>
    %203 = vector.extract_strided_slice %142 {offsets = [7, 0], sizes = [1, 256], strides = [1, 1]} : vector<9x256xf32> to vector<1x256xf32>
    %204 = vector.broadcast %203 : vector<1x256xf32> to vector<4x256xf32>
    %205 = arith.mulf %202, %204 : vector<4x256xf32>
    %206 = vector.broadcast %201 : vector<4x1xf32> to vector<4x256xf32>
    %207 = arith.mulf %206, %205 : vector<4x256xf32>
    %208 = arith.addf %200, %207 : vector<4x256xf32>
    %209 = vector.extract_strided_slice %138 {offsets = [0, 8], sizes = [4, 1], strides = [1, 1]} : vector<4x9xf32> to vector<4x1xf32>
    %210 = vector.extract_strided_slice %143 {offsets = [0, 34], sizes = [4, 256], strides = [1, 1]} : vector<4x512xf32> to vector<4x256xf32>
    %211 = vector.extract_strided_slice %142 {offsets = [8, 0], sizes = [1, 256], strides = [1, 1]} : vector<9x256xf32> to vector<1x256xf32>
    %212 = vector.broadcast %211 : vector<1x256xf32> to vector<4x256xf32>
    %213 = arith.mulf %210, %212 : vector<4x256xf32>
    %214 = vector.broadcast %209 : vector<4x1xf32> to vector<4x256xf32>
    %215 = arith.mulf %214, %213 : vector<4x256xf32>
    %216 = arith.addf %208, %215 : vector<4x256xf32>
    %217 = vector.broadcast %140 : vector<4x1xf32> to vector<4x256xf32>
    %218 = arith.addf %216, %217 : vector<4x256xf32>
    %219 = vector.extract_strided_slice %24 {offsets = [0, 4], sizes = [16, 4], strides = [1, 1]} : vector<16x16xf32> to vector<16x4xf32>
    %cst_38 = arith.constant dense<0.000000e+00> : vector<16x256xf32>
    %220 = tpu.matmul %219, %218, %cst_38 {dimension_numbers = #tpu.dot_dimension_numbers<[1], [0], [0], [1], [0, 0, 1, 1], [], []>} : vector<16x4xf32>, vector<4x256xf32>, vector<16x256xf32> -> vector<16x256xf32>
    %221 = arith.addf %111, %220 : vector<16x256xf32>
    %222 = vector.extract_strided_slice %23 {offsets = [8, 0], sizes = [4, 256], strides = [1, 1]} : vector<16x256xf32> to vector<4x256xf32>
    %c0_39 = arith.constant 0 : index
    %c0_40 = arith.constant 0 : index
    %223 = vector.load %arg15[%c0_39, %c0_40] : memref<6x256xf32, #tpu.memory_space<vmem>>, vector<1x256xf32>
    %224 = tpu.concatenate %222, %222 in 1 : vector<4x256xf32>, vector<4x256xf32> -> vector<4x512xf32>
    %225 = vector.extract_strided_slice %224 {offsets = [0, 1], sizes = [4, 256], strides = [1, 1]} : vector<4x512xf32> to vector<4x256xf32>
    %226 = vector.broadcast %223 : vector<1x256xf32> to vector<4x256xf32>
    %227 = arith.mulf %226, %225 : vector<4x256xf32>
    %cst_41 = arith.constant 1.000000e+00 : f32
    %228 = vector.broadcast %cst_41 : f32 to vector<1x256xf32>
    %229 = arith.subf %228, %223 : vector<1x256xf32>
    %230 = vector.extract_strided_slice %224 {offsets = [0, 255], sizes = [4, 256], strides = [1, 1]} : vector<4x512xf32> to vector<4x256xf32>
    %231 = vector.broadcast %229 : vector<1x256xf32> to vector<4x256xf32>
    %232 = arith.mulf %231, %230 : vector<4x256xf32>
    %233 = arith.addf %227, %232 : vector<4x256xf32>
    %234 = arith.maximumf %222, %233 : vector<4x256xf32>
    %c1_42 = arith.constant 1 : index
    %c0_43 = arith.constant 0 : index
    %235 = vector.load %arg15[%c1_42, %c0_43] : memref<6x256xf32, #tpu.memory_space<vmem>>, vector<1x256xf32>
    %236 = tpu.concatenate %234, %234 in 1 : vector<4x256xf32>, vector<4x256xf32> -> vector<4x512xf32>
    %237 = vector.extract_strided_slice %236 {offsets = [0, 2], sizes = [4, 256], strides = [1, 1]} : vector<4x512xf32> to vector<4x256xf32>
    %238 = vector.broadcast %235 : vector<1x256xf32> to vector<4x256xf32>
    %239 = arith.mulf %238, %237 : vector<4x256xf32>
    %cst_44 = arith.constant 1.000000e+00 : f32
    %240 = vector.broadcast %cst_44 : f32 to vector<1x256xf32>
    %241 = arith.subf %240, %235 : vector<1x256xf32>
    %242 = vector.extract_strided_slice %236 {offsets = [0, 254], sizes = [4, 256], strides = [1, 1]} : vector<4x512xf32> to vector<4x256xf32>
    %243 = vector.broadcast %241 : vector<1x256xf32> to vector<4x256xf32>
    %244 = arith.mulf %243, %242 : vector<4x256xf32>
    %245 = arith.addf %239, %244 : vector<4x256xf32>
    %246 = arith.maximumf %234, %245 : vector<4x256xf32>
    %c3_45 = arith.constant 3 : index
    %c0_46 = arith.constant 0 : index
    %247 = vector.load %arg15[%c3_45, %c0_46] : memref<6x256xf32, #tpu.memory_space<vmem>>, vector<1x256xf32>
    %248 = tpu.concatenate %246, %246 in 1 : vector<4x256xf32>, vector<4x256xf32> -> vector<4x512xf32>
    %249 = vector.extract_strided_slice %248 {offsets = [0, 16], sizes = [4, 256], strides = [1, 1]} : vector<4x512xf32> to vector<4x256xf32>
    %250 = vector.broadcast %247 : vector<1x256xf32> to vector<4x256xf32>
    %251 = arith.mulf %250, %249 : vector<4x256xf32>
    %cst_47 = arith.constant 1.000000e+00 : f32
    %252 = vector.broadcast %cst_47 : f32 to vector<1x256xf32>
    %253 = arith.subf %252, %247 : vector<1x256xf32>
    %254 = vector.extract_strided_slice %248 {offsets = [0, 240], sizes = [4, 256], strides = [1, 1]} : vector<4x512xf32> to vector<4x256xf32>
    %255 = vector.broadcast %253 : vector<1x256xf32> to vector<4x256xf32>
    %256 = arith.mulf %255, %254 : vector<4x256xf32>
    %257 = arith.addf %251, %256 : vector<4x256xf32>
    %258 = arith.maximumf %246, %257 : vector<4x256xf32>
    %c4 = arith.constant 4 : index
    %c0_48 = arith.constant 0 : index
    %259 = vector.load %arg15[%c4, %c0_48] : memref<6x256xf32, #tpu.memory_space<vmem>>, vector<1x256xf32>
    %260 = tpu.concatenate %258, %258 in 1 : vector<4x256xf32>, vector<4x256xf32> -> vector<4x512xf32>
    %261 = vector.extract_strided_slice %260 {offsets = [0, 32], sizes = [4, 256], strides = [1, 1]} : vector<4x512xf32> to vector<4x256xf32>
    %262 = vector.broadcast %259 : vector<1x256xf32> to vector<4x256xf32>
    %263 = arith.mulf %262, %261 : vector<4x256xf32>
    %cst_49 = arith.constant 1.000000e+00 : f32
    %264 = vector.broadcast %cst_49 : f32 to vector<1x256xf32>
    %265 = arith.subf %264, %259 : vector<1x256xf32>
    %266 = vector.extract_strided_slice %260 {offsets = [0, 224], sizes = [4, 256], strides = [1, 1]} : vector<4x512xf32> to vector<4x256xf32>
    %267 = vector.broadcast %265 : vector<1x256xf32> to vector<4x256xf32>
    %268 = arith.mulf %267, %266 : vector<4x256xf32>
    %269 = arith.addf %263, %268 : vector<4x256xf32>
    %270 = arith.maximumf %258, %269 : vector<4x256xf32>
    %c2 = arith.constant 2 : index
    %c0_50 = arith.constant 0 : index
    %c0_51 = arith.constant 0 : index
    %271 = vector.load %arg6[%c2, %c0_50, %c0_51] : memref<4x4x9xf32, #tpu.memory_space<vmem>>, vector<1x4x9xf32>
    %272 = vector.shape_cast %271 : vector<1x4x9xf32> to vector<4x9xf32>
    %c2_52 = arith.constant 2 : index
    %c0_53 = arith.constant 0 : index
    %c0_54 = arith.constant 0 : index
    %273 = vector.load %arg7[%c2_52, %c0_53, %c0_54] : memref<4x4x1xf32, #tpu.memory_space<vmem>>, vector<1x4x1xf32>
    %274 = vector.shape_cast %273 : vector<1x4x1xf32> to vector<4x1xf32>
    %c2_55 = arith.constant 2 : index
    %c0_56 = arith.constant 0 : index
    %c0_57 = arith.constant 0 : index
    %275 = vector.load %arg14[%c2_55, %c0_56, %c0_57] : memref<4x9x256xf32, #tpu.memory_space<vmem>>, vector<1x9x256xf32>
    %276 = vector.shape_cast %275 : vector<1x9x256xf32> to vector<9x256xf32>
    %277 = tpu.concatenate %270, %270 in 1 : vector<4x256xf32>, vector<4x256xf32> -> vector<4x512xf32>
    %cst_58 = arith.constant 0.000000e+00 : f32
    %278 = vector.broadcast %cst_58 : f32 to vector<4x256xf32>
    %279 = vector.extract_strided_slice %272 {offsets = [0, 0], sizes = [4, 1], strides = [1, 1]} : vector<4x9xf32> to vector<4x1xf32>
    %280 = vector.extract_strided_slice %277 {offsets = [0, 188], sizes = [4, 256], strides = [1, 1]} : vector<4x512xf32> to vector<4x256xf32>
    %281 = vector.extract_strided_slice %276 {offsets = [0, 0], sizes = [1, 256], strides = [1, 1]} : vector<9x256xf32> to vector<1x256xf32>
    %282 = vector.broadcast %281 : vector<1x256xf32> to vector<4x256xf32>
    %283 = arith.mulf %280, %282 : vector<4x256xf32>
    %284 = vector.broadcast %279 : vector<4x1xf32> to vector<4x256xf32>
    %285 = arith.mulf %284, %283 : vector<4x256xf32>
    %286 = arith.addf %278, %285 : vector<4x256xf32>
    %287 = vector.extract_strided_slice %272 {offsets = [0, 1], sizes = [4, 1], strides = [1, 1]} : vector<4x9xf32> to vector<4x1xf32>
    %288 = vector.extract_strided_slice %277 {offsets = [0, 192], sizes = [4, 256], strides = [1, 1]} : vector<4x512xf32> to vector<4x256xf32>
    %289 = vector.extract_strided_slice %276 {offsets = [1, 0], sizes = [1, 256], strides = [1, 1]} : vector<9x256xf32> to vector<1x256xf32>
    %290 = vector.broadcast %289 : vector<1x256xf32> to vector<4x256xf32>
    %291 = arith.mulf %288, %290 : vector<4x256xf32>
    %292 = vector.broadcast %287 : vector<4x1xf32> to vector<4x256xf32>
    %293 = arith.mulf %292, %291 : vector<4x256xf32>
    %294 = arith.addf %286, %293 : vector<4x256xf32>
    %295 = vector.extract_strided_slice %272 {offsets = [0, 2], sizes = [4, 1], strides = [1, 1]} : vector<4x9xf32> to vector<4x1xf32>
    %296 = vector.extract_strided_slice %277 {offsets = [0, 196], sizes = [4, 256], strides = [1, 1]} : vector<4x512xf32> to vector<4x256xf32>
    %297 = vector.extract_strided_slice %276 {offsets = [2, 0], sizes = [1, 256], strides = [1, 1]} : vector<9x256xf32> to vector<1x256xf32>
    %298 = vector.broadcast %297 : vector<1x256xf32> to vector<4x256xf32>
    %299 = arith.mulf %296, %298 : vector<4x256xf32>
    %300 = vector.broadcast %295 : vector<4x1xf32> to vector<4x256xf32>
    %301 = arith.mulf %300, %299 : vector<4x256xf32>
    %302 = arith.addf %294, %301 : vector<4x256xf32>
    %303 = vector.extract_strided_slice %272 {offsets = [0, 3], sizes = [4, 1], strides = [1, 1]} : vector<4x9xf32> to vector<4x1xf32>
    %304 = vector.extract_strided_slice %277 {offsets = [0, 252], sizes = [4, 256], strides = [1, 1]} : vector<4x512xf32> to vector<4x256xf32>
    %305 = vector.extract_strided_slice %276 {offsets = [3, 0], sizes = [1, 256], strides = [1, 1]} : vector<9x256xf32> to vector<1x256xf32>
    %306 = vector.broadcast %305 : vector<1x256xf32> to vector<4x256xf32>
    %307 = arith.mulf %304, %306 : vector<4x256xf32>
    %308 = vector.broadcast %303 : vector<4x1xf32> to vector<4x256xf32>
    %309 = arith.mulf %308, %307 : vector<4x256xf32>
    %310 = arith.addf %302, %309 : vector<4x256xf32>
    %311 = vector.extract_strided_slice %272 {offsets = [0, 4], sizes = [4, 1], strides = [1, 1]} : vector<4x9xf32> to vector<4x1xf32>
    %312 = vector.extract_strided_slice %277 {offsets = [0, 0], sizes = [4, 256], strides = [1, 1]} : vector<4x512xf32> to vector<4x256xf32>
    %313 = vector.extract_strided_slice %276 {offsets = [4, 0], sizes = [1, 256], strides = [1, 1]} : vector<9x256xf32> to vector<1x256xf32>
    %314 = vector.broadcast %313 : vector<1x256xf32> to vector<4x256xf32>
    %315 = arith.mulf %312, %314 : vector<4x256xf32>
    %316 = vector.broadcast %311 : vector<4x1xf32> to vector<4x256xf32>
    %317 = arith.mulf %316, %315 : vector<4x256xf32>
    %318 = arith.addf %310, %317 : vector<4x256xf32>
    %319 = vector.extract_strided_slice %272 {offsets = [0, 5], sizes = [4, 1], strides = [1, 1]} : vector<4x9xf32> to vector<4x1xf32>
    %320 = vector.extract_strided_slice %277 {offsets = [0, 4], sizes = [4, 256], strides = [1, 1]} : vector<4x512xf32> to vector<4x256xf32>
    %321 = vector.extract_strided_slice %276 {offsets = [5, 0], sizes = [1, 256], strides = [1, 1]} : vector<9x256xf32> to vector<1x256xf32>
    %322 = vector.broadcast %321 : vector<1x256xf32> to vector<4x256xf32>
    %323 = arith.mulf %320, %322 : vector<4x256xf32>
    %324 = vector.broadcast %319 : vector<4x1xf32> to vector<4x256xf32>
    %325 = arith.mulf %324, %323 : vector<4x256xf32>
    %326 = arith.addf %318, %325 : vector<4x256xf32>
    %327 = vector.extract_strided_slice %272 {offsets = [0, 6], sizes = [4, 1], strides = [1, 1]} : vector<4x9xf32> to vector<4x1xf32>
    %328 = vector.extract_strided_slice %277 {offsets = [0, 60], sizes = [4, 256], strides = [1, 1]} : vector<4x512xf32> to vector<4x256xf32>
    %329 = vector.extract_strided_slice %276 {offsets = [6, 0], sizes = [1, 256], strides = [1, 1]} : vector<9x256xf32> to vector<1x256xf32>
    %330 = vector.broadcast %329 : vector<1x256xf32> to vector<4x256xf32>
    %331 = arith.mulf %328, %330 : vector<4x256xf32>
    %332 = vector.broadcast %327 : vector<4x1xf32> to vector<4x256xf32>
    %333 = arith.mulf %332, %331 : vector<4x256xf32>
    %334 = arith.addf %326, %333 : vector<4x256xf32>
    %335 = vector.extract_strided_slice %272 {offsets = [0, 7], sizes = [4, 1], strides = [1, 1]} : vector<4x9xf32> to vector<4x1xf32>
    %336 = vector.extract_strided_slice %277 {offsets = [0, 64], sizes = [4, 256], strides = [1, 1]} : vector<4x512xf32> to vector<4x256xf32>
    %337 = vector.extract_strided_slice %276 {offsets = [7, 0], sizes = [1, 256], strides = [1, 1]} : vector<9x256xf32> to vector<1x256xf32>
    %338 = vector.broadcast %337 : vector<1x256xf32> to vector<4x256xf32>
    %339 = arith.mulf %336, %338 : vector<4x256xf32>
    %340 = vector.broadcast %335 : vector<4x1xf32> to vector<4x256xf32>
    %341 = arith.mulf %340, %339 : vector<4x256xf32>
    %342 = arith.addf %334, %341 : vector<4x256xf32>
    %343 = vector.extract_strided_slice %272 {offsets = [0, 8], sizes = [4, 1], strides = [1, 1]} : vector<4x9xf32> to vector<4x1xf32>
    %344 = vector.extract_strided_slice %277 {offsets = [0, 68], sizes = [4, 256], strides = [1, 1]} : vector<4x512xf32> to vector<4x256xf32>
    %345 = vector.extract_strided_slice %276 {offsets = [8, 0], sizes = [1, 256], strides = [1, 1]} : vector<9x256xf32> to vector<1x256xf32>
    %346 = vector.broadcast %345 : vector<1x256xf32> to vector<4x256xf32>
    %347 = arith.mulf %344, %346 : vector<4x256xf32>
    %348 = vector.broadcast %343 : vector<4x1xf32> to vector<4x256xf32>
    %349 = arith.mulf %348, %347 : vector<4x256xf32>
    %350 = arith.addf %342, %349 : vector<4x256xf32>
    %351 = vector.broadcast %274 : vector<4x1xf32> to vector<4x256xf32>
    %352 = arith.addf %350, %351 : vector<4x256xf32>
    %353 = vector.extract_strided_slice %24 {offsets = [0, 8], sizes = [16, 4], strides = [1, 1]} : vector<16x16xf32> to vector<16x4xf32>
    %cst_59 = arith.constant dense<0.000000e+00> : vector<16x256xf32>
    %354 = tpu.matmul %353, %352, %cst_59 {dimension_numbers = #tpu.dot_dimension_numbers<[1], [0], [0], [1], [0, 0, 1, 1], [], []>} : vector<16x4xf32>, vector<4x256xf32>, vector<16x256xf32> -> vector<16x256xf32>
    %355 = arith.addf %221, %354 : vector<16x256xf32>
    %356 = vector.extract_strided_slice %23 {offsets = [12, 0], sizes = [4, 256], strides = [1, 1]} : vector<16x256xf32> to vector<4x256xf32>
    %c0_60 = arith.constant 0 : index
    %c0_61 = arith.constant 0 : index
    %357 = vector.load %arg15[%c0_60, %c0_61] : memref<6x256xf32, #tpu.memory_space<vmem>>, vector<1x256xf32>
    %358 = tpu.concatenate %356, %356 in 1 : vector<4x256xf32>, vector<4x256xf32> -> vector<4x512xf32>
    %359 = vector.extract_strided_slice %358 {offsets = [0, 1], sizes = [4, 256], strides = [1, 1]} : vector<4x512xf32> to vector<4x256xf32>
    %360 = vector.broadcast %357 : vector<1x256xf32> to vector<4x256xf32>
    %361 = arith.mulf %360, %359 : vector<4x256xf32>
    %cst_62 = arith.constant 1.000000e+00 : f32
    %362 = vector.broadcast %cst_62 : f32 to vector<1x256xf32>
    %363 = arith.subf %362, %357 : vector<1x256xf32>
    %364 = vector.extract_strided_slice %358 {offsets = [0, 255], sizes = [4, 256], strides = [1, 1]} : vector<4x512xf32> to vector<4x256xf32>
    %365 = vector.broadcast %363 : vector<1x256xf32> to vector<4x256xf32>
    %366 = arith.mulf %365, %364 : vector<4x256xf32>
    %367 = arith.addf %361, %366 : vector<4x256xf32>
    %368 = arith.maximumf %356, %367 : vector<4x256xf32>
    %c1_63 = arith.constant 1 : index
    %c0_64 = arith.constant 0 : index
    %369 = vector.load %arg15[%c1_63, %c0_64] : memref<6x256xf32, #tpu.memory_space<vmem>>, vector<1x256xf32>
    %370 = tpu.concatenate %368, %368 in 1 : vector<4x256xf32>, vector<4x256xf32> -> vector<4x512xf32>
    %371 = vector.extract_strided_slice %370 {offsets = [0, 2], sizes = [4, 256], strides = [1, 1]} : vector<4x512xf32> to vector<4x256xf32>
    %372 = vector.broadcast %369 : vector<1x256xf32> to vector<4x256xf32>
    %373 = arith.mulf %372, %371 : vector<4x256xf32>
    %cst_65 = arith.constant 1.000000e+00 : f32
    %374 = vector.broadcast %cst_65 : f32 to vector<1x256xf32>
    %375 = arith.subf %374, %369 : vector<1x256xf32>
    %376 = vector.extract_strided_slice %370 {offsets = [0, 254], sizes = [4, 256], strides = [1, 1]} : vector<4x512xf32> to vector<4x256xf32>
    %377 = vector.broadcast %375 : vector<1x256xf32> to vector<4x256xf32>
    %378 = arith.mulf %377, %376 : vector<4x256xf32>
    %379 = arith.addf %373, %378 : vector<4x256xf32>
    %380 = arith.maximumf %368, %379 : vector<4x256xf32>
    %c2_66 = arith.constant 2 : index
    %c0_67 = arith.constant 0 : index
    %381 = vector.load %arg15[%c2_66, %c0_67] : memref<6x256xf32, #tpu.memory_space<vmem>>, vector<1x256xf32>
    %382 = tpu.concatenate %380, %380 in 1 : vector<4x256xf32>, vector<4x256xf32> -> vector<4x512xf32>
    %383 = vector.extract_strided_slice %382 {offsets = [0, 4], sizes = [4, 256], strides = [1, 1]} : vector<4x512xf32> to vector<4x256xf32>
    %384 = vector.broadcast %381 : vector<1x256xf32> to vector<4x256xf32>
    %385 = arith.mulf %384, %383 : vector<4x256xf32>
    %cst_68 = arith.constant 1.000000e+00 : f32
    %386 = vector.broadcast %cst_68 : f32 to vector<1x256xf32>
    %387 = arith.subf %386, %381 : vector<1x256xf32>
    %388 = vector.extract_strided_slice %382 {offsets = [0, 252], sizes = [4, 256], strides = [1, 1]} : vector<4x512xf32> to vector<4x256xf32>
    %389 = vector.broadcast %387 : vector<1x256xf32> to vector<4x256xf32>
    %390 = arith.mulf %389, %388 : vector<4x256xf32>
    %391 = arith.addf %385, %390 : vector<4x256xf32>
    %392 = arith.maximumf %380, %391 : vector<4x256xf32>
    %c3_69 = arith.constant 3 : index
    %c0_70 = arith.constant 0 : index
    %393 = vector.load %arg15[%c3_69, %c0_70] : memref<6x256xf32, #tpu.memory_space<vmem>>, vector<1x256xf32>
    %394 = tpu.concatenate %392, %392 in 1 : vector<4x256xf32>, vector<4x256xf32> -> vector<4x512xf32>
    %395 = vector.extract_strided_slice %394 {offsets = [0, 16], sizes = [4, 256], strides = [1, 1]} : vector<4x512xf32> to vector<4x256xf32>
    %396 = vector.broadcast %393 : vector<1x256xf32> to vector<4x256xf32>
    %397 = arith.mulf %396, %395 : vector<4x256xf32>
    %cst_71 = arith.constant 1.000000e+00 : f32
    %398 = vector.broadcast %cst_71 : f32 to vector<1x256xf32>
    %399 = arith.subf %398, %393 : vector<1x256xf32>
    %400 = vector.extract_strided_slice %394 {offsets = [0, 240], sizes = [4, 256], strides = [1, 1]} : vector<4x512xf32> to vector<4x256xf32>
    %401 = vector.broadcast %399 : vector<1x256xf32> to vector<4x256xf32>
    %402 = arith.mulf %401, %400 : vector<4x256xf32>
    %403 = arith.addf %397, %402 : vector<4x256xf32>
    %404 = arith.maximumf %392, %403 : vector<4x256xf32>
    %c4_72 = arith.constant 4 : index
    %c0_73 = arith.constant 0 : index
    %405 = vector.load %arg15[%c4_72, %c0_73] : memref<6x256xf32, #tpu.memory_space<vmem>>, vector<1x256xf32>
    %406 = tpu.concatenate %404, %404 in 1 : vector<4x256xf32>, vector<4x256xf32> -> vector<4x512xf32>
    %407 = vector.extract_strided_slice %406 {offsets = [0, 32], sizes = [4, 256], strides = [1, 1]} : vector<4x512xf32> to vector<4x256xf32>
    %408 = vector.broadcast %405 : vector<1x256xf32> to vector<4x256xf32>
    %409 = arith.mulf %408, %407 : vector<4x256xf32>
    %cst_74 = arith.constant 1.000000e+00 : f32
    %410 = vector.broadcast %cst_74 : f32 to vector<1x256xf32>
    %411 = arith.subf %410, %405 : vector<1x256xf32>
    %412 = vector.extract_strided_slice %406 {offsets = [0, 224], sizes = [4, 256], strides = [1, 1]} : vector<4x512xf32> to vector<4x256xf32>
    %413 = vector.broadcast %411 : vector<1x256xf32> to vector<4x256xf32>
    %414 = arith.mulf %413, %412 : vector<4x256xf32>
    %415 = arith.addf %409, %414 : vector<4x256xf32>
    %416 = arith.maximumf %404, %415 : vector<4x256xf32>
    %c5 = arith.constant 5 : index
    %c0_75 = arith.constant 0 : index
    %417 = vector.load %arg15[%c5, %c0_75] : memref<6x256xf32, #tpu.memory_space<vmem>>, vector<1x256xf32>
    %418 = tpu.concatenate %416, %416 in 1 : vector<4x256xf32>, vector<4x256xf32> -> vector<4x512xf32>
    %419 = vector.extract_strided_slice %418 {offsets = [0, 64], sizes = [4, 256], strides = [1, 1]} : vector<4x512xf32> to vector<4x256xf32>
    %420 = vector.broadcast %417 : vector<1x256xf32> to vector<4x256xf32>
    %421 = arith.mulf %420, %419 : vector<4x256xf32>
    %cst_76 = arith.constant 1.000000e+00 : f32
    %422 = vector.broadcast %cst_76 : f32 to vector<1x256xf32>
    %423 = arith.subf %422, %417 : vector<1x256xf32>
    %424 = vector.extract_strided_slice %418 {offsets = [0, 192], sizes = [4, 256], strides = [1, 1]} : vector<4x512xf32> to vector<4x256xf32>
    %425 = vector.broadcast %423 : vector<1x256xf32> to vector<4x256xf32>
    %426 = arith.mulf %425, %424 : vector<4x256xf32>
    %427 = arith.addf %421, %426 : vector<4x256xf32>
    %428 = arith.maximumf %416, %427 : vector<4x256xf32>
    %c3_77 = arith.constant 3 : index
    %c0_78 = arith.constant 0 : index
    %c0_79 = arith.constant 0 : index
    %429 = vector.load %arg6[%c3_77, %c0_78, %c0_79] : memref<4x4x9xf32, #tpu.memory_space<vmem>>, vector<1x4x9xf32>
    %430 = vector.shape_cast %429 : vector<1x4x9xf32> to vector<4x9xf32>
    %c3_80 = arith.constant 3 : index
    %c0_81 = arith.constant 0 : index
    %c0_82 = arith.constant 0 : index
    %431 = vector.load %arg7[%c3_80, %c0_81, %c0_82] : memref<4x4x1xf32, #tpu.memory_space<vmem>>, vector<1x4x1xf32>
    %432 = vector.shape_cast %431 : vector<1x4x1xf32> to vector<4x1xf32>
    %c3_83 = arith.constant 3 : index
    %c0_84 = arith.constant 0 : index
    %c0_85 = arith.constant 0 : index
    %433 = vector.load %arg14[%c3_83, %c0_84, %c0_85] : memref<4x9x256xf32, #tpu.memory_space<vmem>>, vector<1x9x256xf32>
    %434 = vector.shape_cast %433 : vector<1x9x256xf32> to vector<9x256xf32>
    %435 = tpu.concatenate %428, %428 in 1 : vector<4x256xf32>, vector<4x256xf32> -> vector<4x512xf32>
    %cst_86 = arith.constant 0.000000e+00 : f32
    %436 = vector.broadcast %cst_86 : f32 to vector<4x256xf32>
    %437 = vector.extract_strided_slice %430 {offsets = [0, 0], sizes = [4, 1], strides = [1, 1]} : vector<4x9xf32> to vector<4x1xf32>
    %438 = vector.extract_strided_slice %435 {offsets = [0, 120], sizes = [4, 256], strides = [1, 1]} : vector<4x512xf32> to vector<4x256xf32>
    %439 = vector.extract_strided_slice %434 {offsets = [0, 0], sizes = [1, 256], strides = [1, 1]} : vector<9x256xf32> to vector<1x256xf32>
    %440 = vector.broadcast %439 : vector<1x256xf32> to vector<4x256xf32>
    %441 = arith.mulf %438, %440 : vector<4x256xf32>
    %442 = vector.broadcast %437 : vector<4x1xf32> to vector<4x256xf32>
    %443 = arith.mulf %442, %441 : vector<4x256xf32>
    %444 = arith.addf %436, %443 : vector<4x256xf32>
    %445 = vector.extract_strided_slice %430 {offsets = [0, 1], sizes = [4, 1], strides = [1, 1]} : vector<4x9xf32> to vector<4x1xf32>
    %446 = vector.extract_strided_slice %435 {offsets = [0, 128], sizes = [4, 256], strides = [1, 1]} : vector<4x512xf32> to vector<4x256xf32>
    %447 = vector.extract_strided_slice %434 {offsets = [1, 0], sizes = [1, 256], strides = [1, 1]} : vector<9x256xf32> to vector<1x256xf32>
    %448 = vector.broadcast %447 : vector<1x256xf32> to vector<4x256xf32>
    %449 = arith.mulf %446, %448 : vector<4x256xf32>
    %450 = vector.broadcast %445 : vector<4x1xf32> to vector<4x256xf32>
    %451 = arith.mulf %450, %449 : vector<4x256xf32>
    %452 = arith.addf %444, %451 : vector<4x256xf32>
    %453 = vector.extract_strided_slice %430 {offsets = [0, 2], sizes = [4, 1], strides = [1, 1]} : vector<4x9xf32> to vector<4x1xf32>
    %454 = vector.extract_strided_slice %435 {offsets = [0, 136], sizes = [4, 256], strides = [1, 1]} : vector<4x512xf32> to vector<4x256xf32>
    %455 = vector.extract_strided_slice %434 {offsets = [2, 0], sizes = [1, 256], strides = [1, 1]} : vector<9x256xf32> to vector<1x256xf32>
    %456 = vector.broadcast %455 : vector<1x256xf32> to vector<4x256xf32>
    %457 = arith.mulf %454, %456 : vector<4x256xf32>
    %458 = vector.broadcast %453 : vector<4x1xf32> to vector<4x256xf32>
    %459 = arith.mulf %458, %457 : vector<4x256xf32>
    %460 = arith.addf %452, %459 : vector<4x256xf32>
    %461 = vector.extract_strided_slice %430 {offsets = [0, 3], sizes = [4, 1], strides = [1, 1]} : vector<4x9xf32> to vector<4x1xf32>
    %462 = vector.extract_strided_slice %435 {offsets = [0, 248], sizes = [4, 256], strides = [1, 1]} : vector<4x512xf32> to vector<4x256xf32>
    %463 = vector.extract_strided_slice %434 {offsets = [3, 0], sizes = [1, 256], strides = [1, 1]} : vector<9x256xf32> to vector<1x256xf32>
    %464 = vector.broadcast %463 : vector<1x256xf32> to vector<4x256xf32>
    %465 = arith.mulf %462, %464 : vector<4x256xf32>
    %466 = vector.broadcast %461 : vector<4x1xf32> to vector<4x256xf32>
    %467 = arith.mulf %466, %465 : vector<4x256xf32>
    %468 = arith.addf %460, %467 : vector<4x256xf32>
    %469 = vector.extract_strided_slice %430 {offsets = [0, 4], sizes = [4, 1], strides = [1, 1]} : vector<4x9xf32> to vector<4x1xf32>
    %470 = vector.extract_strided_slice %435 {offsets = [0, 0], sizes = [4, 256], strides = [1, 1]} : vector<4x512xf32> to vector<4x256xf32>
    %471 = vector.extract_strided_slice %434 {offsets = [4, 0], sizes = [1, 256], strides = [1, 1]} : vector<9x256xf32> to vector<1x256xf32>
    %472 = vector.broadcast %471 : vector<1x256xf32> to vector<4x256xf32>
    %473 = arith.mulf %470, %472 : vector<4x256xf32>
    %474 = vector.broadcast %469 : vector<4x1xf32> to vector<4x256xf32>
    %475 = arith.mulf %474, %473 : vector<4x256xf32>
    %476 = arith.addf %468, %475 : vector<4x256xf32>
    %477 = vector.extract_strided_slice %430 {offsets = [0, 5], sizes = [4, 1], strides = [1, 1]} : vector<4x9xf32> to vector<4x1xf32>
    %478 = vector.extract_strided_slice %435 {offsets = [0, 8], sizes = [4, 256], strides = [1, 1]} : vector<4x512xf32> to vector<4x256xf32>
    %479 = vector.extract_strided_slice %434 {offsets = [5, 0], sizes = [1, 256], strides = [1, 1]} : vector<9x256xf32> to vector<1x256xf32>
    %480 = vector.broadcast %479 : vector<1x256xf32> to vector<4x256xf32>
    %481 = arith.mulf %478, %480 : vector<4x256xf32>
    %482 = vector.broadcast %477 : vector<4x1xf32> to vector<4x256xf32>
    %483 = arith.mulf %482, %481 : vector<4x256xf32>
    %484 = arith.addf %476, %483 : vector<4x256xf32>
    %485 = vector.extract_strided_slice %430 {offsets = [0, 6], sizes = [4, 1], strides = [1, 1]} : vector<4x9xf32> to vector<4x1xf32>
    %486 = vector.extract_strided_slice %435 {offsets = [0, 120], sizes = [4, 256], strides = [1, 1]} : vector<4x512xf32> to vector<4x256xf32>
    %487 = vector.extract_strided_slice %434 {offsets = [6, 0], sizes = [1, 256], strides = [1, 1]} : vector<9x256xf32> to vector<1x256xf32>
    %488 = vector.broadcast %487 : vector<1x256xf32> to vector<4x256xf32>
    %489 = arith.mulf %486, %488 : vector<4x256xf32>
    %490 = vector.broadcast %485 : vector<4x1xf32> to vector<4x256xf32>
    %491 = arith.mulf %490, %489 : vector<4x256xf32>
    %492 = arith.addf %484, %491 : vector<4x256xf32>
    %493 = vector.extract_strided_slice %430 {offsets = [0, 7], sizes = [4, 1], strides = [1, 1]} : vector<4x9xf32> to vector<4x1xf32>
    %494 = vector.extract_strided_slice %435 {offsets = [0, 128], sizes = [4, 256], strides = [1, 1]} : vector<4x512xf32> to vector<4x256xf32>
    %495 = vector.extract_strided_slice %434 {offsets = [7, 0], sizes = [1, 256], strides = [1, 1]} : vector<9x256xf32> to vector<1x256xf32>
    %496 = vector.broadcast %495 : vector<1x256xf32> to vector<4x256xf32>
    %497 = arith.mulf %494, %496 : vector<4x256xf32>
    %498 = vector.broadcast %493 : vector<4x1xf32> to vector<4x256xf32>
    %499 = arith.mulf %498, %497 : vector<4x256xf32>
    %500 = arith.addf %492, %499 : vector<4x256xf32>
    %501 = vector.extract_strided_slice %430 {offsets = [0, 8], sizes = [4, 1], strides = [1, 1]} : vector<4x9xf32> to vector<4x1xf32>
    %502 = vector.extract_strided_slice %435 {offsets = [0, 136], sizes = [4, 256], strides = [1, 1]} : vector<4x512xf32> to vector<4x256xf32>
    %503 = vector.extract_strided_slice %434 {offsets = [8, 0], sizes = [1, 256], strides = [1, 1]} : vector<9x256xf32> to vector<1x256xf32>
    %504 = vector.broadcast %503 : vector<1x256xf32> to vector<4x256xf32>
    %505 = arith.mulf %502, %504 : vector<4x256xf32>
    %506 = vector.broadcast %501 : vector<4x1xf32> to vector<4x256xf32>
    %507 = arith.mulf %506, %505 : vector<4x256xf32>
    %508 = arith.addf %500, %507 : vector<4x256xf32>
    %509 = vector.broadcast %432 : vector<4x1xf32> to vector<4x256xf32>
    %510 = arith.addf %508, %509 : vector<4x256xf32>
    %511 = vector.extract_strided_slice %24 {offsets = [0, 12], sizes = [16, 4], strides = [1, 1]} : vector<16x16xf32> to vector<16x4xf32>
    %cst_87 = arith.constant dense<0.000000e+00> : vector<16x256xf32>
    %512 = tpu.matmul %511, %510, %cst_87 {dimension_numbers = #tpu.dot_dimension_numbers<[1], [0], [0], [1], [0, 0, 1, 1], [], []>} : vector<16x4xf32>, vector<4x256xf32>, vector<16x256xf32> -> vector<16x256xf32>
    %513 = arith.addf %355, %512 : vector<16x256xf32>
    %c0_88 = arith.constant 0 : index
    %c0_89 = arith.constant 0 : index
    %514 = vector.load %arg9[%c0_88, %c0_89] : memref<16x1xf32, #tpu.memory_space<vmem>>, vector<16x1xf32>
    %515 = vector.broadcast %514 : vector<16x1xf32> to vector<16x256xf32>
    %516 = arith.addf %513, %515 : vector<16x256xf32>
    %cst_90 = arith.constant 5.000000e-01 : f32
    %517 = vector.broadcast %cst_90 : f32 to vector<16x256xf32>
    %518 = arith.mulf %517, %516 : vector<16x256xf32>
    %cst_91 = arith.constant 0.707106769 : f32
    %519 = vector.broadcast %cst_91 : f32 to vector<16x256xf32>
    %520 = arith.mulf %516, %519 : vector<16x256xf32>
    %521 = math.erf %520 : vector<16x256xf32>
    %cst_92 = arith.constant 1.000000e+00 : f32
    %522 = vector.broadcast %cst_92 : f32 to vector<16x256xf32>
    %523 = arith.addf %522, %521 : vector<16x256xf32>
    %524 = arith.mulf %518, %523 : vector<16x256xf32>
    %525 = arith.mulf %524, %23 : vector<16x256xf32>
    %526 = arith.addf %525, %1 : vector<16x256xf32>
    %c0_93 = arith.constant 0 : index
    %c0_94 = arith.constant 0 : index
    %527 = vector.load %arg4[%c0_93, %c0_94] : memref<16x1xf32, #tpu.memory_space<vmem>>, vector<16x1xf32>
    %c0_95 = arith.constant 0 : index
    %c0_96 = arith.constant 0 : index
    %528 = vector.load %arg5[%c0_95, %c0_96] : memref<16x1xf32, #tpu.memory_space<vmem>>, vector<16x1xf32>
    %cst_97 = arith.constant dense<0.000000e+00> : vector<256xf32>
    %529 = vector.multi_reduction <add>, %526, %cst_97 [0] : vector<16x256xf32> to vector<256xf32>
    %530 = vector.shape_cast %529 : vector<256xf32> to vector<1x256xf32>
    %cst_98 = arith.constant 1.600000e+01 : f32
    %531 = vector.broadcast %cst_98 : f32 to vector<1x256xf32>
    %532 = arith.divf %530, %531 : vector<1x256xf32>
    %533 = vector.broadcast %532 : vector<1x256xf32> to vector<16x256xf32>
    %534 = arith.subf %526, %533 : vector<16x256xf32>
    %535 = arith.mulf %534, %534 : vector<16x256xf32>
    %cst_99 = arith.constant dense<0.000000e+00> : vector<256xf32>
    %536 = vector.multi_reduction <add>, %535, %cst_99 [0] : vector<16x256xf32> to vector<256xf32>
    %537 = vector.shape_cast %536 : vector<256xf32> to vector<1x256xf32>
    %cst_100 = arith.constant 1.600000e+01 : f32
    %538 = vector.broadcast %cst_100 : f32 to vector<1x256xf32>
    %539 = arith.divf %537, %538 : vector<1x256xf32>
    %cst_101 = arith.constant 9.99999997E-7 : f32
    %540 = vector.broadcast %cst_101 : f32 to vector<1x256xf32>
    %541 = arith.addf %539, %540 : vector<1x256xf32>
    %542 = math.sqrt %541 : vector<1x256xf32>
    %543 = vector.broadcast %542 : vector<1x256xf32> to vector<16x256xf32>
    %544 = arith.divf %534, %543 : vector<16x256xf32>
    %545 = vector.broadcast %527 : vector<16x1xf32> to vector<16x256xf32>
    %546 = arith.mulf %544, %545 : vector<16x256xf32>
    %547 = vector.broadcast %528 : vector<16x1xf32> to vector<16x256xf32>
    %548 = arith.addf %546, %547 : vector<16x256xf32>
    %c0_102 = arith.constant 0 : index
    %c0_103 = arith.constant 0 : index
    %c0_104 = arith.constant 0 : index
    %549 = vector.load %arg14[%c0_102, %c0_103, %c0_104] : memref<4x9x256xf32, #tpu.memory_space<vmem>>, vector<1x9x256xf32>
    %550 = vector.shape_cast %549 : vector<1x9x256xf32> to vector<9x256xf32>
    %551 = tpu.concatenate %548, %548 in 1 : vector<16x256xf32>, vector<16x256xf32> -> vector<16x512xf32>
    %552 = vector.extract_strided_slice %551 {offsets = [0, 239], sizes = [16, 256], strides = [1, 1]} : vector<16x512xf32> to vector<16x256xf32>
    %553 = vector.extract_strided_slice %550 {offsets = [0, 0], sizes = [1, 256], strides = [1, 1]} : vector<9x256xf32> to vector<1x256xf32>
    %554 = vector.broadcast %553 : vector<1x256xf32> to vector<16x256xf32>
    %555 = arith.mulf %552, %554 : vector<16x256xf32>
    %556 = vector.extract_strided_slice %551 {offsets = [0, 240], sizes = [16, 256], strides = [1, 1]} : vector<16x512xf32> to vector<16x256xf32>
    %557 = vector.extract_strided_slice %550 {offsets = [1, 0], sizes = [1, 256], strides = [1, 1]} : vector<9x256xf32> to vector<1x256xf32>
    %558 = vector.broadcast %557 : vector<1x256xf32> to vector<16x256xf32>
    %559 = arith.mulf %556, %558 : vector<16x256xf32>
    %560 = vector.extract_strided_slice %551 {offsets = [0, 241], sizes = [16, 256], strides = [1, 1]} : vector<16x512xf32> to vector<16x256xf32>
    %561 = vector.extract_strided_slice %550 {offsets = [2, 0], sizes = [1, 256], strides = [1, 1]} : vector<9x256xf32> to vector<1x256xf32>
    %562 = vector.broadcast %561 : vector<1x256xf32> to vector<16x256xf32>
    %563 = arith.mulf %560, %562 : vector<16x256xf32>
    %564 = vector.extract_strided_slice %551 {offsets = [0, 255], sizes = [16, 256], strides = [1, 1]} : vector<16x512xf32> to vector<16x256xf32>
    %565 = vector.extract_strided_slice %550 {offsets = [3, 0], sizes = [1, 256], strides = [1, 1]} : vector<9x256xf32> to vector<1x256xf32>
    %566 = vector.broadcast %565 : vector<1x256xf32> to vector<16x256xf32>
    %567 = arith.mulf %564, %566 : vector<16x256xf32>
    %568 = vector.extract_strided_slice %551 {offsets = [0, 0], sizes = [16, 256], strides = [1, 1]} : vector<16x512xf32> to vector<16x256xf32>
    %569 = vector.extract_strided_slice %550 {offsets = [4, 0], sizes = [1, 256], strides = [1, 1]} : vector<9x256xf32> to vector<1x256xf32>
    %570 = vector.broadcast %569 : vector<1x256xf32> to vector<16x256xf32>
    %571 = arith.mulf %568, %570 : vector<16x256xf32>
    %572 = vector.extract_strided_slice %551 {offsets = [0, 1], sizes = [16, 256], strides = [1, 1]} : vector<16x512xf32> to vector<16x256xf32>
    %573 = vector.extract_strided_slice %550 {offsets = [5, 0], sizes = [1, 256], strides = [1, 1]} : vector<9x256xf32> to vector<1x256xf32>
    %574 = vector.broadcast %573 : vector<1x256xf32> to vector<16x256xf32>
    %575 = arith.mulf %572, %574 : vector<16x256xf32>
    %576 = vector.extract_strided_slice %551 {offsets = [0, 15], sizes = [16, 256], strides = [1, 1]} : vector<16x512xf32> to vector<16x256xf32>
    %577 = vector.extract_strided_slice %550 {offsets = [6, 0], sizes = [1, 256], strides = [1, 1]} : vector<9x256xf32> to vector<1x256xf32>
    %578 = vector.broadcast %577 : vector<1x256xf32> to vector<16x256xf32>
    %579 = arith.mulf %576, %578 : vector<16x256xf32>
    %580 = vector.extract_strided_slice %551 {offsets = [0, 16], sizes = [16, 256], strides = [1, 1]} : vector<16x512xf32> to vector<16x256xf32>
    %581 = vector.extract_strided_slice %550 {offsets = [7, 0], sizes = [1, 256], strides = [1, 1]} : vector<9x256xf32> to vector<1x256xf32>
    %582 = vector.broadcast %581 : vector<1x256xf32> to vector<16x256xf32>
    %583 = arith.mulf %580, %582 : vector<16x256xf32>
    %584 = vector.extract_strided_slice %551 {offsets = [0, 17], sizes = [16, 256], strides = [1, 1]} : vector<16x512xf32> to vector<16x256xf32>
    %585 = vector.extract_strided_slice %550 {offsets = [8, 0], sizes = [1, 256], strides = [1, 1]} : vector<9x256xf32> to vector<1x256xf32>
    %586 = vector.broadcast %585 : vector<1x256xf32> to vector<16x256xf32>
    %587 = arith.mulf %584, %586 : vector<16x256xf32>
    %588 = tpu.concatenate %555, %559, %563, %567, %571, %575, %579, %583, %587 in 0 : vector<16x256xf32>, vector<16x256xf32>, vector<16x256xf32>, vector<16x256xf32>, vector<16x256xf32>, vector<16x256xf32>, vector<16x256xf32>, vector<16x256xf32>, vector<16x256xf32> -> vector<144x256xf32>
    %c0_105 = arith.constant 0 : index
    %c0_106 = arith.constant 0 : index
    %589 = vector.load %arg10[%c0_105, %c0_106] : memref<32x144xf32, #tpu.memory_space<vmem>>, vector<32x144xf32>
    %cst_107 = arith.constant dense<0.000000e+00> : vector<32x256xf32>
    %590 = tpu.matmul %589, %588, %cst_107 {dimension_numbers = #tpu.dot_dimension_numbers<[1], [0], [0], [1], [0, 0, 1, 1], [], []>} : vector<32x144xf32>, vector<144x256xf32>, vector<32x256xf32> -> vector<32x256xf32>
    %c0_108 = arith.constant 0 : index
    %c0_109 = arith.constant 0 : index
    %591 = vector.load %arg11[%c0_108, %c0_109] : memref<32x1xf32, #tpu.memory_space<vmem>>, vector<32x1xf32>
    %592 = vector.broadcast %591 : vector<32x1xf32> to vector<32x256xf32>
    %593 = arith.addf %590, %592 : vector<32x256xf32>
    %cst_110 = arith.constant 5.000000e-01 : f32
    %594 = vector.broadcast %cst_110 : f32 to vector<32x256xf32>
    %595 = arith.mulf %594, %593 : vector<32x256xf32>
    %cst_111 = arith.constant 0.707106769 : f32
    %596 = vector.broadcast %cst_111 : f32 to vector<32x256xf32>
    %597 = arith.mulf %593, %596 : vector<32x256xf32>
    %598 = math.erf %597 : vector<32x256xf32>
    %cst_112 = arith.constant 1.000000e+00 : f32
    %599 = vector.broadcast %cst_112 : f32 to vector<32x256xf32>
    %600 = arith.addf %599, %598 : vector<32x256xf32>
    %601 = arith.mulf %595, %600 : vector<32x256xf32>
    %c0_113 = arith.constant 0 : index
    %c0_114 = arith.constant 0 : index
    %602 = vector.load %arg12[%c0_113, %c0_114] : memref<16x32xf32, #tpu.memory_space<vmem>>, vector<16x32xf32>
    %cst_115 = arith.constant dense<0.000000e+00> : vector<16x256xf32>
    %603 = tpu.matmul %602, %601, %cst_115 {dimension_numbers = #tpu.dot_dimension_numbers<[1], [0], [0], [1], [0, 0, 1, 1], [], []>} : vector<16x32xf32>, vector<32x256xf32>, vector<16x256xf32> -> vector<16x256xf32>
    %c0_116 = arith.constant 0 : index
    %c0_117 = arith.constant 0 : index
    %604 = vector.load %arg13[%c0_116, %c0_117] : memref<16x1xf32, #tpu.memory_space<vmem>>, vector<16x1xf32>
    %605 = vector.broadcast %604 : vector<16x1xf32> to vector<16x256xf32>
    %606 = arith.addf %603, %605 : vector<16x256xf32>
    %607 = arith.addf %606, %526 : vector<16x256xf32>
    %c0_118 = arith.constant 0 : index
    %c0_119 = arith.constant 0 : index
    %c0_120 = arith.constant 0 : index
    %608 = vector.load %arg16[%c0_118, %c0_119, %c0_120] : memref<1x16x256xf32, #tpu.memory_space<vmem>>, vector<1x16x256xf32>
    %609 = vector.shape_cast %608 : vector<1x16x256xf32> to vector<16x256xf32>
    %610 = vector.shape_cast %607 : vector<16x256xf32> to vector<1x16x256xf32>
    tpu.vector_store %arg16[%c0_118, %c0_119, %c0_120], %610 {strides = array<i32>} : memref<1x16x256xf32, #tpu.memory_space<vmem>>, vector<1x16x256xf32>,
    return
  }
  func.func @transform_0(%arg0: i32) -> (i32, i32, i32) {
    %c0_i32 = arith.constant 0 : i32
    %c0_i32_0 = arith.constant 0 : i32
    %c0_i32_1 = arith.constant 0 : i32
    return %arg0, %c0_i32, %c0_i32_0 : i32, i32, i32
  }
  func.func @transform_1(%arg0: i32) -> (i32, i32) {
    %c0_i32 = arith.constant 0 : i32
    %c0_i32_0 = arith.constant 0 : i32
    %c0_i32_1 = arith.constant 0 : i32
    return %c0_i32, %c0_i32_0 : i32, i32
  }
  func.func @transform_2(%arg0: i32) -> (i32, i32) {
    %c0_i32 = arith.constant 0 : i32
    %c0_i32_0 = arith.constant 0 : i32
    %c0_i32_1 = arith.constant 0 : i32
    return %c0_i32, %c0_i32_0 : i32, i32
  }
  func.func @transform_3(%arg0: i32) -> (i32, i32) {
    %c0_i32 = arith.constant 0 : i32
    %c0_i32_0 = arith.constant 0 : i32
    %c0_i32_1 = arith.constant 0 : i32
    return %c0_i32, %c0_i32_0 : i32, i32
  }
  func.func @transform_4(%arg0: i32) -> (i32, i32) {
    %c0_i32 = arith.constant 0 : i32
    %c0_i32_0 = arith.constant 0 : i32
    %c0_i32_1 = arith.constant 0 : i32
    return %c0_i32, %c0_i32_0 : i32, i32
  }
  func.func @transform_5(%arg0: i32) -> (i32, i32, i32) {
    %c0_i32 = arith.constant 0 : i32
    %c0_i32_0 = arith.constant 0 : i32
    %c0_i32_1 = arith.constant 0 : i32
    %c0_i32_2 = arith.constant 0 : i32
    return %c0_i32, %c0_i32_0, %c0_i32_1 : i32, i32, i32
  }
  func.func @transform_6(%arg0: i32) -> (i32, i32, i32) {
    %c0_i32 = arith.constant 0 : i32
    %c0_i32_0 = arith.constant 0 : i32
    %c0_i32_1 = arith.constant 0 : i32
    %c0_i32_2 = arith.constant 0 : i32
    return %c0_i32, %c0_i32_0, %c0_i32_1 : i32, i32, i32
  }
  func.func @transform_7(%arg0: i32) -> (i32, i32) {
    %c0_i32 = arith.constant 0 : i32
    %c0_i32_0 = arith.constant 0 : i32
    %c0_i32_1 = arith.constant 0 : i32
    return %c0_i32, %c0_i32_0 : i32, i32
  }
  func.func @transform_8(%arg0: i32) -> (i32, i32) {
    %c0_i32 = arith.constant 0 : i32
    %c0_i32_0 = arith.constant 0 : i32
    %c0_i32_1 = arith.constant 0 : i32
    return %c0_i32, %c0_i32_0 : i32, i32
  }
  func.func @transform_9(%arg0: i32) -> (i32, i32) {
    %c0_i32 = arith.constant 0 : i32
    %c0_i32_0 = arith.constant 0 : i32
    %c0_i32_1 = arith.constant 0 : i32
    return %c0_i32, %c0_i32_0 : i32, i32
  }
  func.func @transform_10(%arg0: i32) -> (i32, i32) {
    %c0_i32 = arith.constant 0 : i32
    %c0_i32_0 = arith.constant 0 : i32
    %c0_i32_1 = arith.constant 0 : i32
    return %c0_i32, %c0_i32_0 : i32, i32
  }
  func.func @transform_11(%arg0: i32) -> (i32, i32) {
    %c0_i32 = arith.constant 0 : i32
    %c0_i32_0 = arith.constant 0 : i32
    %c0_i32_1 = arith.constant 0 : i32
    return %c0_i32, %c0_i32_0 : i32, i32
  }
  func.func @transform_12(%arg0: i32) -> (i32, i32) {
    %c0_i32 = arith.constant 0 : i32
    %c0_i32_0 = arith.constant 0 : i32
    %c0_i32_1 = arith.constant 0 : i32
    return %c0_i32, %c0_i32_0 : i32, i32
  }
  func.func @transform_13(%arg0: i32) -> (i32, i32, i32) {
    %c0_i32 = arith.constant 0 : i32
    %c0_i32_0 = arith.constant 0 : i32
    %c0_i32_1 = arith.constant 0 : i32
    %c0_i32_2 = arith.constant 0 : i32
    return %c0_i32, %c0_i32_0, %c0_i32_1 : i32, i32, i32
  }
  func.func @transform_14(%arg0: i32) -> (i32, i32) {
    %c0_i32 = arith.constant 0 : i32
    %c0_i32_0 = arith.constant 0 : i32
    %c0_i32_1 = arith.constant 0 : i32
    return %c0_i32, %c0_i32_0 : i32, i32
  }
  func.func @transform_15(%arg0: i32) -> (i32, i32, i32) {
    %c0_i32 = arith.constant 0 : i32
    %c0_i32_0 = arith.constant 0 : i32
    %c0_i32_1 = arith.constant 0 : i32
    return %arg0, %c0_i32, %c0_i32_0 : i32, i32, i32
  }
}

</mosaic_0001>

<bundles_post_ra>
// kernel: dafm_block_forward.1
= control target key start
LH: loop header
LB: loop body
LE: loop exit
PB: predicated region body
PF: predicated region fallthrough
CT: control target
= control target key end

     0   :  { %s4556_s18 = smov 0   ;;  %s6761_s0 = inlined_call_operand.vmem [shape: f32[2,16,256], index: 0, kind: input, shape index: {}]   ;;  %s6762_s1 = inlined_call_operand.vmem [shape: f32[16,1], index: 1, kind: input, shape index: {}]   ;;  %s6763_s2 = inlined_call_operand.vmem [shape: f32[16,1], index: 2, kind: input, shape index: {}]   ;;  %s6764_s3 = inlined_call_operand.vmem [shape: f32[16,1], index: 3, kind: input, shape index: {}]   ;;  %s6765_s4 = inlined_call_operand.vmem [shape: f32[16,1], index: 4, kind: input, shape index: {}]   ;;  %s6766_s5 = inlined_call_operand.vmem [shape: f32[4,4,9], index: 5, kind: input, shape index: {}]   ;;  %s6767_s6 = inlined_call_operand.vmem [shape: f32[4,4,1], index: 6, kind: input, shape index: {}]   ;;  %s6768_s7 = inlined_call_operand.vmem [shape: f32[16,16], index: 7, kind: input, shape index: {}]   ;;  %s6769_s8 = inlined_call_operand.vmem [shape: f32[16,1], index: 8, kind: input, shape index: {}]   ;;  %s6770_s9 = inlined_call_operand.vmem [shape: f32[32,144], index: 9, kind: input, shape index: {}]   ;;  %s6771_s10 = inlined_call_operand.vmem [shape: f32[32,1], index: 10, kind: input, shape index: {}]   ;;  %s6772_s11 = inlined_call_operand.vmem [shape: f32[16,32], index: 11, kind: input, shape index: {}]   ;;  %s6773_s12 = inlined_call_operand.vmem [shape: f32[16,1], index: 12, kind: input, shape index: {}]   ;;  %s6774_s13 = inlined_call_operand.vmem [shape: f32[4,9,256], index: 13, kind: input, shape index: {}]   ;;  %s6775_s14 = inlined_call_operand.vmem [shape: f32[6,256], index: 14, kind: input, shape index: {}]   ;;  %s6776_s15 = inlined_call_operand.vmem [shape: f32[2,16,256], index: 15, kind: output, shape index: {}]  }
   0x1 LB: > { %s3932_s19 = sadd.s32 4294967295, %s4437_s18   ;;  %p3936_p0 = scmp.ge.s32.totalorder %s4437_s18, 1  ;;  %s4437_s18 = sphi %s4556_s18, %s25_s18  }
   0x2   : > { %p437_p1 = scmp.lt.s32.totalorder %s4437_s18, 3 }
   0x4   : > { %p438_p2 = pnand %p3936_p0, %p437_p1 }
   0x6   : > { %441 = sbr.rel (%p438_p2) target bundleno = 2360 (0x938), region = 80 }
   0xd   : > { %v500_v0 = vld [vmem:[%s6762_s1 + $0x8] sm:$0xff]  ;;  %v501_v1 = vld [vmem:[%s6763_s2] sm:$0xff]  ;;  %v602_v2 = vlaneseq  ;;  %v6792_v3 = vmov 0   ;;  %p485_p3 = scmp.lt.s32.totalorder %s3932_s19, 1  ;;  %v6790_v10 = vmov 1   ;;  %s6908_s30 = smov 112  }
   0xe   : > { %4099 = vset.pattern.permute.xlu0 %v6792_v3  ;;  %4100 = vset.pattern.permute.xlu1 %v6792_v3  ;;  %v502_v5 = vld [vmem:[%s6763_s2 + $0x8] sm:$0xff]  ;;  %v4580_v6 = vld [vmem:[%s6774_s13] sm:$0xff]  ;;  %v6783_v20 = vmov 2   ;;  %s4443_s24 = smov 113   ;;  %s6850_s25 = smov 127   ;;  %v6786_v32 = vmov 3  }
   0xf   : > { %573 = vperm.xlu0 %4099, %v500_v0   ;;  %582 = vperm.xlu1 %4100, %v501_v1   ;;  %v4572_v4 = vshrl.u32 %v602_v2, 7  ;;  %v4588_v8 = vld [vmem:[%s6774_s13 + $0x8] sm:$0xff]  ;;  %s7155_s19 = smov (!%p485_p3, %s3932_s19), 1  ;;  %v4604_v13 = vld [vmem:[%s6766_s5] sm:$0xf]  ;;  %v6794_v36 = vmov 6  }
  0x10   : > { %s6777_s20 = sshll.u32 %s7155_s19, 5  ;;  %v4650_v28 = vld [vmem:[%s6766_s5 + $0x8] sm:$0xf]  ;;  %s4447_s28 = smov 1   ;;  %v6780_v42 = vmov 8   ;;  %v4672_v43 = vld [vmem:[%s6774_s13 + $0x40] sm:$0xff] }
  0x11   : > { %v4583_v7 = vsub.s32 1, %v4572_v4  ;;  %v4599_v12 = vsub.s32 2, %v4572_v4  ;;  %s4613_s23 = scalar_lea.vmem %s6761_s0, %s6777_s20  ;;  %v4632_v19 = vsub.s32 3, %v4572_v4  ;;  %v4657_v34 = vsub.s32 5, %v4572_v4  ;;  %v4682_v47 = vld [vmem:[%s6774_s13 + $0x48] sm:$0xff]  ;;  %s6814_s22 = smov 64  }
  0x12   : > { %v4620_v15 = vld [vmem:[%s4613_s23] sm:$0xff]  ;;  %v4623_v16 = vld [vmem:[%s4613_s23 + $0x10] sm:$0xff]  ;;  %v4626_v17 = vld [vmem:[%s4613_s23 + $0x8] sm:$0xff]  ;;  %v6784_v48 = vmov 4   ;;  %v4690_v52 = vsub.s32 6, %v4572_v4  ;;  %s6816_s26 = smov 68  }
  0x13   : > { %6943 = vst [vmem:[#allocation2_spill] sm:$0xff] %v4583_v7  ;;  %587 = vperm.xlu0 %4099, %v502_v5   ;;  %v638_v9 = vrot.slane %v4580_v6, %v4583_v7  ;;  %4103 = vset.pattern.permute.xlu1 %v6790_v10  ;;  %v642_v11 = vrot.slane %v4588_v8, %v4583_v7  ;;  %v4629_v18 = vld [vmem:[%s4613_s23 + $0x18] sm:$0xff]  ;;  %s6812_s27 = smov 16   ;;  %s6778_s29 = smov 124   ;;  %vm817_vm4 = vcmask 7168   ;;  %vm673_vm5 = vcmask 1039360  }
  0x14   : > { %v685_v14 = vrot.slane %v4580_v6, %v4599_v12  ;;  %v503_v21 = vadd.f32 %v4623_v16, %v4620_v15  ;;  %v689_v22 = vrot.slane %v4588_v8, %v4599_v12  ;;  %v732_v23 = vrot.slane %v4580_v6, %v4632_v19  ;;  %s6808_s21 = smov 17   ;;  %s6810_s17 = smov 4  }
  0x15   : > { %645 = vrot.lane.b32.xlu1 %v638_v9, %s6908_s30  ;;  %v510_v24 = vadd.f32 %v4629_v18, %v4626_v17  ;;  %v736_v26 = vrot.slane %v4588_v8, %v4632_v19  ;;  %v806_v38 = vrot.slane %v4580_v6, %v4657_v34  ;;  %v810_v41 = vrot.slane %v4588_v8, %v4657_v34  ;;  %s6848_s16 = smov 111   ;;  %s6840_s20 = smov 30  }
  0x16   : > { %v504_v25 = vrot.slane %v503_v21, 4  ;;  %v1912_v46 = vrot.slane %v4672_v43, %v4583_v7  ;;  %v1916_v51 = vrot.slane %v4682_v47, %v4583_v7  ;;  %v853_v57 = vrot.slane %v4580_v6, %v4690_v52 }
  0x17   : > { %4101 = vset.pattern.permute.xlu0 %v6790_v10  ;;  %v511_v27 = vrot.slane %v510_v24, 4  ;;  %v857_v62 = vrot.slane %v4588_v8, %v4690_v52  ;;  %v1959_v1 = vrot.slane %v4672_v43, %v4599_v12  ;;  %v1963_v9 = vrot.slane %v4682_v47, %v4599_v12 }
  0x18   : > { %658 = vperm.xlu0 %4101, %v4604_v13   ;;  %v505_v29 = vadd.f32 %v504_v25, %v503_v21  ;;  %vm649_vm6 = vcmask 916480   ;;  %vm720_vm7 = vcmask 1031168   ;;  %vm1302_vm8 = vcmask 15360  }
  0x19   : > { %647 = vrot.lane.b32.xlu1 %v642_v11, %s6908_s30  ;;  %v512_v30 = vadd.f32 %v511_v27, %v510_v24  ;;  %vm696_vm9 = vcmask 924672   ;;  %vm864_vm10 = vcmask 121856   ;;  %vm6925_vm11 = vcmask 130048  }
  0x1a   : > { %v506_v31 = vrot.slane %v505_v29, 2  ;;  %vm958_vm12 = vcmask 138240   ;;  %vm1947_vm13 = vcmask 1014784   ;;  %vm6927_vm14 = vcmask 31744  }
  0x1b   : > { %v513_v33 = vrot.slane %v512_v30, 2  ;;  %vm888_vm15 = vcmask 785408  }
  0x1c   : > { %4102 = vset.pattern.permute.xlu0 %v6783_v20  ;;  %v507_v35 = vadd.f32 %v506_v31, %v505_v29 }
  0x1d   : > { %692 = vrot.lane.b32.xlu1 %v685_v14, %s4443_s24  ;;  %705 = vperm.xlu0 %4102, %v4604_v13   ;;  %v514_v37 = vadd.f32 %v513_v33, %v512_v30 }
  0x1e   : > { %v508_v39 = vrot.slane %v507_v35, 1 }
  0x1f   : > { %v515_v40 = vrot.slane %v514_v37, 1 }
  0x20   : > { %v509_v44 = vadd.f32 %v508_v39, %v507_v35 }
  0x21   : > { %694 = vrot.lane.b32.xlu1 %v689_v22, %s4443_s24  ;;  %739 = vrot.lane.b32.xlu0 %v732_v23, %s6850_s25  ;;  %v516_v45 = vadd.f32 %v515_v40, %v514_v37  ;;  %s4451_s24 = smov 15  }
  0x22   : > { %v518_v49 = vmul.f32 0.0625, %v509_v44 }
  0x23   : > { %v519_v50 = vmul.f32 0.0625, %v516_v45 }
  0x24   : > { %v4693_v53 = vsub.f32 %v4620_v15, %v518_v49  ;;  %v522_v54 = vsub.f32 %v4623_v16, %v518_v49 }
  0x25   : > { %741 = vrot.lane.b32.xlu1 %v736_v26, %s6850_s25  ;;  %1979 = vperm.xlu0 %4102, %v4650_v28   ;;  %v4697_v55 = vsub.f32 %v4626_v17, %v519_v50  ;;  %v523_v56 = vsub.f32 %v4629_v18, %v519_v50 }
  0x26   : > { %v524_v58 = vmul.f32 %v4693_v53, %v4693_v53  ;;  %v526_v59 = vmul.f32 %v522_v54, %v522_v54 }
  0x27   : > { %v525_v60 = vmul.f32 %v4697_v55, %v4697_v55  ;;  %v527_v61 = vmul.f32 %v523_v56, %v523_v56 }
  0x28   : > { %v528_v63 = vadd.f32 %v526_v59, %v524_v58 }
  0x29   : > { %1932 = vperm.xlu1 %4103, %v4650_v28   ;;  %4105 = vset.pattern.permute.xlu0 %v6786_v32  ;;  %v535_v0 = vadd.f32 %v527_v61, %v525_v60 }
  0x2a   : > { %751 = vperm.xlu0 %4105, %v4604_v13   ;;  %v529_v2 = vrot.slane %v528_v63, 4 }
  0x2b   : > { %v536_v5 = vrot.slane %v535_v0, 4 }
  0x2c   : > { %v530_v11 = vadd.f32 %v529_v2, %v528_v63  ;;  %v2006_v2 = vrot.slane %v4672_v43, %v4632_v19 }
  0x2d   : > { %4104 = vset.pattern.permute.xlu1 %v6794_v36  ;;  %v537_v14 = vadd.f32 %v536_v5, %v535_v0  ;;  %v6788_v0 = vmov 5   ;;  %v2010_v5 = vrot.slane %v4682_v47, %v4632_v19 }
  0x2e   : > { %873 = vperm.xlu1 %4104, %v4604_v13   ;;  %2025 = vperm.xlu0 %4105, %v4650_v28   ;;  %v531_v15 = vrot.slane %v530_v11, 2 }
  0x2f   : > { %v538_v16 = vrot.slane %v537_v14, 2 }
  0x30   : > { %v532_v17 = vadd.f32 %v531_v15, %v530_v11  ;;  %v2080_v15 = vrot.slane %v4672_v43, %v4657_v34 }
  0x31   : > { %v539_v18 = vadd.f32 %v538_v16, %v537_v14  ;;  %v6781_v14 = vmov 7  }
  0x32   : > { %813 = vrot.lane.b32.xlu1 %v806_v38, %s4447_s28  ;;  %4106 = vset.pattern.permute.xlu0 %v6780_v42  ;;  %v533_v21 = vrot.slane %v532_v17, 1 }
  0x33   : > { %967 = vperm.xlu0 %4106, %v4604_v13   ;;  %4111 = vset.pattern.permute.xlu1 %v6780_v42  ;;  %v540_v22 = vrot.slane %v539_v18, 1 }
  0x34   : > { %v534_v23 = vadd.f32 %v533_v21, %v532_v17  ;;  %v3942_v17 = vld [vmem:[%s6774_s13 + $0x18] ss:$0 sm:$0xff] }
  0x35   : > { %v541_v24 = vadd.f32 %v540_v22, %v539_v18  ;;  %v2084_v18 = vrot.slane %v4682_v47, %v4657_v34  ;;  %v499_v22 = vld [vmem:[%s6762_s1] sm:$0xff] }
  0x36   : > { %815 = vrot.lane.b32.xlu1 %v810_v41, %s4447_s28  ;;  %v542_v25 = vmul.f32 0.0625, %v534_v23 }
  0x37   : > { %4107 = vset.pattern.permute.xlu0 %v6784_v48  ;;  %v543_v26 = vmul.f32 0.0625, %v541_v24 }
  0x38   : > { %785 = vperm.xlu0 %4107, %v4604_v13   ;;  %v544_v27 = vadd.f32 1e-06, %v542_v25 }
  0x39   : > { %v545_v29 = vadd.f32 1e-06, %v543_v26 }
  0x3a   : > { %1919 = vrot.lane.b32.xlu1 %v1912_v46, %s6814_s22  ;;  %4381 = vrsqrt.f32 %v544_v27  ;;  %vm548_vm0 = vcmp.eq.f32.partialorder %v544_v27, inf  ;;  %v551_v37 = vand.u32 2147483648, %v544_v27  ;;  %vm550_vm2 = vcmp.eq.f32.partialorder %v544_v27, 0.0 }
  0x3b   : > { %4383 = vrsqrt.f32 %v545_v29  ;;  %vm555_vm1 = vcmp.eq.f32.partialorder %v545_v29, inf  ;;  %v558_v39 = vand.u32 2147483648, %v545_v29  ;;  %vm557_vm3 = vcmp.eq.f32.partialorder %v545_v29, 0.0 }
  0x3e   : > { %1921 = vrot.lane.b32.xlu1 %v1916_v51, %s6814_s22 }
  0x42   : > { %860 = vrot.lane.b32.xlu1 %v853_v57, %s4451_s24 }
  0x44   : > { %v4382_v30 = vpop.eup %4381 }
  0x45   : > { %v4384_v31 = vpop.eup %4383  ;;  %v547_v33 = vmul.f32 %v4382_v30, %v544_v27 }
  0x46   : > { %862 = vrot.lane.b32.xlu1 %v857_v62, %s4451_s24  ;;  %v554_v35 = vmul.f32 %v4384_v31, %v545_v29  ;;  %v4738_v62 = vsub.s32 7, %v4572_v4  ;;  %s6864_s24 = smov 126  }
  0x47   : > { %v549_v38 = vsel %vm548_vm0, %v544_v27, %v547_v33  ;;  %vm1209_vm0 = vcmask 261120  }
  0x48   : > { %v556_v40 = vsel %vm555_vm1, %v545_v29, %v554_v35  ;;  %v552_v41 = vsel %vm550_vm2, %v551_v37, %v549_v38  ;;  %6946 = vst [vmem:[#allocation5_spill] sm:$0xff] %v4738_v62  ;;  %v900_v63 = vrot.slane %v4580_v6, %v4738_v62  ;;  %v2157_v24 = vrot.slane %v4672_v43, %v4738_v62 }
  0x49   : > { %v559_v44 = vsel %vm557_vm3, %v558_v39, %v556_v40  ;;  %4385 = vrcp.f32 %v552_v41  ;;  %vm1923_vm1 = vcmask 523264   ;;  %vm6926_vm2 = vcmask 556032  }
  0x4a   : > { %1966 = vrot.lane.b32.xlu1 %v1959_v1, %s6816_s26  ;;  %4387 = vrcp.f32 %v559_v44  ;;  %v904_v1 = vrot.slane %v4588_v8, %v4738_v62  ;;  %vm1232_vm3 = vcmask 801792  }
  0x4e   : > { %1968 = vrot.lane.b32.xlu1 %v1963_v9, %s6816_s26  ;;  %v3941_v9 = vld [vmem:[%s6774_s13 + $0x10] ss:$0 sm:$0xff] }
  0x53   : > { %v4715_v45 = vpop.eup %4385 }
  0x54   : > { %v4717_v46 = vpop.eup %4387  ;;  %v564_v49 = vmul.f32 %v4715_v45, %v522_v54 }
  0x55   : > { %v565_v50 = vmul.f32 %v4717_v46, %v523_v56  ;;  %v563_v36 = vmul.f32 %v4717_v46, %v4697_v55 }
  0x8e   : > { %v574_v51 = vpop.permute.xlu0 %573  ;;  %v4760_v11 = vpop.permute.xlu1 %582 }
  0x8f   : > { %v578_v57 = vmul.f32 %v574_v51, %v564_v49  ;;  %v579_v58 = vmul.f32 %v574_v51, %v565_v50 }
  0x92   : > { %v588_v59 = vpop.permute.xlu0 %587  ;;  %v4767_v16 = vpop.permute.xlu1 %645 }
  0x93   : > { %v4721_v60 = vadd.f32 %v588_v59, %v578_v57  ;;  %v4723_v61 = vadd.f32 %v588_v59, %v579_v58  ;;  %6947 = vst [vmem:[#allocation6_spill] sm:$0xff] %v4767_v16 }
  0x95   : > { %6944 = vst [vmem:[#allocation3_spill] sm:$0xff] %v4721_v60  ;;  %6945 = vst [vmem:[#allocation4_spill] sm:$0xff] %v4723_v61  ;;  %1717 = vrot.lane.b32.xlu1 %v4723_v61, %s6850_s25  ;;  %1715 = vrot.lane.b32.xlu0 %v4721_v60, %s6850_s25  ;;  %v2357_v54 = vrot.slane %v4723_v61, 4  ;;  %v2356_v56 = vrot.slane %v4721_v60, 4 }
  0x96   : > { %v4777_v21 = vpop.permute.xlu1 %647 }
  0x97   : > { %6948 = vst [vmem:[#allocation7_spill] sm:$0xff] %v4777_v21  ;;  %v4802_v31 = vpop.permute.xlu0 %658 }
  0x99   : > { %1727 = vrot.lane.b32.xlu1 %v4721_v60, %s4447_s28  ;;  %1725 = vrot.lane.b32.xlu0 %v4723_v61, %s4447_s28 }
  0x9a   : > { %v4785_v23 = vpop.permute.xlu1 %692 }
  0x9b   : > { %6949 = vst [vmem:[#allocation8_spill] sm:$0xff] %v4785_v23 }
  0x9c   : > { %v4806_v35 = vpop.permute.xlu0 %705 }
  0x9d   : > { %2368 = vrot.lane.b32.xlu0 %v2357_v54, %s4447_s28  ;;  %2358 = vrot.lane.b32.xlu1 %v2356_v56, %s6850_s25 }
  0x9e   : > { %v4791_v25 = vpop.permute.xlu1 %694 }
  0x9f   : > { %6950 = vst [vmem:[#allocation9_spill] sm:$0xff] %v4791_v25 }
  0xa0   : > { %v4810_v38 = vpop.permute.xlu0 %739 }
  0xa1   : > { %2059 = vperm.xlu0 %4107, %v4650_v28   ;;  %2360 = vrot.lane.b32.xlu1 %v2357_v54, %s6850_s25  ;;  %6956 = vst [vmem:[#allocation15_spill] sm:$0xff] %v4810_v38 }
  0xa2   : > { %v4794_v26 = vpop.permute.xlu1 %741 }
  0xa3   : > { %6951 = vst [vmem:[#allocation10_spill] sm:$0xff] %v4794_v26 }
  0xa4   : > { %v4814_v40 = vpop.permute.xlu0 %1979 }
  0xa5   : > { %4108 = vset.pattern.permute.xlu0 %v6788_v0  ;;  %907 = vrot.lane.b32.xlu1 %v900_v63, %s6812_s27  ;;  %6957 = vst [vmem:[#allocation16_spill] sm:$0xff] %v4814_v40  ;;  %v999_v0 = vld [vmem:[%s6775_s14] ss:$8 sm:$0x3] }
  0xa6   : > { %826 = vperm.xlu0 %4108, %v4604_v13  }
  0xa8   : > { %v4796_v27 = vpop.permute.xlu1 %1932 }
  0xa9   : > { %909 = vrot.lane.b32.xlu1 %v904_v1, %s6812_s27  ;;  %6952 = vst [vmem:[#allocation11_spill] sm:$0xff] %v4796_v27  ;;  %v4818_v44 = vpop.permute.xlu0 %751  ;;  %s6846_s27 = smov 96  }
  0xaa   : > { %2013 = vrot.lane.b32.xlu0 %v2006_v2, %s6778_s29 }
  0xad   : > { %2015 = vrot.lane.b32.xlu1 %v2010_v5, %s6778_s29  ;;  %v4798_v29 = vpop.permute.xlu1 %873  ;;  %v4822_v50 = vpop.permute.xlu0 %2025  ;;  %s6989_s29 = smov 124  }
  0xae   : > { %2099 = vperm.xlu0 %4108, %v4650_v28   ;;  %6960 = vst [vmem:[#allocation19_spill] sm:$0xff] %v4822_v50 }
  0xb1   : > { %954 = vrot.lane.b32.xlu1 %v3941_v9, %s6808_s21  ;;  %v4800_v30 = vpop.permute.xlu1 %813 }
  0xb2   : > { %4109 = vset.pattern.permute.xlu0 %v6781_v14  ;;  %6953 = vst [vmem:[#allocation12_spill] sm:$0xff] %v4800_v30  ;;  %v4826_v57 = vpop.permute.xlu0 %967 }
  0xb3   : > { %920 = vperm.xlu0 %4109, %v4604_v13  }
  0xb5   : > { %2370 = vrot.lane.b32.xlu1 %v2356_v56, %s4447_s28  ;;  %v4804_v33 = vpop.permute.xlu1 %815 }
  0xb6   : > { %6954 = vst [vmem:[#allocation13_spill] sm:$0xff] %v4804_v33 }
  0xb7   : > { %2087 = vrot.lane.b32.xlu0 %v2080_v15, %s6810_s17  ;;  %v4830_v59 = vpop.permute.xlu0 %785 }
  0xb9   : > { %956 = vrot.lane.b32.xlu1 %v3942_v17, %s6808_s21  ;;  %v4808_v37 = vpop.permute.xlu1 %1919  ;;  %s6842_s21 = smov 32  }
  0xba   : > { %6955 = vst [vmem:[#allocation14_spill] sm:$0xff] %v4808_v37 }
  0xbb   : > { %2176 = vperm.xlu0 %4109, %v4650_v28  }
  0xbd   : > { %2089 = vrot.lane.b32.xlu1 %v2084_v18, %s6810_s17  ;;  %v4812_v39 = vpop.permute.xlu1 %1921  ;;  %s6844_s17 = smov 94  }
  0xbf   : > { %4110 = vset.pattern.permute.xlu0 %v6792_v3 }
  0xc0   : > { %568 = vperm.xlu0 %4110, %v499_v22  }
  0xc1   : > { %2221 = vperm.xlu1 %4111, %v4650_v28   ;;  %v4816_v41 = vpop.permute.xlu1 %860 }
  0xc2   : > { %6958 = vst [vmem:[#allocation17_spill] sm:$0xff] %v4816_v41 }
  0xc5   : > { %2164 = vrot.lane.b32.xlu1 %v2157_v24, %s6814_s22  ;;  %v4820_v49 = vpop.permute.xlu1 %862 }
  0xc6   : > { %4112 = vset.pattern.permute.xlu1 %v6792_v3  ;;  %6959 = vst [vmem:[#allocation18_spill] sm:$0xff] %v4820_v49  ;;  %v1025_v3 = vsub.f32 1.0, %v999_v0 }
  0xc8   : > { %v4868_v50 = vrot.slane %v1025_v3, %v4583_v7 }
  0xc9   : > { %v4824_v51 = vpop.permute.xlu1 %1966 }
  0xca   : > { %6961 = vst [vmem:[#allocation20_spill] sm:$0xff] %v4824_v51 }
  0xcd   : > { %v4828_v58 = vpop.permute.xlu1 %1968 }
  0xce   : > { %6962 = vst [vmem:[#allocation21_spill] sm:$0xff] %v4828_v58 }
 0x107   : > { %v1718_v54 = vpop.permute.xlu1 %1717  ;;  %v1716_v56 = vpop.permute.xlu0 %1715 }
 0x108   : > { %v1720_v58 = vsel %vm673_vm5, %v1718_v54, %v1716_v56 }
 0x10b   : > { %v1728_v63 = vpop.permute.xlu1 %1727  ;;  %v1726_v1 = vpop.permute.xlu0 %1725 }
 0x10c   : > { %v1730_v55 = vsel %vm817_vm4, %v1728_v63, %v1726_v1 }
 0x10f   : > { %v2359_v2 = vpop.permute.xlu1 %2358  ;;  %v2369_v5 = vpop.permute.xlu0 %2368 }
 0x113   : > { %v2361_v9 = vpop.permute.xlu1 %2360 }
 0x117   : > { %v4836_v18 = vpop.permute.xlu1 %907 }
 0x118   : > { %6964 = vst [vmem:[#allocation23_spill] sm:$0xff] %v4836_v18 }
 0x11b   : > { %v4840_v24 = vpop.permute.xlu1 %909 }
 0x11c   : > { %6966 = vst [vmem:[#allocation25_spill] sm:$0xff] %v4840_v24 }
 0x11f   : > { %v4844_v14 = vpop.permute.xlu1 %2015 }
 0x120   : > { %v4832_v15 = vpop.permute.xlu0 %2059  ;;  %6968 = vst [vmem:[#allocation27_spill] sm:$0xff] %v4844_v14  ;;  %v1729_v14 = vsel %vm817_vm4, %v1726_v1, %v1728_v63  ;;  %v2363_v63 = vsel %vm673_vm5, %v2361_v9, %v2359_v2 }
 0x121   : > { %6963 = vst [vmem:[#allocation22_spill] sm:$0xff] %v4832_v15  ;;  %v4862_v15 = vsub.s32 0, %v4572_v4 }
 0x123   : > { %v4850_v32 = vpop.permute.xlu1 %954  ;;  %6972 = vst [vmem:[#allocation31_spill] sm:$0xff] %v4862_v15 }
 0x124   : > { %6970 = vst [vmem:[#allocation29_spill] sm:$0xff] %v4850_v32 }
 0x125   : > { %v4834_v17 = vpop.permute.xlu0 %826 }
 0x129   : > { %v4838_v22 = vpop.permute.xlu0 %2013 }
 0x12a   : > { %6965 = vst [vmem:[#allocation24_spill] sm:$0xff] %v4838_v22  ;;  %v4865_v22 = vrot.slane %v1025_v3, %v4862_v15  ;;  %v1719_v3 = vsel %vm673_vm5, %v1716_v56, %v1718_v54 }
 0x12d   : > { %v4842_v42 = vpop.permute.xlu0 %2099 }
 0x12e   : > { %6967 = vst [vmem:[#allocation26_spill] sm:$0xff] %v4842_v42  ;;  %v561_v42 = vmul.f32 %v4715_v45, %v4693_v53  ;;  %v4873_v53 = vrot.slane %v999_v0, %v4862_v15  ;;  %v4876_v45 = vrot.slane %v999_v0, %v4583_v7  ;;  %v2362_v0 = vsel %vm673_vm5, %v2359_v2, %v2361_v9 }
 0x132   : > { %v4846_v20 = vpop.permute.xlu0 %920 }
 0x136   : > { %v4848_v48 = vpop.permute.xlu0 %2087 }
 0x137   : > { %6969 = vst [vmem:[#allocation28_spill] sm:$0xff] %v4848_v48  ;;  %v2371_v48 = vpop.permute.xlu1 %2370 }
 0x138   : > { %v2372_v27 = vsel %vm817_vm4, %v2369_v5, %v2371_v48  ;;  %v2373_v51 = vsel %vm817_vm4, %v2371_v48, %v2369_v5  ;;  %v1723_v5 = vmul.f32 %v1719_v3, %v4873_v53 }
 0x139   : > { %v2376_v48 = vmul.f32 %v2372_v27, %v4865_v22  ;;  %v2377_v1 = vmul.f32 %v2373_v51, %v4868_v50 }
 0x13a   : > { %v4855_v10 = vpop.permute.xlu0 %2176 }
 0x13b   : > { %6971 = vst [vmem:[#allocation30_spill] sm:$0xff] %v4855_v10 }
 0x13f   : > { %v569_v10 = vpop.permute.xlu0 %568 }
 0x140   : > { %v576_v46 = vmul.f32 %v569_v10, %v561_v42  ;;  %v577_v40 = vmul.f32 %v569_v10, %v563_v36  ;;  %v1733_v10 = vmul.f32 %v1729_v14, %v4865_v22  ;;  %v1734_v36 = vmul.f32 %v1730_v55, %v4868_v50 }
 0x141   : > { %v2366_v14 = vmul.f32 %v2362_v0, %v4873_v53 }
 0x142   : > { %v4883_v37 = vadd.f32 %v4760_v11, %v576_v46  ;;  %v4886_v42 = vadd.f32 %v4760_v11, %v577_v40  ;;  %v1724_v11 = vmul.f32 %v1720_v58, %v4876_v45  ;;  %v2367_v40 = vmul.f32 %v2363_v63, %v4876_v45 }
 0x143   : > { %v2378_v2 = vadd.f32 %v2376_v48, %v2366_v14  ;;  %v1735_v51 = vadd.f32 %v1733_v10, %v1723_v5  ;;  %v3968_v48 = vld [vmem:[%s6774_s13 + $0x50] ss:$0 sm:$0xff]  ;;  %v3947_v14 = vld [vmem:[%s6774_s13 + $0x28] sm:$0xff] }
 0x144   : > { %6973 = vst [vmem:[#allocation32_spill] sm:$0xff] %v4883_v37  ;;  %6974 = vst [vmem:[#allocation33_spill] sm:$0xff] %v4886_v42  ;;  %v1014_v54 = vrot.slane %v4886_v42, 4  ;;  %v1013_v56 = vrot.slane %v4883_v37, 4  ;;  %v2379_v27 = vadd.f32 %v2377_v1, %v2367_v40  ;;  %v1736_v9 = vadd.f32 %v1734_v36, %v1724_v11  ;;  %v3946_v1 = vld [vmem:[%s6774_s13 + $0x20] sm:$0xff] }
 0x145   : > { %v2382_v55 = vrot.slane %v2378_v2, 4  ;;  %v4908_v3 = vmax.f32 %v4721_v60, %v1735_v51  ;;  %v1175_v5 = vrot.slane %v3946_v1, %v4583_v7  ;;  %v3969_v11 = vld [vmem:[%s6774_s13 + $0x58] ss:$0 sm:$0xff]  ;;  %v1221_v40 = vrot.slane %v3946_v1, %v4599_v12 }
 0x146   : > { %1017 = vrot.lane.b32.xlu1 %v1014_v54, %s6850_s25  ;;  %1015 = vrot.lane.b32.xlu0 %v1013_v56, %s6850_s25  ;;  %v2383_v46 = vrot.slane %v2379_v27, 4  ;;  %v4905_v58 = vmax.f32 %v4723_v61, %v1736_v9  ;;  %v1132_v2 = vrot.slane %v3947_v14, %v4862_v15  ;;  %v1268_v27 = vrot.slane %v3946_v1, %v4632_v19 }
 0x147   : > { %v4918_v36 = vmax.f32 %v4721_v60, %v2382_v55  ;;  %v1179_v9 = vrot.slane %v3947_v14, %v4583_v7  ;;  %v1225_v51 = vrot.slane %v3947_v14, %v4599_v12  ;;  %v1342_v55 = vrot.slane %v3947_v14, %v4657_v34 }
 0x148   : > { %v4915_v10 = vmax.f32 %v4723_v61, %v2383_v46  ;;  %v1272_v46 = vrot.slane %v3947_v14, %v4632_v19 }
 0x149   : > { %v2390_v63 = vrot.slane %v4918_v36, 4 }
 0x14a   : > { %1039 = vrot.lane.b32.xlu1 %v1013_v56, %s4447_s28  ;;  %1037 = vrot.lane.b32.xlu0 %v1014_v54, %s4447_s28  ;;  %s6838_s28 = smov 2   ;;  %v2391_v0 = vrot.slane %v4915_v10, 4  ;;  %v1128_v54 = vrot.slane %v3946_v1, %v4862_v15  ;;  %v2161_v56 = vrot.slane %v4682_v47, %v4738_v62 }
 0x14e   : > { %1756 = vrot.lane.b32.xlu1 %v4905_v58, %s6864_s24  ;;  %1754 = vrot.lane.b32.xlu0 %v4908_v3, %s6864_s24 }
 0x152   : > { %1778 = vrot.lane.b32.xlu1 %v4908_v3, %s6838_s28  ;;  %1776 = vrot.lane.b32.xlu0 %v4905_v58, %s6838_s28 }
 0x156   : > { %2394 = vrot.lane.b32.xlu1 %v2391_v0, %s6864_s24  ;;  %2392 = vrot.lane.b32.xlu0 %v2390_v63, %s6864_s24 }
 0x15a   : > { %2209 = vrot.lane.b32.xlu1 %v3968_v48, %s6816_s26  ;;  %2402 = vrot.lane.b32.xlu0 %v2391_v0, %s6838_s28  ;;  %v1338_v0 = vrot.slane %v3946_v1, %v4657_v34  ;;  %v6975_v48 = vmov 6  }
 0x15e   : > { %1135 = vrot.lane.b32.xlu1 %v1128_v54, %s6844_s17  ;;  %2166 = vrot.lane.b32.xlu0 %v2161_v56, %s6814_s22  ;;  %s6836_s22 = smov 98   ;;  %v605_v54 = vrot.slane %v4580_v6, %v4862_v15  ;;  %v1387_v56 = vrot.slane %v3947_v14, %v4690_v52 }
 0x162   : > { %1182 = vrot.lane.b32.xlu1 %v1175_v5, %s6846_s27  ;;  %2211 = vrot.lane.b32.xlu0 %v3969_v11, %s6816_s26  ;;  %v1383_v5 = vrot.slane %v3946_v1, %v4690_v52  ;;  %v1428_v11 = vrot.slane %v3946_v1, %v4738_v62  ;;  %s6982_s26 = smov 16  }
 0x166   : > { %1228 = vrot.lane.b32.xlu1 %v1221_v40, %s6836_s22  ;;  %1137 = vrot.lane.b32.xlu0 %v1132_v2, %s6844_s17  ;;  %v4984_v40 = vsel %vm649_vm6, %v4767_v16, %v4777_v21  ;;  %v656_v2 = vmul.f32 %v4777_v21, %v4886_v42  ;;  %s6999_s17 = smov 96  }
 0x167   : > { %6976 = vst [vmem:[#allocation34_spill] sm:$0xff] %v4984_v40 }
 0x16a   : > { %1275 = vrot.lane.b32.xlu1 %v1268_v27, %s6864_s24  ;;  %1184 = vrot.lane.b32.xlu0 %v1179_v9, %s6846_s27  ;;  %v655_v27 = vmul.f32 %v4984_v40, %v4883_v37  ;;  %v4996_v9 = vpop.permute.xlu1 %956  ;;  %s6862_s27 = smov 110  }
 0x16b   : > { %6977 = vst [vmem:[#allocation35_spill] sm:$0xff] %v4996_v9 }
 0x16c   : > { %v662_v1 = vmul.f32 %v4802_v31, %v655_v27 }
 0x16e   : > { %626 = vperm.xlu1 %4112, %v4604_v13   ;;  %1230 = vrot.lane.b32.xlu0 %v1225_v51, %s6836_s22  ;;  %v609_v13 = vrot.slane %v4588_v8, %v4862_v15  ;;  %v4998_v51 = vpop.permute.xlu1 %2089  ;;  %s4468_s22 = smov 60  }
 0x172   : > { %1347 = vrot.lane.b32.xlu1 %v1342_v55, %s6838_s28  ;;  %1277 = vrot.lane.b32.xlu0 %v1272_v46, %s6864_s24  ;;  %v5000_v55 = vpop.permute.xlu1 %2221 }
 0x173   : > { %4113 = vset.pattern.permute.xlu1 %v6975_v48  ;;  %6978 = vst [vmem:[#allocation36_spill] sm:$0xff] %v5000_v55 }
 0x176   : > { %2404 = vrot.lane.b32.xlu1 %v2390_v63, %s6838_s28  ;;  %1345 = vrot.lane.b32.xlu0 %v1338_v0, %s6838_s28  ;;  %v1432_v63 = vrot.slane %v3947_v14, %v4738_v62  ;;  %v663_v14 = vmul.f32 %v4802_v31, %v656_v2  ;;  %v5002_v46 = vpop.permute.xlu1 %2164  ;;  %s7005_s28 = smov 94  }
 0x177   : > { %6979 = vst [vmem:[#allocation37_spill] sm:$0xff] %v5002_v46 }
 0x17a   : > { %614 = vrot.lane.b32.xlu1 %v609_v13, %s6848_s16  ;;  %612 = vrot.lane.b32.xlu0 %v605_v54, %s6848_s16 }
 0x17e   : > { %1392 = vrot.lane.b32.xlu1 %v1387_v56, %s6840_s20  ;;  %1390 = vrot.lane.b32.xlu0 %v1383_v5, %s6840_s20  ;;  %s4467_s20 = smov 34  }
 0x182   : > { %1437 = vrot.lane.b32.xlu1 %v1432_v63, %s6842_s21  ;;  %1435 = vrot.lane.b32.xlu0 %v1428_v11, %s6842_s21  ;;  %v3960_v11 = vld [vmem:[%s6775_s14 + $0x1] ss:$8 sm:$0x3]  ;;  %s6990_s21 = smov 4  }
 0x186   : > { %671 = vrot.lane.b32.xlu1 %v663_v14, %s6850_s25  ;;  %669 = vrot.lane.b32.xlu0 %v662_v1, %s6850_s25  ;;  %v1764_v14 = vsub.f32 1.0, %v3960_v11 }
 0x188   : > { %v1769_v55 = vrot.slane %v1764_v14, %v4862_v15 }
 0x1b8   : > { %v1018_v0 = vpop.permute.xlu1 %1017  ;;  %v1016_v13 = vpop.permute.xlu0 %1015 }
 0x1b9   : > { %v1019_v54 = vsel %vm673_vm5, %v1016_v13, %v1018_v0  ;;  %v1020_v56 = vsel %vm673_vm5, %v1018_v0, %v1016_v13 }
 0x1ba   : > { %v1023_v1 = vmul.f32 %v1019_v54, %v4873_v53  ;;  %v1024_v21 = vmul.f32 %v1020_v56, %v4876_v45  ;;  %v1745_v53 = vrot.slane %v3960_v11, %v4862_v15  ;;  %v1749_v45 = vrot.slane %v3960_v11, %v4583_v7 }
 0x1bc   : > { %v1040_v5 = vpop.permute.xlu1 %1039  ;;  %v1038_v63 = vpop.permute.xlu0 %1037 }
 0x1bd   : > { %v1041_v2 = vsel %vm817_vm4, %v1038_v63, %v1040_v5  ;;  %v1042_v27 = vsel %vm817_vm4, %v1040_v5, %v1038_v63  ;;  %v1773_v5 = vrot.slane %v1764_v14, %v4583_v7 }
 0x1be   : > { %v1045_v40 = vmul.f32 %v1041_v2, %v4865_v22  ;;  %v1046_v61 = vmul.f32 %v1042_v27, %v4868_v50 }
 0x1c0   : > { %v1047_v0 = vadd.f32 %v1045_v40, %v1023_v1  ;;  %v1048_v13 = vadd.f32 %v1046_v61, %v1024_v21  ;;  %v1757_v60 = vpop.permute.xlu1 %1756  ;;  %v1755_v62 = vpop.permute.xlu0 %1754 }
 0x1c1   : > { %v1758_v21 = vsel %vm720_vm7, %v1755_v62, %v1757_v60  ;;  %v1759_v40 = vsel %vm720_vm7, %v1757_v60, %v1755_v62 }
 0x1c2   : > { %v1051_v48 = vrot.slane %v1047_v0, 4  ;;  %v1052_v46 = vrot.slane %v1048_v13, 4  ;;  %v1762_v1 = vmul.f32 %v1758_v21, %v1745_v53 }
 0x1c4   : > { %v1779_v54 = vpop.permute.xlu1 %1778  ;;  %v1777_v22 = vpop.permute.xlu0 %1776  ;;  %v5020_v50 = vmax.f32 %v4883_v37, %v1051_v48  ;;  %v5023_v61 = vmax.f32 %v4886_v42, %v1052_v46  ;;  %v1763_v48 = vmul.f32 %v1759_v40, %v1749_v45 }
 0x1c5   : > { %v1780_v56 = vsel %vm1302_vm8, %v1777_v22, %v1779_v54  ;;  %v1781_v63 = vsel %vm1302_vm8, %v1779_v54, %v1777_v22 }
 0x1c6   : > { %6980 = vst [vmem:[#allocation38_spill] sm:$0xff] %v5020_v50  ;;  %6981 = vst [vmem:[#allocation39_spill] sm:$0xff] %v5023_v61  ;;  %v1784_v2 = vmul.f32 %v1780_v56, %v1769_v55  ;;  %v1785_v27 = vmul.f32 %v1781_v63, %v1773_v5  ;;  %v1072_v11 = vrot.slane %v5020_v50, 4  ;;  %v1073_v14 = vrot.slane %v5023_v61, 4 }
 0x1c8   : > { %1074 = vrot.lane.b32.xlu1 %v1072_v11, %s6908_s30  ;;  %1076 = vrot.lane.b32.xlu0 %v1073_v14, %s6908_s30  ;;  %v1787_v46 = vadd.f32 %v1785_v27, %v1763_v48  ;;  %v1786_v0 = vadd.f32 %v1784_v2, %v1762_v1  ;;  %v2395_v13 = vpop.permute.xlu1 %2394  ;;  %v2393_v56 = vpop.permute.xlu0 %2392 }
 0x1c9   : > { %v2396_v2 = vsel %vm720_vm7, %v2393_v56, %v2395_v13  ;;  %v2397_v27 = vsel %vm720_vm7, %v2395_v13, %v2393_v56 }
 0x1ca   : > { %v5036_v60 = vmax.f32 %v4905_v58, %v1787_v46  ;;  %v5039_v62 = vmax.f32 %v4908_v3, %v1786_v0  ;;  %v2400_v46 = vmul.f32 %v2396_v2, %v1745_v53  ;;  %v2401_v0 = vmul.f32 %v2397_v27, %v1749_v45  ;;  %v3950_v45 = vld [vmem:[%s6774_s13 + $0x30] ss:$0 sm:$0xff] }
 0x1cb   : > { %v5117_v2 = vsub.s32 4, %v4572_v4 }
 0x1cc   : > { %1096 = vrot.lane.b32.xlu1 %v1073_v14, %s6982_s26  ;;  %1098 = vrot.lane.b32.xlu0 %v1072_v11, %s6982_s26  ;;  %v5045_v54 = vpop.permute.xlu1 %2209  ;;  %v2403_v11 = vpop.permute.xlu0 %2402 }
 0x1d0   : > { %1794 = vrot.lane.b32.xlu1 %v5036_v60, %s6908_s30  ;;  %1792 = vrot.lane.b32.xlu0 %v5039_v62, %s6908_s30  ;;  %v5051_v22 = vpop.permute.xlu1 %1135 }
 0x1d1   : > { %6983 = vst [vmem:[#allocation40_spill] sm:$0xff] %v5051_v22 }
 0x1d4   : > { %1804 = vrot.lane.b32.xlu1 %v5039_v62, %s6982_s26  ;;  %1802 = vrot.lane.b32.xlu0 %v5036_v60, %s6982_s26  ;;  %v5053_v58 = vpop.permute.xlu1 %1182 }
 0x1d5   : > { %6984 = vst [vmem:[#allocation41_spill] sm:$0xff] %v5053_v58 }
 0x1d8   : > { %v5055_v3 = vpop.permute.xlu1 %1228 }
 0x1d9   : > { %6985 = vst [vmem:[#allocation42_spill] sm:$0xff] %v5055_v3 }
 0x1dc   : > { %v5057_v21 = vpop.permute.xlu1 %1275 }
 0x1dd   : > { %6986 = vst [vmem:[#allocation43_spill] sm:$0xff] %v5057_v21 }
 0x1ed   : > { %v5059_v40 = vpop.permute.xlu1 %626 }
 0x1ee   : > { %6987 = vst [vmem:[#allocation44_spill] sm:$0xff] %v5059_v40  ;;  %v5067_v40 = vpop.permute.xlu0 %2166 }
 0x1f1   : > { %v5061_v63 = vpop.permute.xlu1 %1347 }
 0x1f2   : > { %6988 = vst [vmem:[#allocation45_spill] sm:$0xff] %v5061_v63  ;;  %v5077_v53 = vpop.permute.xlu0 %2211 }
 0x1f5   : > { %v2405_v14 = vpop.permute.xlu1 %2404 }
 0x1f6   : > { %v2406_v1 = vsel %vm1302_vm8, %v2403_v11, %v2405_v14  ;;  %v2407_v48 = vsel %vm1302_vm8, %v2405_v14, %v2403_v11 }
 0x1f7   : > { %v2410_v58 = vmul.f32 %v2406_v1, %v1769_v55  ;;  %v2411_v3 = vmul.f32 %v2407_v48, %v1773_v5  ;;  %v3951_v55 = vld [vmem:[%s6774_s13 + $0x38] ss:$0 sm:$0xff]  ;;  %v5092_v5 = vpop.permute.xlu0 %1137  ;;  %v749_v1 = vmul.f32 %v4794_v26, %v4886_v42 }
 0x1f9   : > { %v2412_v21 = vadd.f32 %v2410_v58, %v2400_v46  ;;  %v2413_v22 = vadd.f32 %v2411_v3, %v2401_v0  ;;  %v701_v3 = vmul.f32 %v4785_v23, %v4886_v42  ;;  %v756_v0 = vmul.f32 %v4818_v44, %v749_v1 }
 0x1fb   : > { %v2416_v50 = vrot.slane %v2412_v21, 4  ;;  %v2417_v63 = vrot.slane %v2413_v22, 4  ;;  %v703_v21 = vmul.f32 %v4791_v25, %v4886_v42  ;;  %v708_v27 = vmul.f32 %v4806_v35, %v701_v3 }
 0x1fd   : > { %v5070_v61 = vmax.f32 %v4915_v10, %v2417_v63  ;;  %v5073_v13 = vmax.f32 %v4918_v36, %v2416_v50  ;;  %v654_v10 = vmul.f32 %v4767_v16, %v4886_v42  ;;  %v5090_v36 = vsel %vm696_vm9, %v4785_v23, %v4791_v25  ;;  %v5107_v63 = vpop.permute.xlu0 %1184 }
 0x1fe   : > { %6991 = vst [vmem:[#allocation46_spill] sm:$0xff] %v5090_v36  ;;  %v702_v22 = vmul.f32 %v5090_v36, %v4883_v37  ;;  %v710_v14 = vmul.f32 %v4806_v35, %v703_v21  ;;  %vm1256_vm9 = vcmask 244736  }
 0x1ff   : > { %v2438_v56 = vrot.slane %v5070_v61, 4  ;;  %v2437_v11 = vrot.slane %v5073_v13, 4  ;;  %v661_v50 = vmul.f32 %v4802_v31, %v654_v10  ;;  %v5114_v31 = vsel %vm673_vm5, %v4810_v38, %v4794_v26 }
 0x200   : > { %v709_v58 = vmul.f32 %v4806_v35, %v702_v22  ;;  %6992 = vst [vmem:[#allocation47_spill] sm:$0xff] %v5114_v31  ;;  %v748_v48 = vmul.f32 %v5114_v31, %v4883_v37  ;;  %v1883_v35 = vrot.slane %v4682_v47, %v4862_v15  ;;  %v965_v31 = vmul.f32 %v4996_v9, %v4883_v37 }
 0x201   : > { %2441 = vrot.lane.b32.xlu1 %v2438_v56, %s6989_s29  ;;  %2439 = vrot.lane.b32.xlu0 %v2437_v11, %s6989_s29  ;;  %v5127_v46 = vpop.permute.xlu0 %1230 }
 0x202   : > { %v755_v4 = vmul.f32 %v4818_v44, %v748_v48 }
 0x205   : > { %1482 = vrot.lane.b32.xlu1 %v3951_v55, %s4467_s20  ;;  %2461 = vrot.lane.b32.xlu0 %v2438_v56, %s6990_s21  ;;  %v5133_v56 = vrot.slane %v4580_v6, %v5117_v2  ;;  %v1879_v55 = vrot.slane %v4672_v43, %v4862_v15  ;;  %v5147_v6 = vrot.slane %v4588_v8, %v5117_v2 }
 0x206   : > { %v5162_v8 = vsel %vm817_vm4, %v4800_v30, %v4804_v33  ;;  %vm982_vm4 = vcmask 769024  }
 0x207   : > { %6993 = vst [vmem:[#allocation48_spill] sm:$0xff] %v5133_v56  ;;  %v782_v10 = vmul.f32 %v5133_v56, %v4883_v37  ;;  %6994 = vst [vmem:[#allocation49_spill] sm:$0xff] %v5147_v6 }
 0x208   : > { %6995 = vst [vmem:[#allocation50_spill] sm:$0xff] %v5162_v8 }
 0x209   : > { %667 = vrot.lane.b32.xlu1 %v661_v50, %s6850_s25  ;;  %1480 = vrot.lane.b32.xlu0 %v3950_v45, %s4467_s20  ;;  %v747_v45 = vmul.f32 %v4810_v38, %v4886_v42  ;;  %v5149_v50 = vpop.permute.xlu0 %1277  ;;  %v788_v47 = vmul.f32 %v4830_v59, %v782_v10  ;;  %v869_v10 = vmul.f32 %v4816_v41, %v4883_v37  ;;  %s4470_s25 = smov 120  }
 0x20a   : > { %v918_v38 = vmul.f32 %v4840_v24, %v4883_v37 }
 0x20b   : > { %v754_v22 = vmul.f32 %v4818_v44, %v747_v45  ;;  %v822_v44 = vmul.f32 %v4800_v30, %v4883_v37 }
 0x20d   : > { %716 = vrot.lane.b32.xlu1 %v709_v58, %s6864_s24  ;;  %1900 = vperm.xlu0 %4110, %v4650_v28   ;;  %v783_v58 = vmul.f32 %v5147_v6, %v4886_v42  ;;  %v5164_v3 = vpop.permute.xlu0 %1345  ;;  %v829_v1 = vmul.f32 %v4834_v17, %v822_v44  ;;  %v963_v6 = vmul.f32 %v4850_v32, %v4883_v37 }
 0x20f   : > { %v789_v21 = vmul.f32 %v4830_v59, %v783_v58  ;;  %v824_v59 = vmul.f32 %v4804_v33, %v4883_v37  ;;  %v876_v58 = vmul.f32 %v4798_v29, %v869_v10  ;;  %v970_v26 = vmul.f32 %v4826_v57, %v963_v6 }
 0x211   : > { %714 = vrot.lane.b32.xlu1 %v708_v27, %s6864_s24  ;;  %718 = vrot.lane.b32.xlu0 %v710_v14, %s6864_s24  ;;  %v823_v27 = vmul.f32 %v5162_v8, %v4886_v42  ;;  %v5175_v14 = vsel %vm864_vm10, %v4816_v41, %v4820_v49  ;;  %v925_v8 = vmul.f32 %v4846_v20, %v918_v38  ;;  %s7036_s24 = smov 64   ;;  %vm1890_vm10 = vcmask 490496  }
 0x212   : > { %6996 = vst [vmem:[#allocation51_spill] sm:$0xff] %v5175_v14 }
 0x213   : > { %v830_v48 = vmul.f32 %v4834_v17, %v823_v27  ;;  %v5216_v27 = vsel %vm6925_vm11, %v4836_v18, %v4840_v24 }
 0x214   : > { %7000 = vst [vmem:[#allocation54_spill] sm:$0xff] %v5216_v27 }
 0x215   : > { %764 = vrot.lane.b32.xlu1 %v756_v0, %s6908_s30  ;;  %762 = vrot.lane.b32.xlu0 %v755_v4, %s6908_s30  ;;  %v870_v0 = vmul.f32 %v5175_v14, %v4886_v42  ;;  %v5183_v4 = vpop.permute.xlu0 %612 }
 0x216   : > { %6997 = vst [vmem:[#allocation52_spill] sm:$0xff] %v5183_v4 }
 0x219   : > { %1888 = vrot.lane.b32.xlu1 %v1883_v35, %s4468_s22  ;;  %1886 = vrot.lane.b32.xlu0 %v1879_v55, %s4468_s22  ;;  %v5185_v35 = vpop.permute.xlu1 %614  ;;  %v877_v55 = vmul.f32 %v4798_v29, %v870_v0  ;;  %v5195_v45 = vpop.permute.xlu0 %1390 }
 0x21a   : > { %6998 = vst [vmem:[#allocation53_spill] sm:$0xff] %v5185_v35 }
 0x21d   : > { %792 = vrot.lane.b32.xlu1 %v788_v47, %s6848_s16  ;;  %760 = vrot.lane.b32.xlu0 %v754_v22, %s6908_s30  ;;  %v5197_v47 = vpop.permute.xlu1 %1392  ;;  %v597_v22 = vld [vmem:[%s6767_s6] sm:$0xf] }
 0x221   : > { %2463 = vrot.lane.b32.xlu1 %v2437_v11, %s6990_s21  ;;  %794 = vrot.lane.b32.xlu0 %v789_v21, %s6848_s16  ;;  %v831_v11 = vmul.f32 %v4834_v17, %v824_v59  ;;  %v5205_v17 = vld [vmem:[%s6774_s13 + $0x60] sm:$0xff]  ;;  %v871_v21 = vmul.f32 %v4820_v49, %v4883_v37  ;;  %v5221_v59 = vpop.permute.xlu0 %1435  ;;  %v5223_v0 = vpop.permute.xlu1 %1437  ;;  %s6888_s21 = smov 95   ;;  %s4472_s16 = smov 8  }
 0x222   : > { %v2612_v44 = vrot.slane %v5205_v17, %v4862_v15 }
 0x225   : > { %835 = vrot.lane.b32.xlu1 %v829_v1, %s6862_s27  ;;  %837 = vrot.lane.b32.xlu0 %v830_v48, %s6862_s27  ;;  %v878_v1 = vmul.f32 %v4798_v29, %v871_v21  ;;  %v917_v48 = vmul.f32 %v5216_v27, %v4886_v42  ;;  %v5246_v21 = vpop.permute.xlu1 %671 }
 0x226   : > { %7003 = vst [vmem:[#allocation57_spill] sm:$0xff] %v5246_v21 }
 0x227   : > { %v924_v29 = vmul.f32 %v4846_v20, %v917_v48 }
 0x229   : > { %839 = vrot.lane.b32.xlu1 %v831_v11, %s6862_s27  ;;  %884 = vrot.lane.b32.xlu0 %v877_v55, %s6999_s17  ;;  %v5230_v11 = vld [vmem:[%s6774_s13 + $0x68] sm:$0xff]  ;;  %v5236_v55 = vsel %vm958_vm12, %v4850_v32, %v4996_v9  ;;  %v972_v9 = vmul.f32 %v4826_v57, %v965_v31 }
 0x22a   : > { %7001 = vst [vmem:[#allocation55_spill] sm:$0xff] %v5236_v55  ;;  %v2616_v10 = vrot.slane %v5230_v11, %v4862_v15 }
 0x22d   : > { %882 = vrot.lane.b32.xlu1 %v876_v58, %s6999_s17  ;;  %993 = vperm.xlu0 %4110, %v597_v22   ;;  %v2683_v22 = vrot.slane %v5205_v17, %v4599_v12  ;;  %v5244_v58 = vpop.permute.xlu0 %669 }
 0x22e   : > { %7002 = vst [vmem:[#allocation56_spill] sm:$0xff] %v5244_v58 }
 0x231   : > { %886 = vrot.lane.b32.xlu1 %v878_v1, %s6999_s17  ;;  %2619 = vrot.lane.b32.xlu0 %v2612_v44, %s4470_s25  ;;  %v916_v44 = vmul.f32 %v4836_v18, %v4883_v37  ;;  %v964_v1 = vmul.f32 %v5236_v55, %v4886_v42 }
 0x233   : > { %v923_v14 = vmul.f32 %v4846_v20, %v916_v44  ;;  %v971_v27 = vmul.f32 %v4826_v57, %v964_v1  ;;  %v3943_v44 = vld [vmem:[%s6775_s14 + $0x3] ss:$8 sm:$0x3] }
 0x234   : > { %v5284_v20 = vrot.slane %v3943_v44, %v4583_v7  ;;  %v5302_v18 = vrot.slane %v3943_v44, %v4862_v15 }
 0x235   : > { %2145 = vperm.xlu1 %4113, %v4650_v28   ;;  %931 = vrot.lane.b32.xlu0 %v924_v29, %s6888_s21  ;;  %v7004_v29 = vmov 0  }
 0x239   : > { %2621 = vrot.lane.b32.xlu1 %v2616_v10, %s4470_s25  ;;  %2690 = vrot.lane.b32.xlu0 %v2683_v22, %s4472_s16  ;;  %v2126_v10 = vrot.slane %v4672_v43, %v4690_v52 }
 0x23a   : > { %v5254_v28 = vpop.permute.xlu1 %1074  ;;  %v5256_v48 = vpop.permute.xlu0 %1076  ;;  %4114 = vset.pattern.permute.xlu1 %v7004_v29 }
 0x23d   : > { %929 = vrot.lane.b32.xlu1 %v923_v14, %s6888_s21  ;;  %978 = vrot.lane.b32.xlu0 %v971_v27, %s7005_s28  ;;  %v2687_v14 = vrot.slane %v5230_v11, %v4599_v12  ;;  %v1084_v27 = vsub.f32 1.0, %v3943_v44 }
 0x23e   : > { %v5267_v22 = vpop.permute.xlu1 %1096  ;;  %v5269_v55 = vpop.permute.xlu0 %1098 }
 0x23f   : > { %v5287_v38 = vrot.slane %v1084_v27, %v4583_v7  ;;  %v5297_v23 = vrot.slane %v1084_v27, %v4862_v15 }
 0x241   : > { %933 = vrot.lane.b32.xlu1 %v925_v8, %s6888_s21  ;;  %2133 = vrot.lane.b32.xlu0 %v2126_v10, %s4468_s22  ;;  %s7006_s21 = smov 32  }
 0x242   : > { %v1795_v1 = vpop.permute.xlu1 %1794  ;;  %v1793_v43 = vpop.permute.xlu0 %1792 }
 0x243   : > { %v1797_v56 = vsel %vm649_vm6, %v1795_v1, %v1793_v43  ;;  %v1796_v25 = vsel %vm649_vm6, %v1793_v43, %v1795_v1 }
 0x244   : > { %v1801_v32 = vmul.f32 %v1797_v56, %v5284_v20 }
 0x245   : > { %2692 = vrot.lane.b32.xlu1 %v2687_v14, %s4472_s16 }
 0x246   : > { %v1805_v8 = vpop.permute.xlu1 %1804  ;;  %v1803_v12 = vpop.permute.xlu0 %1802 }
 0x247   : > { %v1807_v10 = vsel %vm6925_vm11, %v1805_v8, %v1803_v12  ;;  %v1806_v16 = vsel %vm6925_vm11, %v1803_v12, %v1805_v8  ;;  %v1800_v8 = vmul.f32 %v1796_v25, %v5302_v18  ;;  %v3974_v12 = vld [vmem:[%s6775_s14 + $0x2] ss:$8 sm:$0x3] }
 0x248   : > { %v1811_v14 = vmul.f32 %v1807_v10, %v5287_v38  ;;  %v1810_v6 = vmul.f32 %v1806_v16, %v5297_v23 }
 0x249   : > { %976 = vrot.lane.b32.xlu1 %v970_v26, %s7005_s28  ;;  %v5314_v26 = vld [vmem:[%s6774_s13 + $0x48] sm:$0xff] }
 0x24a   : > { %v1813_v36 = vadd.f32 %v1811_v14, %v1801_v32  ;;  %v2130_v32 = vrot.slane %v5314_v26, %v4690_v52  ;;  %v1812_v16 = vadd.f32 %v1810_v6, %v1800_v8  ;;  %v2449_v14 = vsub.f32 1.0, %v3974_v12 }
 0x24c   : > { %v5307_v56 = vmax.f32 %v5036_v60, %v1813_v36  ;;  %v5322_v57 = vmax.f32 %v5039_v62, %v1812_v16  ;;  %v2432_v16 = vrot.slane %v3974_v12, %v4583_v7  ;;  %v2454_v24 = vrot.slane %v2449_v14, %v4862_v15 }
 0x24d   : > { %980 = vrot.lane.b32.xlu1 %v972_v9, %s7005_s28  ;;  %v2458_v30 = vrot.slane %v2449_v14, %v4583_v7 }
 0x24e   : > { %1853 = vrot.lane.b32.xlu0 %v5307_v56, %s7006_s21 }
 0x251   : > { %2135 = vrot.lane.b32.xlu1 %v2130_v32, %s4468_s22  ;;  %v2428_v32 = vrot.slane %v3974_v12, %v4862_v15 }
 0x255   : > { %1831 = vrot.lane.b32.xlu1 %v5322_v57, %s6999_s17 }
 0x259   : > { %1833 = vrot.lane.b32.xlu1 %v5307_v56, %s6999_s17 }
 0x25d   : > { %1855 = vrot.lane.b32.xlu1 %v5322_v57, %s7006_s21 }
 0x273   : > { %v2442_v25 = vpop.permute.xlu1 %2441  ;;  %v2440_v36 = vpop.permute.xlu0 %2439 }
 0x274   : > { %v2443_v33 = vsel %vm1947_vm13, %v2440_v36, %v2442_v25  ;;  %v2444_v41 = vsel %vm1947_vm13, %v2442_v25, %v2440_v36 }
 0x277   : > { %v5330_v9 = vpop.permute.xlu1 %1482  ;;  %v2462_v44 = vpop.permute.xlu0 %2461 }
 0x27b   : > { %v5332_v60 = vpop.permute.xlu1 %667  ;;  %v5340_v1 = vpop.permute.xlu0 %1480 }
 0x27c   : > { %7007 = vst [vmem:[#allocation58_spill] sm:$0xff] %v5332_v60  ;;  %v2447_v60 = vmul.f32 %v2443_v33, %v2428_v32 }
 0x27f   : > { %v5334_v31 = vpop.permute.xlu1 %716 }
 0x280   : > { %7008 = vst [vmem:[#allocation59_spill] sm:$0xff] %v5334_v31 }
 0x283   : > { %v5336_v62 = vpop.permute.xlu1 %714 }
 0x284   : > { %7009 = vst [vmem:[#allocation60_spill] sm:$0xff] %v5336_v62 }
 0x287   : > { %v5338_v27 = vpop.permute.xlu1 %764 }
 0x288   : > { %7010 = vst [vmem:[#allocation61_spill] sm:$0xff] %v5338_v27  ;;  %v2448_v27 = vmul.f32 %v2444_v41, %v2432_v16 }
 0x28b   : > { %v5342_v43 = vpop.permute.xlu1 %1888 }
 0x28c   : > { %v5347_v10 = vpop.permute.xlu0 %1900 }
 0x28f   : > { %v5349_v6 = vpop.permute.xlu1 %792 }
 0x290   : > { %7011 = vst [vmem:[#allocation62_spill] sm:$0xff] %v5349_v6  ;;  %v5351_v8 = vpop.permute.xlu0 %718 }
 0x291   : > { %7012 = vst [vmem:[#allocation63_spill] sm:$0xff] %v5351_v8 }
 0x293   : > { %v2464_v49 = vpop.permute.xlu1 %2463 }
 0x294   : > { %v2465_v29 = vsel %vm6927_vm14, %v2462_v44, %v2464_v49  ;;  %v2466_v62 = vsel %vm6927_vm14, %v2464_v49, %v2462_v44  ;;  %v5361_v6 = vpop.permute.xlu0 %762 }
 0x295   : > { %v2469_v42 = vmul.f32 %v2465_v29, %v2454_v24  ;;  %v2470_v12 = vmul.f32 %v2466_v62, %v2458_v30  ;;  %v2732_v30 = vrot.slane %v5230_v11, %v4632_v19  ;;  %v2728_v24 = vrot.slane %v5205_v17, %v4632_v19 }
 0x296   : > { %v2801_v19 = vrot.slane %v5230_v11, %v4657_v34  ;;  %v2846_v62 = vrot.slane %v5230_v11, %v4690_v52 }
 0x297   : > { %v2471_v31 = vadd.f32 %v2469_v42, %v2447_v60  ;;  %v2472_v8 = vadd.f32 %v2470_v12, %v2448_v27  ;;  %v5373_v33 = vpop.permute.xlu1 %835  ;;  %v2842_v60 = vrot.slane %v5205_v17, %v4690_v52  ;;  %v3983_v52 = vld [vmem:[%s6774_s13 + $0x78] ss:$0 sm:$0xff] }
 0x298   : > { %v5363_v21 = vpop.permute.xlu0 %1886 }
 0x299   : > { %v2475_v58 = vrot.slane %v2471_v31, 4  ;;  %v2476_v14 = vrot.slane %v2472_v8, 4  ;;  %v7016_v8 = vmov 1  }
 0x29b   : > { %v5366_v25 = vmax.f32 %v5073_v13, %v2475_v58  ;;  %v5369_v36 = vmax.f32 %v5070_v61, %v2476_v14  ;;  %v5385_v42 = vpop.permute.xlu1 %839  ;;  %v2797_v13 = vrot.slane %v5205_v17, %v4657_v34  ;;  %v3963_v58 = vld [vmem:[%s6767_s6 + $0x8] sm:$0xf]  ;;  %v3982_v34 = vld [vmem:[%s6774_s13 + $0x70] ss:$0 sm:$0xff] }
 0x29c   : > { %v5379_v41 = vpop.permute.xlu0 %760  ;;  %7013 = vst [vmem:[#allocation64_spill] sm:$0xff] %v5385_v42 }
 0x29d   : > { %v2484_v49 = vrot.slane %v5369_v36, 4  ;;  %v2483_v44 = vrot.slane %v5366_v25, 4 }
 0x29f   : > { %2487 = vrot.lane.b32.xlu1 %v2484_v49, %s6908_s30  ;;  %2485 = vrot.lane.b32.xlu0 %v2483_v44, %s6908_s30  ;;  %v5396_v29 = vpop.permute.xlu1 %882  ;;  %s7052_s30 = smov 30  }
 0x2a0   : > { %v5387_v61 = vpop.permute.xlu0 %794  ;;  %7014 = vst [vmem:[#allocation65_spill] sm:$0xff] %v5396_v29 }
 0x2a3   : > { %2737 = vrot.lane.b32.xlu1 %v2732_v30, %s4470_s25  ;;  %2495 = vrot.lane.b32.xlu0 %v2484_v49, %s6982_s26  ;;  %v5409_v27 = vpop.permute.xlu1 %886 }
 0x2a4   : > { %v5403_v31 = vpop.permute.xlu0 %837  ;;  %7015 = vst [vmem:[#allocation66_spill] sm:$0xff] %v5409_v27 }
 0x2a7   : > { %2497 = vrot.lane.b32.xlu1 %v2483_v44, %s6982_s26  ;;  %2735 = vrot.lane.b32.xlu0 %v2728_v24, %s4470_s25  ;;  %s4473_s26 = smov 56  }
 0x2a8   : > { %v5415_v32 = vpop.permute.xlu0 %884 }
 0x2a9   : > { %7017 = vst [vmem:[#allocation67_spill] sm:$0xff] %v5415_v32 }
 0x2ab   : > { %2246 = vperm.xlu1 %4114, %v3963_v58   ;;  %2804 = vrot.lane.b32.xlu0 %v2797_v13, %s4472_s16 }
 0x2ac   : > { %v5425_v11 = vpop.permute.xlu0 %993 }
 0x2ad   : > { %7018 = vst [vmem:[#allocation68_spill] sm:$0xff] %v5425_v11 }
 0x2af   : > { %2806 = vrot.lane.b32.xlu1 %v2801_v19, %s4472_s16  ;;  %2849 = vrot.lane.b32.xlu0 %v2842_v60, %s4470_s25 }
 0x2b0   : > { %4115 = vset.pattern.permute.xlu1 %v7016_v8  ;;  %v5431_v14 = vpop.permute.xlu0 %2619 }
 0x2b1   : > { %7021 = vst [vmem:[#allocation71_spill] sm:$0xff] %v5431_v14 }
 0x2b3   : > { %2851 = vrot.lane.b32.xlu1 %v2846_v62, %s4470_s25  ;;  %2918 = vrot.lane.b32.xlu0 %v3982_v34, %s4472_s16  ;;  %v3961_v34 = vld [vmem:[%s6775_s14 + $0x4] ss:$8 sm:$0x3] }
 0x2b4   : > { %v5419_v17 = vpop.permute.xlu1 %2145  ;;  %v5435_v44 = vpop.permute.xlu0 %931  ;;  %v1841_v14 = vsub.f32 1.0, %v3961_v34 }
 0x2b5   : > { %7023 = vst [vmem:[#allocation73_spill] sm:$0xff] %v5435_v44 }
 0x2b6   : > { %v5464_v11 = vrot.slane %v1841_v14, %v4583_v7 }
 0x2b7   : > { %2920 = vrot.lane.b32.xlu1 %v3983_v52, %s4472_s16 }
 0x2b8   : > { %v5427_v16 = vpop.permute.xlu1 %2621  ;;  %v5441_v13 = vpop.permute.xlu0 %2690 }
 0x2b9   : > { %7019 = vst [vmem:[#allocation69_spill] sm:$0xff] %v5427_v16  ;;  %7026 = vst [vmem:[#allocation76_spill] sm:$0xff] %v5441_v13  ;;  %v5458_v13 = vrot.slane %v3961_v34, %v4583_v7 }
 0x2bc   : > { %v5429_v12 = vpop.permute.xlu1 %929  ;;  %v5445_v19 = vpop.permute.xlu0 %978 }
 0x2bd   : > { %7020 = vst [vmem:[#allocation70_spill] sm:$0xff] %v5429_v12  ;;  %7028 = vst [vmem:[#allocation78_spill] sm:$0xff] %v5445_v19 }
 0x2c0   : > { %v5433_v49 = vpop.permute.xlu1 %933  ;;  %v5452_v52 = vpop.permute.xlu0 %2133 }
 0x2c1   : > { %7022 = vst [vmem:[#allocation72_spill] sm:$0xff] %v5433_v49 }
 0x2c4   : > { %v5437_v30 = vpop.permute.xlu1 %2692  ;;  %v1854_v42 = vpop.permute.xlu0 %1853 }
 0x2c5   : > { %7024 = vst [vmem:[#allocation74_spill] sm:$0xff] %v5437_v30  ;;  %v5455_v30 = vrot.slane %v3961_v34, %v4862_v15 }
 0x2c8   : > { %v5439_v24 = vpop.permute.xlu1 %976 }
 0x2c9   : > { %7025 = vst [vmem:[#allocation75_spill] sm:$0xff] %v5439_v24 }
 0x2cc   : > { %v5443_v58 = vpop.permute.xlu1 %980 }
 0x2cd   : > { %7027 = vst [vmem:[#allocation77_spill] sm:$0xff] %v5443_v58  ;;  %v5461_v58 = vrot.slane %v1841_v14, %v4862_v15 }
 0x2d0   : > { %v5447_v60 = vpop.permute.xlu1 %2135 }
 0x2d4   : > { %v1832_v62 = vpop.permute.xlu1 %1831 }
 0x2d8   : > { %v1834_v16 = vpop.permute.xlu1 %1833 }
 0x2d9   : > { %v1835_v49 = vsel %vm888_vm15, %v1832_v62, %v1834_v16  ;;  %v1836_v27 = vsel %vm888_vm15, %v1834_v16, %v1832_v62 }
 0x2da   : > { %v1839_v34 = vmul.f32 %v1835_v49, %v5455_v30  ;;  %v1840_v44 = vmul.f32 %v1836_v27, %v5458_v13 }
 0x2dc   : > { %v1856_v24 = vpop.permute.xlu1 %1855 }
 0x2dd   : > { %v1857_v19 = vsel %vm1209_vm0, %v1854_v42, %v1856_v24  ;;  %v1858_v12 = vsel %vm1209_vm0, %v1856_v24, %v1854_v42  ;;  %v7029_v42 = vld [vmem:[#allocation14_spill] sm:$0xff] }
 0x2de   : > { %v1861_v15 = vmul.f32 %v1857_v19, %v5461_v58  ;;  %v1862_v14 = vmul.f32 %v1858_v12, %v5464_v11  ;;  %v1924_v49 = vsel %vm1923_vm1, %v7029_v42, %v4812_v39  ;;  %v7030_v12 = vld [vmem:[#allocation21_spill] sm:$0xff]  ;;  %v7031_v19 = vld [vmem:[#allocation20_spill] sm:$0xff] }
 0x2e0   : > { %v1863_v7 = vadd.f32 %v1861_v15, %v1839_v34  ;;  %v1864_v29 = vadd.f32 %v1862_v14, %v1840_v44  ;;  %v1971_v15 = vsel %vm6926_vm2, %v7031_v19, %v7030_v12  ;;  %v7032_v44 = vld [vmem:[#allocation11_spill] sm:$0xff] }
 0x2e2   : > { %v5475_v16 = vmax.f32 %v5322_v57, %v1863_v7  ;;  %v5478_v62 = vmax.f32 %v5307_v56, %v1864_v29  ;;  %v7033_v29 = vld [vmem:[#allocation16_spill] sm:$0xff] }
 0x2e4   : > { %v1930_v27 = vmul.f32 %v4812_v39, %v5478_v62  ;;  %v1929_v24 = vmul.f32 %v1924_v49, %v5475_v16  ;;  %v1976_v56 = vmul.f32 %v1971_v15, %v5475_v16  ;;  %v1928_v57 = vmul.f32 %v7029_v42, %v5478_v62  ;;  %v7035_v42 = vld [vmem:[#allocation19_spill] sm:$0xff] }
 0x2e5   : > { %v2055_v39 = vrot.slane %v5314_v26, %v5117_v2 }
 0x2e6   : > { %v1937_v34 = vmul.f32 %v7032_v44, %v1930_v27  ;;  %v1936_v7 = vmul.f32 %v7032_v44, %v1929_v24  ;;  %v1983_v14 = vmul.f32 %v7033_v29, %v1976_v56  ;;  %v1935_v49 = vmul.f32 %v7032_v44, %v1928_v57  ;;  %v7034_v27 = vld [vmem:[#allocation27_spill] sm:$0xff]  ;;  %v7037_v44 = vld [vmem:[#allocation24_spill] sm:$0xff] }
 0x2e7   : > { %v2023_v32 = vmul.f32 %v7034_v27, %v5478_v62  ;;  %v1977_v24 = vmul.f32 %v7030_v12, %v5478_v62  ;;  %v2057_v26 = vmul.f32 %v2055_v39, %v5478_v62  ;;  %v2017_v12 = vsel %vm1947_vm13, %v7037_v44, %v7034_v27  ;;  %v7038_v56 = vld [vmem:[#allocation28_spill] sm:$0xff]  ;;  %v4422_v27 = vld [vmem:[%s6774_s13 + $0x40] sm:$0xff] }
 0x2e8   : > { %1945 = vrot.lane.b32.xlu1 %v1937_v34, %s6989_s29  ;;  %1943 = vrot.lane.b32.xlu0 %v1936_v7, %s6989_s29  ;;  %v1975_v7 = vmul.f32 %v7031_v19, %v5478_v62  ;;  %v2091_v57 = vsel %vm6927_vm14, %v7038_v56, %v4998_v51  ;;  %v2022_v19 = vmul.f32 %v2017_v12, %v5475_v16  ;;  %vm2114_vm14 = vcmask 457728  }
 0x2e9   : > { %v2030_v15 = vmul.f32 %v7035_v42, %v2023_v32  ;;  %v1984_v34 = vmul.f32 %v7033_v29, %v1977_v24  ;;  %v7039_v32 = vld [vmem:[#allocation22_spill] sm:$0xff]  ;;  %v2096_v39 = vmul.f32 %v2091_v57, %v5478_v62  ;;  %v2051_v24 = vrot.slane %v4422_v27, %v5117_v2 }
 0x2ea   : > { %v2213_v12 = vsel %vm6926_vm2, %v5045_v54, %v5077_v53  ;;  %v7041_v57 = vld [vmem:[#allocation30_spill] sm:$0xff]  ;;  %vm1994_vm2 = vcmask 982016  }
 0x2ec   : > { %1990 = vrot.lane.b32.xlu1 %v1983_v14, %s4470_s25  ;;  %1941 = vrot.lane.b32.xlu0 %v1935_v49, %s6989_s29  ;;  %v2063_v14 = vmul.f32 %v7039_v32, %v2057_v26  ;;  %v1982_v49 = vmul.f32 %v7033_v29, %v1975_v7  ;;  %v2029_v26 = vmul.f32 %v7035_v42, %v2022_v19 }
 0x2ed   : > { %v2174_v29 = vmul.f32 %v5067_v40, %v5475_v16  ;;  %v2021_v7 = vmul.f32 %v7037_v44, %v5478_v62  ;;  %v2056_v19 = vmul.f32 %v2051_v24, %v5475_v16  ;;  %v7042_v44 = vld [vmem:[#allocation36_spill] sm:$0xff] }
 0x2f0   : > { %2038 = vrot.lane.b32.xlu1 %v2030_v15, %s7036_s24  ;;  %1992 = vrot.lane.b32.xlu0 %v1984_v34, %s4470_s25  ;;  %v7040_v15 = vld [vmem:[#allocation26_spill] sm:$0xff] }
 0x2f1   : > { %v2103_v34 = vmul.f32 %v7040_v15, %v2096_v39  ;;  %v2218_v39 = vmul.f32 %v2213_v12, %v5478_v62 }
 0x2f3   : > { %v2225_v27 = vmul.f32 %v7042_v44, %v2218_v39  ;;  %v2219_v39 = vmul.f32 %v5077_v53, %v5475_v16 }
 0x2f4   : > { %2068 = vrot.lane.b32.xlu1 %v2063_v14, %s4468_s22  ;;  %1988 = vrot.lane.b32.xlu0 %v1982_v49, %s4470_s25  ;;  %v2181_v14 = vmul.f32 %v7041_v57, %v2174_v29  ;;  %v2028_v49 = vmul.f32 %v7035_v42, %v2021_v7  ;;  %v2095_v29 = vmul.f32 %v7038_v56, %v5475_v16 }
 0x2f5   : > { %v2097_v7 = vmul.f32 %v4998_v51, %v5475_v16 }
 0x2f6   : > { %v2102_v24 = vmul.f32 %v7040_v15, %v2095_v29 }
 0x2f7   : > { %v2104_v56 = vmul.f32 %v7040_v15, %v2097_v7  ;;  %v2226_v15 = vmul.f32 %v7042_v44, %v2219_v39 }
 0x2f8   : > { %2110 = vrot.lane.b32.xlu1 %v2103_v34, %s4473_s26  ;;  %2036 = vrot.lane.b32.xlu0 %v2029_v26, %s7036_s24  ;;  %v2062_v34 = vmul.f32 %v7039_v32, %v2056_v19  ;;  %v2217_v26 = vmul.f32 %v5045_v54, %v5475_v16  ;;  %v7043_v32 = vld [vmem:[#allocation37_spill] sm:$0xff]  ;;  %v1101_v19 = vsel %vm6925_vm11, %v5269_v55, %v5267_v22 }
 0x2f9   : > { %v2168_v54 = vsel %vm1923_vm1, %v7043_v32, %v5067_v40  ;;  %v1105_v53 = vmul.f32 %v1101_v19, %v5287_v38 }
 0x2fa   : > { %v2224_v42 = vmul.f32 %v7042_v44, %v2217_v26  ;;  %v2173_v12 = vmul.f32 %v2168_v54, %v5478_v62 }
 0x2fc   : > { %2189 = vrot.lane.b32.xlu1 %v2181_v14, %s6989_s29  ;;  %2034 = vrot.lane.b32.xlu0 %v2028_v49, %s7036_s24  ;;  %v2180_v14 = vmul.f32 %v7041_v57, %v2173_v12  ;;  %v2172_v49 = vmul.f32 %v7043_v32, %v5475_v16 }
 0x2fe   : > { %v2179_v51 = vmul.f32 %v7041_v57, %v2172_v49 }
 0x300   : > { %2232 = vrot.lane.b32.xlu1 %v2225_v27, %s4470_s25  ;;  %2066 = vrot.lane.b32.xlu0 %v2062_v34, %s4468_s22  ;;  %v1079_v34 = vsel %vm649_vm6, %v5256_v48, %v5254_v28  ;;  %s7084_s22 = smov 17  }
 0x301   : > { %v1083_v26 = vmul.f32 %v1079_v34, %v5284_v20 }
 0x303   : > { %v1107_v7 = vadd.f32 %v1105_v53, %v1083_v26  ;;  %v7044_v26 = vld [vmem:[#allocation39_spill] sm:$0xff] }
 0x304   : > { %2230 = vrot.lane.b32.xlu1 %v2224_v42, %s4470_s25  ;;  %2108 = vrot.lane.b32.xlu0 %v2102_v24, %s4473_s26 }
 0x308   : > { %2112 = vrot.lane.b32.xlu0 %v2104_v56, %s4473_s26  ;;  %s7059_s26 = smov 98  }
 0x30c   : > { %2187 = vrot.lane.b32.xlu0 %v2180_v14, %s6989_s29 }
 0x310   : > { %2185 = vrot.lane.b32.xlu0 %v2179_v51, %s6989_s29 }
 0x311   : > { %v2488_v40 = vpop.permute.xlu1 %2487  ;;  %v2486_v27 = vpop.permute.xlu0 %2485 }
 0x312   : > { %v2489_v29 = vsel %vm649_vm6, %v2486_v27, %v2488_v40  ;;  %v2490_v44 = vsel %vm649_vm6, %v2488_v40, %v2486_v27  ;;  %v1100_v27 = vsel %vm6925_vm11, %v5267_v22, %v5269_v55  ;;  %v5615_v22 = vld [vmem:[%s6766_s5 + $0x4] sm:$0xf] }
 0x313   : > { %v2493_v56 = vmul.f32 %v2489_v29, %v5302_v18  ;;  %v2494_v12 = vmul.f32 %v2490_v44, %v5284_v20  ;;  %v1078_v20 = vsel %vm649_vm6, %v5254_v28, %v5256_v48 }
 0x314   : > { %2234 = vrot.lane.b32.xlu0 %v2226_v15, %s4470_s25  ;;  %v1111_v15 = vrot.slane %v1107_v7, 4  ;;  %v1082_v55 = vmul.f32 %v1078_v20, %v5302_v18 }
 0x315   : > { %v5579_v57 = vpop.permute.xlu1 %2737  ;;  %v2496_v42 = vpop.permute.xlu0 %2495 }
 0x316   : > { %v5605_v29 = vmax.f32 %v7044_v26, %v1111_v15 }
 0x318   : > { %v1192_v18 = vmul.f32 %v5107_v63, %v5605_v29 }
 0x319   : > { %v2498_v24 = vpop.permute.xlu1 %2497 }
 0x31a   : > { %v2499_v32 = vsel %vm6925_vm11, %v2496_v42, %v2498_v24  ;;  %v2500_v54 = vsel %vm6925_vm11, %v2498_v24, %v2496_v42  ;;  %v7046_v24 = vld [vmem:[#allocation38_spill] sm:$0xff]  ;;  %vm1163_vm11 = vcmask 277504  }
 0x31b   : > { %v2503_v14 = vmul.f32 %v2499_v32, %v5297_v23  ;;  %v2504_v49 = vmul.f32 %v2500_v54, %v5287_v38  ;;  %v1104_v38 = vmul.f32 %v1100_v27, %v5297_v23  ;;  %v1145_v23 = vmul.f32 %v5092_v5, %v5605_v29  ;;  %v7047_v54 = vld [vmem:[#allocation40_spill] sm:$0xff] }
 0x31c   : > { %v1202_v32 = vrot.slane %v1192_v18, 4 }
 0x31d   : > { %v2505_v51 = vadd.f32 %v2503_v14, %v2493_v56  ;;  %v2506_v39 = vadd.f32 %v2504_v49, %v2494_v12  ;;  %v1106_v28 = vadd.f32 %v1104_v38, %v1082_v55  ;;  %v1143_v56 = vmul.f32 %v7047_v54, %v5605_v29  ;;  %v7049_v14 = vld [vmem:[#allocation42_spill] sm:$0xff] }
 0x31e   : > { %v7048_v12 = vmov 3   ;;  %v1233_v49 = vsel %vm1232_vm3, %v7049_v14, %v5127_v46  ;;  %v7051_v38 = vmov 4   ;;  %v7053_v55 = vmov 2  }
 0x31f   : > { %v2509_v19 = vrot.slane %v2505_v51, 4  ;;  %v2510_v40 = vrot.slane %v2506_v39, 4  ;;  %v1110_v48 = vrot.slane %v1106_v28, 4  ;;  %v1139_v51 = vsel %vm982_vm4, %v7047_v54, %v5092_v5  ;;  %v5660_v28 = vpop.permute.xlu0 %2735  ;;  %v7056_v54 = vld [vmem:[#allocation45_spill] sm:$0xff] }
 0x320   : > { %v1154_v39 = vrot.slane %v1143_v56, 4  ;;  %v1349_v56 = vsel %vm1302_vm8, %v5164_v3, %v7056_v54 }
 0x321   : > { %v5595_v34 = vmax.f32 %v5366_v25, %v2509_v19  ;;  %v5598_v53 = vmax.f32 %v5369_v36, %v2510_v40  ;;  %v1156_v25 = vrot.slane %v1145_v23, 4  ;;  %v7045_v36 = vmov 5   ;;  %v7050_v40 = vld [vmem:[#allocation41_spill] sm:$0xff] }
 0x322   : > { %v5627_v7 = vmax.f32 %v7046_v24, %v1110_v48  ;;  %v1186_v27 = vsel %vm888_vm15, %v7050_v40, %v5107_v63  ;;  %v1190_v63 = vmul.f32 %v7050_v40, %v5605_v29  ;;  %v1239_v24 = vmul.f32 %v5127_v46, %v5605_v29 }
 0x323   : > { %v2518_v44 = vrot.slane %v5598_v53, 4  ;;  %v2517_v42 = vrot.slane %v5595_v34, 4  ;;  %v5677_v46 = vpop.permute.xlu0 %2804 }
 0x324   : > { %v1238_v15 = vmul.f32 %v1233_v49, %v5627_v7  ;;  %v1144_v19 = vmul.f32 %v1139_v51, %v5627_v7  ;;  %v1200_v48 = vrot.slane %v1190_v63, 4  ;;  %v7057_v49 = vmov 6  }
 0x325   : > { %2529 = vrot.lane.b32.xlu0 %v2518_v44, %s7006_s21  ;;  %2519 = vrot.lane.b32.xlu1 %v2517_v42, %s6999_s17 }
 0x326   : > { %v1248_v20 = vrot.slane %v1238_v15, 4  ;;  %v1155_v26 = vrot.slane %v1144_v19, 4  ;;  %v1354_v15 = vmul.f32 %v1349_v56, %v5605_v29  ;;  %v1237_v19 = vmul.f32 %v7049_v14, %v5605_v29 }
 0x327   : > { %v1439_v14 = vsel %vm1209_vm0, %v5221_v59, %v5223_v0 }
 0x329   : > { %1148 = vperm.xlu0 %4110, %v5615_v22   ;;  %2521 = vrot.lane.b32.xlu1 %v2518_v44, %s6999_s17  ;;  %v1191_v44 = vmul.f32 %v1186_v27, %v5627_v7 }
 0x32b   : > { %v1201_v5 = vrot.slane %v1191_v44, 4  ;;  %v1400_v44 = vmul.f32 %v5197_v47, %v5627_v7 }
 0x32d   : > { %1161 = vrot.lane.b32.xlu0 %v1156_v25, %s4467_s20  ;;  %1194 = vperm.xlu1 %4115, %v5615_v22   ;;  %v7054_v25 = vld [vmem:[#allocation43_spill] sm:$0xff] }
 0x32e   : > { %4118 = vset.pattern.permute.xlu0 %v7045_v36  ;;  %v1283_v18 = vmul.f32 %v7054_v25, %v5605_v29  ;;  %v1279_v40 = vsel %vm720_vm7, %v7054_v25, %v5149_v50 }
 0x330   : > { %v1293_v51 = vrot.slane %v1283_v18, 4 }
 0x331   : > { %1207 = vrot.lane.b32.xlu0 %v1202_v32, %s7006_s21  ;;  %4116 = vset.pattern.permute.xlu1 %v7048_v12  ;;  %v5668_v32 = vpop.permute.xlu1 %2246 }
 0x332   : > { %1287 = vperm.xlu1 %4116, %v5615_v22  }
 0x335   : > { %1157 = vrot.lane.b32.xlu0 %v1154_v39, %s4467_s20  ;;  %v1249_v39 = vrot.slane %v1239_v24, 4  ;;  %v5684_v27 = vpop.permute.xlu1 %2806 }
 0x336   : > { %2531 = vrot.lane.b32.xlu1 %v2517_v42, %s7006_s21  ;;  %v1285_v42 = vmul.f32 %v5149_v50, %v5605_v29  ;;  %v1410_v50 = vrot.slane %v1400_v44, 4 }
 0x337   : > { %4117 = vset.pattern.permute.xlu1 %v7051_v38 }
 0x338   : > { %v1295_v23 = vrot.slane %v1285_v42, 4  ;;  %v5694_v42 = vpop.permute.xlu0 %2849 }
 0x339   : > { %1252 = vrot.lane.b32.xlu0 %v1248_v20, %s7052_s30  ;;  %v1364_v20 = vrot.slane %v1354_v15, 4 }
 0x33a   : > { %1159 = vrot.lane.b32.xlu1 %v1155_v26, %s4467_s20  ;;  %s7055_s20 = smov 2   ;;  %v1247_v26 = vrot.slane %v1237_v19, 4 }
 0x33c   : > { %v5703_v18 = vpop.permute.xlu0 %2918 }
 0x33d   : > { %1357 = vperm.xlu0 %4118, %v5615_v22  }
 0x33e   : > { %1205 = vrot.lane.b32.xlu1 %v1201_v5, %s7006_s21  ;;  %v1284_v5 = vmul.f32 %v1279_v40, %v5627_v7  ;;  %v1353_v40 = vmul.f32 %v5164_v3, %v5627_v7  ;;  %v1398_v3 = vmul.f32 %v5195_v45, %v5627_v7 }
 0x340   : > { %v1294_v63 = vrot.slane %v1284_v5, 4 }
 0x341   : > { %4119 = vset.pattern.permute.xlu0 %v7053_v55  ;;  %v1444_v55 = vmul.f32 %v1439_v14, %v5605_v29 }
 0x342   : > { %1241 = vperm.xlu0 %4119, %v5615_v22   ;;  %1322 = vperm.xlu1 %4117, %v5615_v22  }
 0x343   : > { %v1454_v25 = vrot.slane %v1444_v55, 4 }
 0x346   : > { %1300 = vrot.lane.b32.xlu0 %v1295_v23, %s7055_s20  ;;  %1203 = vrot.lane.b32.xlu1 %v1200_v48, %s7006_s21  ;;  %s7058_s21 = smov 126   ;;  %v5697_v23 = vpop.permute.xlu1 %2851  ;;  %v1490_v48 = vmul.f32 %v5330_v9, %v5627_v7 }
 0x347   : > { %4120 = vset.pattern.permute.xlu1 %v7057_v49 }
 0x348   : > { %v1500_v24 = vrot.slane %v1490_v48, 4  ;;  %v1408_v48 = vrot.slane %v1398_v3, 4 }
 0x34a   : > { %1296 = vrot.lane.b32.xlu0 %v1293_v51, %s7055_s20  ;;  %1254 = vrot.lane.b32.xlu1 %v1249_v39, %s7052_s30  ;;  %v5707_v56 = vpop.permute.xlu1 %2920  ;;  %v1355_v51 = vmul.f32 %v7056_v54, %v5627_v7  ;;  %v7060_v39 = vmov 7   ;;  %v1363_v54 = vrot.slane %v1353_v40, 4 }
 0x34c   : > { %v1365_v19 = vrot.slane %v1355_v51, 4 }
 0x34e   : > { %1368 = vrot.lane.b32.xlu0 %v1364_v20, %s7058_s21  ;;  %1250 = vrot.lane.b32.xlu1 %v1247_v26, %s7052_s30  ;;  %v1394_v20 = vsel %vm1256_vm9, %v5195_v45, %v5197_v47  ;;  %v1895_v47 = vmul.f32 %v5363_v21, %v5478_v62  ;;  %s4475_s30 = smov 116  }
 0x34f   : > { %v1399_v5 = vmul.f32 %v1394_v20, %v5605_v29 }
 0x350   : > { %v1903_v20 = vmul.f32 %v5347_v10, %v1895_v47 }
 0x352   : > { %1415 = vrot.lane.b32.xlu0 %v1410_v50, %s7059_s26  ;;  %1298 = vrot.lane.b32.xlu1 %v1294_v63, %s7055_s20  ;;  %v1409_v63 = vrot.slane %v1399_v5, 4  ;;  %s7128_s20 = smov 95  }
 0x356   : > { %1458 = vrot.lane.b32.xlu0 %v1454_v25, %s6999_s17  ;;  %1402 = vperm.xlu1 %4120, %v5615_v22   ;;  %v1445_v25 = vmul.f32 %v5223_v0, %v5627_v7  ;;  %v1443_v0 = vmul.f32 %v5221_v59, %v5627_v7 }
 0x358   : > { %v1455_v5 = vrot.slane %v1445_v25, 4  ;;  %v1453_v25 = vrot.slane %v1443_v0, 4 }
 0x35a   : > { %1505 = vrot.lane.b32.xlu0 %v1500_v24, %s7005_s28  ;;  %4121 = vset.pattern.permute.xlu1 %v7060_v39  ;;  %v1944_v15 = vpop.permute.xlu0 %1943  ;;  %v1946_v26 = vpop.permute.xlu1 %1945  ;;  %v1897_v24 = vmul.f32 %v5342_v43, %v5478_v62 }
 0x35b   : > { %1447 = vperm.xlu1 %4121, %v5615_v22  }
 0x35e   : > { %v1942_v44 = vpop.permute.xlu0 %1941  ;;  %v1991_v50 = vpop.permute.xlu1 %1990 }
 0x35f   : > { %1370 = vrot.lane.b32.xlu1 %v1365_v19, %s7058_s21  ;;  %v1948_v51 = vsel %vm1947_vm13, %v1942_v44, %v1944_v15  ;;  %v1484_v44 = vsel %vm1163_vm11, %v5340_v1, %v5330_v9  ;;  %v2137_v9 = vsel %vm1890_vm10, %v5452_v52, %v5447_v60 }
 0x360   : > { %4122 = vset.pattern.permute.xlu1 %v7016_v8  ;;  %v1891_v8 = vsel %vm1890_vm10, %v5363_v21, %v5342_v43  ;;  %v1953_v43 = vadd.f32 %v1948_v51, %v1903_v20  ;;  %v1489_v20 = vmul.f32 %v1484_v44, %v5605_v29 }
 0x361   : > { %v1896_v45 = vmul.f32 %v1891_v8, %v5475_v16 }
 0x362   : > { %v1993_v14 = vpop.permute.xlu0 %1992  ;;  %v2039_v19 = vpop.permute.xlu1 %2038 }
 0x363   : > { %1366 = vrot.lane.b32.xlu1 %v1363_v54, %s7058_s21  ;;  %v1949_v54 = vsel %vm1947_vm13, %v1944_v15, %v1946_v26  ;;  %v1904_v3 = vmul.f32 %v5347_v10, %v1896_v45  ;;  %v1996_v8 = vsel %vm1994_vm2, %v1991_v50, %v1993_v14 }
 0x365   : > { %v1954_v15 = vadd.f32 %v1949_v54, %v1904_v3  ;;  %v2142_v54 = vmul.f32 %v2137_v9, %v5478_v62 }
 0x366   : > { %v1989_v55 = vpop.permute.xlu0 %1988  ;;  %v2069_v51 = vpop.permute.xlu1 %2068 }
 0x367   : > { %1413 = vrot.lane.b32.xlu1 %v1409_v63, %s7059_s26  ;;  %v1995_v21 = vsel %vm1994_vm2, %v1989_v55, %v1991_v50  ;;  %v1905_v63 = vmul.f32 %v5347_v10, %v1897_v24  ;;  %v2001_v45 = vadd.f32 %v1996_v8, %v1954_v15 }
 0x369   : > { %v1955_v59 = vadd.f32 %v1946_v26, %v1905_v63  ;;  %v2141_v26 = vmul.f32 %v5452_v52, %v5475_v16  ;;  %v2143_v52 = vmul.f32 %v5447_v60, %v5475_v16 }
 0x36a   : > { %v2037_v40 = vpop.permute.xlu0 %2036  ;;  %v2111_v3 = vpop.permute.xlu1 %2110 }
 0x36b   : > { %1411 = vrot.lane.b32.xlu1 %v1408_v48, %s7059_s26  ;;  %v2000_v48 = vadd.f32 %v1995_v21, %v1953_v43  ;;  %v2041_v10 = vsel %vm1923_vm1, %v2037_v40, %v2039_v19  ;;  %v2002_v50 = vadd.f32 %v1993_v14, %v1955_v59  ;;  %v2149_v59 = vmul.f32 %v5419_v17, %v2142_v54  ;;  %s7138_s26 = smov 111  }
 0x36c   : > { %v2046_v0 = vadd.f32 %v2041_v10, %v2001_v45  ;;  %v2150_v9 = vmul.f32 %v5419_v17, %v2143_v52 }
 0x36d   : > { %v2047_v63 = vadd.f32 %v2039_v19, %v2002_v50 }
 0x36e   : > { %v2035_v47 = vpop.permute.xlu0 %2034  ;;  %v5775_v45 = vpop.permute.xlu1 %2189 }
 0x36f   : > { %v2040_v55 = vsel %vm1923_vm1, %v2035_v47, %v2037_v40  ;;  %1460 = vrot.lane.b32.xlu1 %v1455_v5, %s6999_s17  ;;  %v1499_v5 = vrot.slane %v1489_v20, 4  ;;  %v2076_v15 = vadd.f32 %v2069_v51, %v2047_v63 }
 0x370   : > { %v2045_v24 = vadd.f32 %v2040_v55, %v2000_v48  ;;  %v2148_v48 = vmul.f32 %v5419_v17, %v2141_v26 }
 0x372   : > { %v2067_v21 = vpop.permute.xlu0 %2066  ;;  %v5777_v50 = vpop.permute.xlu1 %2232 }
 0x373   : > { %v2070_v43 = vsel %vm1890_vm10, %v2067_v21, %v2069_v51  ;;  %1456 = vrot.lane.b32.xlu1 %v1453_v25, %s6999_s17  ;;  %v2074_v44 = vadd.f32 %v2067_v21, %v2045_v24  ;;  %vm841_vm10 = vcmask 900096  }
 0x374   : > { %v2075_v40 = vadd.f32 %v2070_v43, %v2046_v0 }
 0x376   : > { %v2109_v47 = vpop.permute.xlu0 %2108  ;;  %v5779_v60 = vpop.permute.xlu1 %2230 }
 0x377   : > { %v2115_v14 = vsel %vm2114_vm14, %v2109_v47, %v2111_v3  ;;  %v2120_v8 = vadd.f32 %v2109_v47, %v2074_v44  ;;  %1503 = vrot.lane.b32.xlu1 %v1499_v5, %s7005_s28 }
 0x378   : > { %v2121_v55 = vadd.f32 %v2115_v14, %v2075_v40 }
 0x379   : > { %v5767_v62 = vadd.f32 %v2148_v48, %v2120_v8 }
 0x37a   : > { %v2113_v19 = vpop.permute.xlu0 %2112  ;;  %v5769_v25 = vadd.f32 %v2149_v59, %v2121_v55 }
 0x37b   : > { %v2116_v20 = vsel %vm2114_vm14, %v2111_v3, %v2113_v19  ;;  %vm6928_vm14 = vcmask 908288   ;;  %v7062_v19 = vld [vmem:[#allocation57_spill] sm:$0xff] }
 0x37c   : > { %v2122_v10 = vadd.f32 %v2116_v20, %v2076_v15  ;;  %v5796_v44 = vsel %vm6928_vm14, %v5183_v4, %v5185_v35  ;;  %v7063_v20 = vld [vmem:[#allocation56_spill] sm:$0xff] }
 0x37d   : > { %7061 = vst [vmem:[#allocation14_spill] sm:$0xff] %v5796_v44  ;;  %v622_v52 = vmul.f32 %v5796_v44, %v4883_v37 }
 0x37e   : > { %v5773_v24 = vadd.f32 %v2150_v9, %v2122_v10  ;;  %v5781_v21 = vpop.permute.xlu0 %2187  ;;  %v675_v9 = vsel %vm673_vm5, %v7063_v20, %v7062_v19 }
 0x382   : > { %v5783_v43 = vpop.permute.xlu0 %2185 }
 0x386   : > { %v5787_v0 = vpop.permute.xlu0 %2234 }
 0x397   : > { %v2520_v16 = vpop.permute.xlu1 %2519  ;;  %v2530_v63 = vpop.permute.xlu0 %2529 }
 0x39b   : > { %v2522_v51 = vpop.permute.xlu1 %2521 }
 0x39c   : > { %v2523_v54 = vsel %vm888_vm15, %v2520_v16, %v2522_v51  ;;  %v2524_v5 = vsel %vm888_vm15, %v2522_v51, %v2520_v16  ;;  %v7064_v51 = vld [vmem:[#allocation44_spill] sm:$0xff] }
 0x39d   : > { %v2527_v14 = vmul.f32 %v2523_v54, %v5455_v30  ;;  %v2528_v8 = vmul.f32 %v2524_v5, %v5458_v13  ;;  %v7065_v30 = vld [vmem:[#allocation63_spill] sm:$0xff]  ;;  %v7067_v5 = vld [vmem:[#allocation33_spill] sm:$0xff] }
 0x39e   : > { %v7066_v54 = vld [vmem:[#allocation59_spill] sm:$0xff] }
 0x39f   : > { %v722_v13 = vsel %vm720_vm7, %v7066_v54, %v7065_v30 }
 0x3ac   : > { %v5785_v26 = vpop.permute.xlu1 %1194 }
 0x3b1   : > { %v5789_v17 = vpop.permute.xlu1 %1287 }
 0x3b5   : > { %v2532_v3 = vpop.permute.xlu1 %2531 }
 0x3b6   : > { %v2533_v40 = vsel %vm1209_vm0, %v2530_v63, %v2532_v3  ;;  %v2534_v47 = vsel %vm1209_vm0, %v2532_v3, %v2530_v63  ;;  %v630_v63 = vmul.f32 %v7064_v51, %v622_v52  ;;  %v623_v3 = vmul.f32 %v5185_v35, %v7067_v5  ;;  %v7069_v52 = vld [vmem:[#allocation58_spill] sm:$0xff] }
 0x3b7   : > { %v2537_v48 = vmul.f32 %v2533_v40, %v5461_v58  ;;  %v2538_v55 = vmul.f32 %v2534_v47, %v5464_v11  ;;  %v621_v47 = vmul.f32 %v5183_v4, %v7067_v5 }
 0x3b8   : > { %v680_v40 = vadd.f32 %v675_v9, %v630_v63  ;;  %v5843_v63 = vld [vmem:[%s6766_s5 + $0xc] sm:$0xf] }
 0x3b9   : > { %v2539_v59 = vadd.f32 %v2537_v48, %v2527_v14  ;;  %v2540_v15 = vadd.f32 %v2538_v55, %v2528_v8  ;;  %v1488_v14 = vmul.f32 %v5340_v1, %v5627_v7  ;;  %v7068_v8 = vld [vmem:[#allocation61_spill] sm:$0xff]  ;;  %v631_v1 = vmul.f32 %v7064_v51, %v623_v3 }
 0x3ba   : > { %v767_v48 = vsel %vm649_vm6, %v5361_v6, %v7068_v8 }
 0x3bb   : > { %v2543_v10 = vrot.slane %v2539_v59, 4  ;;  %v2544_v16 = vrot.slane %v2540_v15, 4  ;;  %v674_v59 = vsel %vm673_vm5, %v7069_v52, %v7063_v20  ;;  %v7070_v15 = vld [vmem:[#allocation62_spill] sm:$0xff]  ;;  %v7071_v20 = vld [vmem:[#allocation60_spill] sm:$0xff] }
 0x3bc   : > { %v796_v9 = vsel %vm6928_vm14, %v7070_v15, %v5387_v61  ;;  %vm935_vm14 = vcmask 777216  }
 0x3bd   : > { %v5814_v58 = vmax.f32 %v5595_v34, %v2543_v10  ;;  %v5817_v11 = vmax.f32 %v5598_v53, %v2544_v16  ;;  %v727_v53 = vadd.f32 %v722_v13, %v680_v40  ;;  %v629_v10 = vmul.f32 %v7064_v51, %v621_v47  ;;  %v7072_v47 = vld [vmem:[#allocation67_spill] sm:$0xff] }
 0x3be   : > { %v1498_v13 = vrot.slane %v1488_v14, 4  ;;  %v721_v40 = vsel %vm720_vm7, %v7071_v20, %v7066_v54  ;;  %v766_v51 = vsel %vm649_vm6, %v5379_v41, %v5361_v6  ;;  %v7077_v6 = vld [vmem:[#allocation75_spill] sm:$0xff] }
 0x3bf   : > { %v2565_v34 = vrot.slane %v5817_v11, 4  ;;  %v2564_v55 = vrot.slane %v5814_v58, 4  ;;  %v772_v16 = vadd.f32 %v767_v48, %v727_v53  ;;  %v679_v3 = vadd.f32 %v674_v59, %v629_v10  ;;  %v7073_v48 = vld [vmem:[#allocation65_spill] sm:$0xff]  ;;  %v7075_v59 = vld [vmem:[#allocation70_spill] sm:$0xff] }
 0x3c0   : > { %v889_v14 = vsel %vm888_vm15, %v7073_v48, %v7072_v47 }
 0x3c1   : > { %2568 = vrot.lane.b32.xlu0 %v2565_v34, %s7036_s24  ;;  %2566 = vrot.lane.b32.xlu1 %v2564_v55, %s7036_s24  ;;  %v842_v34 = vsel %vm841_vm10, %v5373_v33, %v5403_v31  ;;  %v681_v55 = vadd.f32 %v7062_v19, %v631_v1  ;;  %v801_v52 = vadd.f32 %v796_v9, %v772_v16  ;;  %v7074_v19 = vld [vmem:[#allocation73_spill] sm:$0xff]  ;;  %v7076_v16 = vld [vmem:[#allocation78_spill] sm:$0xff]  ;;  %s7153_s24 = sshll.u32 %s7155_s19, 5 }
 0x3c2   : > { %v726_v54 = vadd.f32 %v721_v40, %v679_v3  ;;  %v936_v9 = vsel %vm935_vm14, %v7075_v59, %v7074_v19  ;;  %v983_v41 = vsel %vm982_vm4, %v7077_v6, %v7076_v16 }
 0x3c3   : > { %v728_v53 = vadd.f32 %v7065_v30, %v681_v55  ;;  %v848_v20 = vadd.f32 %v842_v34, %v801_v52  ;;  %v7078_v30 = vld [vmem:[#allocation64_spill] sm:$0xff]  ;;  %v5877_v55 = vld [vmem:[%s6768_s7 + $0x8] sm:$0xff] }
 0x3c4   : > { %v771_v1 = vadd.f32 %v766_v51, %v726_v54  ;;  %v843_v34 = vsel %vm841_vm10, %v5403_v31, %v7078_v30  ;;  %7079 = vst [vmem:[#allocation21_spill] sm:$0xff] %v5877_v55  ;;  %v7080_v51 = vld [vmem:[#allocation66_spill] sm:$0xff]  ;;  %v7081_v31 = vld [vmem:[#allocation72_spill] sm:$0xff] }
 0x3c5   : > { %2702 = vperm.xlu0 %4119, %v5843_v63   ;;  %1501 = vrot.lane.b32.xlu1 %v1498_v13, %s7005_s28  ;;  %v895_v10 = vadd.f32 %v889_v14, %v848_v20  ;;  %v773_v13 = vadd.f32 %v7068_v8, %v728_v53  ;;  %v890_v8 = vsel %vm888_vm15, %v7072_v47, %v7080_v51  ;;  %v7082_v47 = vld [vmem:[#allocation68_spill] sm:$0xff]  ;;  %v7083_v20 = vld [vmem:[#allocation77_spill] sm:$0xff] }
 0x3c6   : > { %v800_v3 = vadd.f32 %v7070_v15, %v771_v1  ;;  %v937_v54 = vsel %vm935_vm14, %v7074_v19, %v7081_v31  ;;  %v2237_v51 = vsel %vm1994_vm2, %v5777_v50, %v5787_v0  ;;  %v6929_v31 = vmov 0.0  }
 0x3c7   : > { %v942_v40 = vadd.f32 %v936_v9, %v895_v10  ;;  %v984_v9 = vsel %vm982_vm4, %v7076_v16, %v7083_v20  ;;  %v5907_v10 = vpop.permute.xlu1 %1159  ;;  %1604 = vmatprep.mubr.f32.mxu0 %v6929_v31 }
 0x3c8   : > { %v847_v15 = vadd.f32 %v5373_v33, %v800_v3 }
 0x3c9   : > { %4124 = vset.pattern.permute.xlu0 %v7051_v38  ;;  %2667 = vperm.xlu1 %4122, %v5843_v63   ;;  %v802_v38 = vadd.f32 %v5387_v61, %v773_v13  ;;  %v989_v52 = vadd.f32 %v983_v41, %v942_v40  ;;  %v5894_v61 = vld [vmem:[%s6768_s7] sm:$0xff]  ;;  %v2191_v13 = vsel %vm1947_vm13, %v5783_v43, %v5781_v21 }
 0x3ca   : > { %2781 = vperm.xlu0 %4124, %v5843_v63   ;;  %v894_v19 = vadd.f32 %v7073_v48, %v847_v15  ;;  %v2196_v40 = vadd.f32 %v2191_v13, %v5767_v62 }
 0x3cb   : > { %v849_v14 = vadd.f32 %v843_v34, %v802_v38  ;;  %v997_v53 = vadd.f32 %v7082_v47, %v989_v52  ;;  %v5921_v48 = vpop.permute.xlu1 %1205  ;;  %v2192_v38 = vsel %vm1947_vm13, %v5781_v21, %v5775_v45  ;;  %v5947_v52 = vpop.permute.xlu0 %1148  ;;  %vm2647_vm13 = vcmask 64512  }
 0x3cc   : > { %v941_v33 = vadd.f32 %v7075_v59, %v894_v19  ;;  %v7085_v59 = vmov 0  }
 0x3cd   : > { %4123 = vset.pattern.permute.xlu1 %v7048_v12  ;;  %v896_v12 = vadd.f32 %v890_v8, %v849_v14  ;;  %v2197_v8 = vadd.f32 %v2192_v38, %v5769_v25 }
 0x3ce   : > { %1526 = vrot.lane.b32.xlu0 %v5877_v55, %s6989_s29  ;;  %2747 = vperm.xlu1 %4123, %v5843_v63   ;;  %v988_v16 = vadd.f32 %v7077_v6, %v941_v33 }
 0x3cf   : > { %4126 = vset.pattern.permute.xlu0 %v7057_v49  ;;  %v943_v1 = vadd.f32 %v937_v54, %v896_v12  ;;  %v5935_v3 = vpop.permute.xlu1 %1322  ;;  %v5956_v21 = vpop.permute.xlu0 %1161 }
 0x3d0   : > { %v996_v6 = vadd.f32 %v7082_v47, %v988_v16 }
 0x3d1   : > { %v990_v49 = vadd.f32 %v984_v9, %v943_v1 }
 0x3d2   : > { %1622 = vrot.lane.b32.xlu0 %v997_v53, %s7084_s22  ;;  %1524 = vrot.lane.b32.xlu1 %v5894_v61, %s6989_s29  ;;  %s7087_s29 = smov 68  }
 0x3d3   : > { %4125 = vset.pattern.permute.xlu1 %v7045_v36  ;;  %v998_v41 = vadd.f32 %v7082_v47, %v990_v49  ;;  %v2198_v36 = vadd.f32 %v5775_v45, %v5773_v24  ;;  %v7086_v24 = vmov 8   ;;  %v2242_v45 = vadd.f32 %v2237_v51, %v2197_v8  ;;  %v5967_v25 = vpop.permute.xlu0 %1207 }
 0x3d5   : > { %v2243_v30 = vadd.f32 %v5787_v0, %v2198_v36  ;;  %v2250_v54 = vadd.f32 %v5668_v32, %v2242_v45 }
 0x3d6   : > { %2861 = vperm.xlu0 %4126, %v5843_v63   ;;  %2816 = vperm.xlu1 %4125, %v5843_v63  }
 0x3d7   : > { %v2251_v34 = vadd.f32 %v5668_v32, %v2243_v30  ;;  %v5971_v15 = vpop.permute.xlu0 %1157 }
 0x3da   : > { %4127 = vset.pattern.permute.xlu0 %v7060_v39  ;;  %1624 = vrot.lane.b32.xlu1 %v998_v41, %s7084_s22  ;;  %v2236_v39 = vsel %vm1994_vm2, %v5779_v60, %v5777_v50  ;;  %v3945_v60 = vld [vmem:[%s6767_s6 + $0x4] sm:$0xf]  ;;  %v3977_v50 = vld [vmem:[%s6767_s6 + $0xc] sm:$0xf] }
 0x3db   : > { %2895 = vperm.xlu0 %4127, %v5843_v63   ;;  %4130 = vset.pattern.permute.xlu1 %v7085_v59  ;;  %v2241_v43 = vadd.f32 %v2236_v39, %v2196_v40  ;;  %v3975_v40 = vld [vmem:[%s6775_s14 + $0x5] ss:$8 sm:$0x3] }
 0x3dc   : > { %v2576_v30 = vsub.f32 1.0, %v3975_v40 }
 0x3dd   : > { %v2249_v62 = vadd.f32 %v5668_v32, %v2241_v43  ;;  %v7090_v43 = vld [vmem:[#allocation31_spill] sm:$0xff] }
 0x3de   : > { %1620 = vrot.lane.b32.xlu1 %v996_v6, %s7084_s22 }
 0x3df   : > { %4128 = vset.pattern.permute.xlu0 %v7086_v24 }
 0x3e0   : > { %1492 = vperm.xlu0 %4128, %v5615_v22   ;;  %v5949_v22 = vpop.permute.xlu1 %1203 }
 0x3e2   : > { %2263 = vrot.lane.b32.xlu1 %v2251_v34, %s7087_s29  ;;  %v2555_v34 = vrot.slane %v3975_v40, %v7090_v43 }
 0x3e4   : > { %2930 = vperm.xlu0 %4128, %v5843_v63   ;;  %v5958_v14 = vpop.permute.xlu1 %1254 }
 0x3e6   : > { %2259 = vrot.lane.b32.xlu1 %v2249_v62, %s7087_s29  ;;  %v7091_v62 = vld [vmem:[#allocation2_spill] sm:$0xff] }
 0x3e7   : > { %v2559_v38 = vrot.slane %v3975_v40, %v7091_v62  ;;  %v2585_v51 = vrot.slane %v2576_v30, %v7091_v62  ;;  %v7093_v62 = vld [vmem:[#allocation71_spill] sm:$0xff] }
 0x3e8   : > { %4129 = vset.pattern.permute.xlu0 %v7085_v59  ;;  %v5969_v0 = vpop.permute.xlu1 %1250 }
 0x3e9   : > { %1517 = vperm.xlu0 %4129, %v3945_v60   ;;  %v2581_v60 = vrot.slane %v2576_v30, %v7090_v43  ;;  %v7092_v30 = vld [vmem:[#allocation69_spill] sm:$0xff] }
 0x3ec   : > { %v5973_v12 = vpop.permute.xlu1 %1298 }
 0x3ed   : > { %2632 = vperm.xlu0 %4129, %v5843_v63   ;;  %v5975_v63 = vpop.permute.xlu0 %1252 }
 0x3f0   : > { %v5977_v47 = vpop.permute.xlu1 %1402 }
 0x3f1   : > { %2261 = vrot.lane.b32.xlu0 %v2250_v54, %s7087_s29  ;;  %v5979_v32 = vpop.permute.xlu0 %1357 }
 0x3f4   : > { %v5981_v53 = vpop.permute.xlu1 %1447 }
 0x3f5   : > { %2955 = vperm.xlu0 %4129, %v3977_v50   ;;  %v5983_v20 = vpop.permute.xlu0 %1241 }
 0x3f8   : > { %v5985_v9 = vpop.permute.xlu1 %1370 }
 0x3f9   : > { %v5987_v1 = vpop.permute.xlu0 %1300 }
 0x3fc   : > { %v5989_v19 = vpop.permute.xlu1 %1366 }
 0x3fd   : > { %v5991_v49 = vpop.permute.xlu0 %1296 }
 0x400   : > { %v5993_v33 = vpop.permute.xlu1 %1413 }
 0x401   : > { %v5995_v16 = vpop.permute.xlu0 %1368 }
 0x404   : > { %v5997_v41 = vpop.permute.xlu1 %1411 }
 0x405   : > { %v5999_v13 = vpop.permute.xlu0 %1415 }
 0x408   : > { %v6001_v36 = vpop.permute.xlu1 %1460 }
 0x409   : > { %v6003_v59 = vpop.permute.xlu0 %1458 }
 0x40c   : > { %v6005_v6 = vpop.permute.xlu1 %1456 }
 0x40d   : > { %v6010_v39 = vpop.permute.xlu0 %1505 }
 0x40e   : > { %7088 = vst [vmem:[#allocation20_spill] sm:$0xff] %v6010_v39 }
 0x410   : > { %v6012_v24 = vpop.permute.xlu1 %1503 }
 0x411   : > { %7089 = vst [vmem:[#allocation11_spill] sm:$0xff] %v6012_v24  ;;  %v2623_v24 = vsel %vm1994_vm2, %v7093_v62, %v7092_v30 }
 0x433   : > { %v2567_v8 = vpop.permute.xlu1 %2566  ;;  %v2569_v45 = vpop.permute.xlu0 %2568 }
 0x434   : > { %v2570_v54 = vsel %vm1923_vm1, %v2567_v8, %v2569_v45  ;;  %v2571_v50 = vsel %vm1923_vm1, %v2569_v45, %v2567_v8  ;;  %vm7101_vm1 = vcmask 556032  }
 0x435   : > { %v2574_v31 = vmul.f32 %v2570_v54, %v2555_v34  ;;  %v2575_v4 = vmul.f32 %v2571_v50, %v2559_v38  ;;  %v2588_v35 = vmul.f32 %v2581_v60, %v2571_v50  ;;  %v2589_v44 = vmul.f32 %v2585_v51, %v2570_v54 }
 0x437   : > { %v2590_v5 = vadd.f32 %v2588_v35, %v2574_v31  ;;  %v2591_v37 = vadd.f32 %v2589_v44, %v2575_v4 }
 0x439   : > { %v2594_v55 = vrot.slane %v2590_v5, 4  ;;  %v2595_v39 = vrot.slane %v2591_v37, 4  ;;  %v7094_v37 = vld [vmem:[#allocation74_spill] sm:$0xff] }
 0x43b   : > { %v6021_v40 = vmax.f32 %v5814_v58, %v2594_v55  ;;  %v6024_v43 = vmax.f32 %v5817_v11, %v2595_v39  ;;  %v6039_v11 = vld [vmem:[%s6774_s13 + $0x60] sm:$0xff]  ;;  %v6046_v55 = vld [vmem:[%s6774_s13 + $0x68] sm:$0xff]  ;;  %v7095_v39 = vld [vmem:[#allocation76_spill] sm:$0xff] }
 0x43c   : > { %v2773_v5 = vrot.slane %v6039_v11, %v5117_v2  ;;  %v2777_v31 = vrot.slane %v6046_v55, %v5117_v2 }
 0x43d   : > { %v2628_v8 = vmul.f32 %v2623_v24, %v6024_v43  ;;  %v2629_v34 = vmul.f32 %v7092_v30, %v6021_v40  ;;  %v2700_v44 = vmul.f32 %v7094_v37, %v6024_v43  ;;  %v2627_v58 = vmul.f32 %v7093_v62, %v6021_v40 }
 0x43e   : > { %v2694_v24 = vsel %vm2647_vm13, %v7095_v39, %v7094_v37  ;;  %v2739_v62 = vsel %vm1994_vm2, %v5660_v28, %v5579_v57  ;;  %v2778_v50 = vmul.f32 %v2773_v5, %v6021_v40  ;;  %v2779_v30 = vmul.f32 %v2777_v31, %v6024_v43  ;;  %v4425_v5 = vld [vmem:[%s6774_s13 + $0x20] sm:$0xff] }
 0x43f   : > { %v2639_v35 = vrot.slane %v2628_v8, 4  ;;  %v2640_v4 = vrot.slane %v2629_v34, 4  ;;  %v2710_v38 = vrot.slane %v2700_v44, 4  ;;  %v2638_v60 = vrot.slane %v2627_v58, 4  ;;  %v6066_v8 = vpop.permute.xlu1 %1501 }
 0x440   : > { %v2744_v51 = vmul.f32 %v2739_v62, %v6021_v40  ;;  %v2699_v45 = vmul.f32 %v2694_v24, %v6021_v40  ;;  %v2698_v37 = vmul.f32 %v7095_v39, %v6024_v43  ;;  %v2786_v44 = vrot.slane %v2778_v50, 4 }
 0x441   : > { %2643 = vrot.lane.b32.xlu0 %v2639_v35, %s4472_s16  ;;  %2645 = vrot.lane.b32.xlu1 %v2640_v4, %s4472_s16  ;;  %v2859_v4 = vmul.f32 %v5697_v23, %v6021_v40  ;;  %v2787_v58 = vrot.slane %v2779_v30, 4  ;;  %v1314_v31 = vrot.slane %v4425_v5, %v5117_v2  ;;  %v2745_v50 = vmul.f32 %v5579_v57, %v6024_v43  ;;  %v4426_v30 = vld [vmem:[%s6774_s13 + $0x28] sm:$0xff] }
 0x442   : > { %v2754_v34 = vrot.slane %v2744_v51, 4  ;;  %v2709_v35 = vrot.slane %v2699_v45, 4  ;;  %v2708_v51 = vrot.slane %v2698_v37, 4  ;;  %v2928_v45 = vmul.f32 %v5707_v56, %v6024_v43 }
 0x443   : > { %v2869_v39 = vrot.slane %v2859_v4, 4  ;;  %v1210_v4 = vsel %vm1209_vm0, %v5949_v22, %v5921_v48  ;;  %v2755_v37 = vrot.slane %v2745_v50, 4 }
 0x444   : > { %v6060_v54 = vpop.permute.xlu0 %2702  ;;  %v2938_v22 = vrot.slane %v2928_v45, 4 }
 0x445   : > { %2715 = vrot.lane.b32.xlu0 %v2710_v38, %s4470_s25  ;;  %2641 = vrot.lane.b32.xlu1 %v2638_v60, %s4472_s16 }
 0x448   : > { %v6078_v62 = vpop.permute.xlu1 %2667 }
 0x449   : > { %2758 = vrot.lane.b32.xlu0 %v2754_v34, %s4472_s16  ;;  %2713 = vrot.lane.b32.xlu1 %v2709_v35, %s4470_s25  ;;  %v2782_v24 = vpop.permute.xlu0 %2781  ;;  %v1318_v34 = vrot.slane %v4426_v30, %v5117_v2  ;;  %v1211_v35 = vsel %vm1209_vm0, %v5921_v48, %v5967_v25  ;;  %v1164_v2 = vsel %vm1163_vm11, %v5971_v15, %v5907_v10 }
 0x44a   : > { %v6080_v38 = vmul.f32 %v2786_v44, %v2782_v24  ;;  %v6082_v60 = vmul.f32 %v2787_v58, %v2782_v24  ;;  %v1319_v44 = vmul.f32 %v1314_v31, %v5627_v7  ;;  %v1165_v25 = vsel %vm1163_vm11, %v5907_v10, %v5956_v21  ;;  %v7096_v31 = vld [vmem:[#allocation5_spill] sm:$0xff] }
 0x44b   : > { %v1258_v7 = vsel %vm1256_vm9, %v5975_v63, %v5958_v14  ;;  %v1257_v48 = vsel %vm1256_vm9, %v5969_v0, %v5975_v63  ;;  %v2926_v58 = vmul.f32 %v5703_v18, %v6024_v43  ;;  %v2743_v15 = vmul.f32 %v5660_v28, %v6024_v43  ;;  %vm7103_vm9 = vmmov %vm7101_vm1 }
 0x44c   : > { %v2808_v10 = vsel %vm2647_vm13, %v5677_v46, %v5684_v27  ;;  %v1215_v21 = vmul.f32 %v1211_v35, %v5785_v26  ;;  %v1214_v14 = vmul.f32 %v1210_v4, %v5785_v26  ;;  %v2887_v0 = vrot.slane %v6039_v11, %v7096_v31 }
 0x44d   : > { %2874 = vrot.lane.b32.xlu0 %v2869_v39, %s4472_s16  ;;  %2711 = vrot.lane.b32.xlu1 %v2708_v51, %s4470_s25  ;;  %v6101_v57 = vpop.permute.xlu0 %1526  ;;  %v6124_v5 = vpop.permute.xlu1 %2747  ;;  %v1303_v63 = vsel %vm1302_vm8, %v5991_v49, %v5973_v12  ;;  %v1304_v28 = vsel %vm1302_vm8, %v5973_v12, %v5987_v1  ;;  %v2891_v26 = vrot.slane %v6046_v55, %v7096_v31  ;;  %v2936_v12 = vrot.slane %v2926_v58, 4 }
 0x44e   : > { %v1168_v39 = vmul.f32 %v1164_v2, %v5947_v52  ;;  %v1169_v51 = vmul.f32 %v1165_v25, %v5947_v52  ;;  %v1262_v45 = vmul.f32 %v1258_v7, %v5983_v20  ;;  %v1261_v49 = vmul.f32 %v1257_v48, %v5983_v20 }
 0x44f   : > { %v1320_v50 = vmul.f32 %v1318_v34, %v5605_v29  ;;  %v2753_v1 = vrot.slane %v2743_v15, 4  ;;  %v2813_v30 = vmul.f32 %v2808_v10, %v6024_v43  ;;  %v2892_v20 = vmul.f32 %v2887_v0, %v6024_v43 }
 0x450   : > { %v1217_v35 = vadd.f32 %v1215_v21, %v1169_v51  ;;  %v1216_v4 = vadd.f32 %v1214_v14, %v1168_v39  ;;  %v2893_v29 = vmul.f32 %v2891_v26, %v6021_v40  ;;  %v2814_v48 = vmul.f32 %v5684_v27, %v6021_v40 }
 0x451   : > { %2943 = vrot.lane.b32.xlu0 %v2938_v22, %s4470_s25  ;;  %2760 = vrot.lane.b32.xlu1 %v2755_v37, %s4472_s16  ;;  %v6136_v24 = vpop.permute.xlu0 %1622  ;;  %v1307_v22 = vmul.f32 %v1303_v63, %v5789_v17  ;;  %v1308_v37 = vmul.f32 %v1304_v28, %v5789_v17  ;;  %v6154_v25 = vpop.permute.xlu1 %1524  ;;  %v2823_v7 = vrot.slane %v2813_v30, 4  ;;  %v1327_v58 = vrot.slane %v1319_v44, 4  ;;  %v3055_v63 = vld [vmem:[%s6769_s8] sm:$0xff] }
 0x452   : > { %v1264_v34 = vadd.f32 %v1262_v45, %v1217_v35  ;;  %v1263_v2 = vadd.f32 %v1261_v49, %v1216_v4  ;;  %v1328_v17 = vrot.slane %v1320_v50, 4  ;;  %v1373_v21 = vsel %vm720_vm7, %v5995_v16, %v5985_v9 }
 0x453   : > { %v1372_v14 = vsel %vm720_vm7, %v5989_v19, %v5995_v16  ;;  %v2900_v31 = vrot.slane %v2892_v20, 4  ;;  %v2901_v27 = vrot.slane %v2893_v29, 4  ;;  %v1331_v44 = vmul.f32 %v1327_v58, %v5935_v3 }
 0x454   : > { %v1309_v15 = vadd.f32 %v1307_v22, %v1263_v2  ;;  %v1310_v10 = vadd.f32 %v1308_v37, %v1264_v34  ;;  %v1332_v0 = vmul.f32 %v1328_v17, %v5935_v3  ;;  %v1418_v9 = vsel %vm1232_vm3, %v5993_v33, %v5999_v13  ;;  %v7098_v34 = vld [vmem:[#allocation20_spill] sm:$0xff] }
 0x455   : > { %2939 = vrot.lane.b32.xlu0 %v2936_v12, %s4470_s25  ;;  %2756 = vrot.lane.b32.xlu1 %v2753_v1, %s4472_s16  ;;  %v6150_v52 = vpop.permute.xlu0 %2861  ;;  %v1417_v19 = vsel %vm1232_vm3, %v5997_v41, %v5993_v33  ;;  %v2824_v39 = vrot.slane %v2814_v48, 4  ;;  %v2812_v3 = vmul.f32 %v5677_v46, %v6021_v40  ;;  %v1377_v51 = vmul.f32 %v1373_v21, %v5979_v32  ;;  %v6186_v45 = vpop.permute.xlu1 %2816 }
 0x456   : > { %v1376_v13 = vmul.f32 %v1372_v14, %v5979_v32  ;;  %v2853_v33 = vsel %vm1994_vm2, %v5694_v42, %v5697_v23  ;;  %v1334_v41 = vadd.f32 %v1332_v0, %v1310_v10  ;;  %v1333_v49 = vadd.f32 %v1331_v44, %v1309_v15  ;;  %v3099_v23 = vld [vmem:[%s6764_s3] sm:$0xff] }
 0x457   : > { %v1422_v50 = vmul.f32 %v1418_v9, %v5977_v47  ;;  %v1421_v12 = vmul.f32 %v1417_v19, %v5977_v47  ;;  %v1463_v46 = vsel %vm888_vm15, %v6003_v59, %v6001_v36  ;;  %v1462_v32 = vsel %vm888_vm15, %v6005_v6, %v6003_v59  ;;  %v7097_v59 = vld [vmem:[#allocation11_spill] sm:$0xff] }
 0x458   : > { %v2822_v30 = vrot.slane %v2812_v3, 4  ;;  %v2858_v35 = vmul.f32 %v2853_v33, %v6024_v43  ;;  %v1379_v4 = vadd.f32 %v1377_v51, %v1334_v41  ;;  %v1378_v22 = vadd.f32 %v1376_v13, %v1333_v49  ;;  %v7104_v33 = vld [vmem:[#allocation21_spill] sm:$0xff]  ;;  %v3102_v41 = vld [vmem:[%s6765_s4 + $0x8] sm:$0xff] }
 0x459   : > { %2960 = vrot.lane.b32.xlu0 %v5894_v61, %s4475_s30  ;;  %2827 = vrot.lane.b32.xlu1 %v2823_v7, %s4470_s25  ;;  %v1467_v47 = vmul.f32 %v1463_v46, %v5981_v53  ;;  %v1466_v37 = vmul.f32 %v1462_v32, %v5981_v53  ;;  %v1507_v6 = vsel %vm982_vm4, %v6066_v8, %v7097_v59  ;;  %v1625_v29 = vpop.permute.xlu1 %1624  ;;  %v3101_v7 = vld [vmem:[%s6765_s4] sm:$0xff]  ;;  %vm1533_vm8 = vcmask 1043456  }
 0x45a   : > { %v2896_v16 = vpop.permute.xlu0 %2895  ;;  %v1424_v36 = vadd.f32 %v1422_v50, %v1379_v4  ;;  %v1423_v20 = vadd.f32 %v1421_v12, %v1378_v22  ;;  %v1508_v2 = vsel %vm982_vm4, %v7097_v59, %v7098_v34  ;;  %v2868_v17 = vrot.slane %v2858_v35, 4  ;;  %v7107_v12 = vld [vmem:[#allocation2_spill] sm:$0xff] }
 0x45b   : > { %v6178_v28 = vmul.f32 %v2900_v31, %v2896_v16  ;;  %v6180_v26 = vmul.f32 %v2901_v27, %v2896_v16  ;;  %v2857_v15 = vmul.f32 %v5694_v42, %v6021_v40  ;;  %v2922_v8 = vsel %vm2647_vm13, %v5703_v18, %v5707_v56 }
 0x45c   : > { %v1469_v10 = vadd.f32 %v1467_v47, %v1424_v36  ;;  %v1468_v21 = vadd.f32 %v1466_v37, %v1423_v20  ;;  %v2927_v44 = vmul.f32 %v2922_v8, %v6021_v40  ;;  %v1627_v18 = vsel %vm958_vm12, %v6136_v24, %v1625_v29 }
 0x45d   : > { %3059 = vperm.xlu0 %4129, %v3055_v63   ;;  %2829 = vrot.lane.b32.xlu1 %v2824_v39, %s4470_s25  ;;  %v2867_v31 = vrot.slane %v2857_v15, 4  ;;  %v1621_v0 = vpop.permute.xlu1 %1620  ;;  %vm7099_vm11 = vcmask 31744   ;;  %v7100_v3 = vmov 0.0   ;;  %v2663_v46 = vrot.slane %v6046_v55, %v7107_v12 }
 0x45e   : > { %v2937_v16 = vrot.slane %v2927_v44, 4  ;;  %v1626_v56 = vsel %vm958_vm12, %v1621_v0, %v6136_v24  ;;  %vm7102_vm3 = vmmov %vm7099_vm11 }
 0x45f   : > { %v1493_v1 = vpop.permute.xlu0 %1492 }
 0x460   : > { %v1511_v48 = vmul.f32 %v1507_v6, %v1493_v1  ;;  %v1512_v53 = vmul.f32 %v1508_v2, %v1493_v1  ;;  %v2659_v1 = vrot.slane %v6039_v11, %v7107_v12 }
 0x461   : > { %3167 = vperm.xlu0 %4129, %v3099_v23   ;;  %2825 = vrot.lane.b32.xlu1 %v2822_v30, %s4470_s25  ;;  %v2264_v39 = vpop.permute.xlu1 %2263  ;;  %v2665_v30 = vmul.f32 %v2663_v46, %v6021_v40 }
 0x462   : > { %v1513_v14 = vadd.f32 %v1511_v48, %v1468_v21  ;;  %v1514_v27 = vadd.f32 %v1512_v53, %v1469_v10  ;;  %v2664_v37 = vmul.f32 %v2659_v1, %v6024_v43 }
 0x463   : > { %v6216_v58 = vpop.permute.xlu0 %2930  ;;  %v2673_v36 = vrot.slane %v2665_v30, 4 }
 0x464   : > { %v2672_v40 = vrot.slane %v2664_v37, 4 }
 0x465   : > { %3181 = vperm.xlu0 %4129, %v3101_v7   ;;  %2872 = vrot.lane.b32.xlu1 %v2868_v17, %s4472_s16  ;;  %v2260_v24 = vpop.permute.xlu1 %2259  ;;  %v2677_v6 = vmul.f32 %v2673_v36, %v6078_v62 }
 0x466   : > { %v2676_v43 = vmul.f32 %v2672_v40, %v6078_v62 }
 0x468   : > { %v1518_v9 = vpop.permute.xlu0 %1517 }
 0x469   : > { %v1520_v19 = vadd.f32 %v1518_v9, %v1513_v14  ;;  %2870 = vrot.lane.b32.xlu1 %v2867_v31, %s4472_s16  ;;  %v1521_v42 = vadd.f32 %v1518_v9, %v1514_v27  ;;  %s7135_s16 = smov 112  }
 0x46b   : > { %3952 = vmatprep.subr.msk.mxu0 %vm1533_vm8, %v1521_v42 }
 0x46c   : > { %3953 = vmatpush1.msk.msra.mxu0 %vm1533_vm8, %v1520_v19  ;;  %v2633_v63 = vpop.permute.xlu0 %2632 }
 0x46d   : > { %2941 = vrot.lane.b32.xlu1 %v2937_v16, %s4470_s25  ;;  %3954 = vmatmul.mubr.msk.f32.vlgmr.msra.gmra.mrb[0].mxu0 %vm7099_vm11, %v6154_v25  ;;  %vm7105_vm11 = vmmov %vm7102_vm3 }
 0x46e   : > { %3956 = vmatprep.subr.msk.mxu0 %vm1533_vm8, %v1627_v18  ;;  %1610 = vmatprep.mubr.f32.mxu0 %v7100_v3 }
 0x46f   : > { %3957 = vmatpush1.msk.msra.mxu0 %vm1533_vm8, %v1626_v56 }
 0x470   : > { %v2262_v51 = vpop.permute.xlu0 %2261 }
 0x471   : > { %v2266_v13 = vsel %vm7101_vm1, %v2262_v51, %v2264_v39  ;;  %2252 = vrot.lane.b32.xlu1 %v5894_v61, %s4470_s25  ;;  %3955 = vmatmul.mubr.msk.f32.gmra.mrb[2].mxu0 %vm7102_vm3, %v6101_v57  ;;  %v2265_v25 = vsel %vm7103_vm9, %v2260_v24, %v2262_v51  ;;  %vm7106_vm1 = vmmov %vm7102_vm3  ;;  %v3056_v57 = vld [vmem:[%s6769_s8 + $0x8] sm:$0xff] }
 0x472   : > { %3970 = vmatprep.subr.msk.mxu0 %vm1533_vm8, %v2266_v13  ;;  %1700 = vmatprep.mubr.f32.mxu0 %v7100_v3  ;;  %vm7110_vm3 = vmmov %vm7106_vm1 }
 0x473   : > { %vm7111_vm9 = vmmov %vm7106_vm1 }
 0x474   : > { %v6266_v49 = vpop.permute.xlu0 %2955 }
 0x475   : > { %2254 = vrot.lane.b32.xlu1 %v7104_v33, %s4470_s25  ;;  %3958 = vmatmul.mubr.msk.f32.vlgmr.msra.gmra.mrb[0].mxu0 %vm7105_vm11, %v5894_v61  ;;  %v3100_v61 = vld [vmem:[%s6764_s3 + $0x8] sm:$0xff] }
 0x476   : > { %3971 = vmatpush1.msk.msra.mxu0 %vm1533_vm8, %v2265_v25  ;;  %1706 = vmatprep.mubr.f32.mxu0 %v7100_v3 }
 0x479   : > { %2962 = vrot.lane.b32.xlu1 %v7104_v33, %s4475_s30  ;;  %3959 = vmatmul.mubr.msk.f32.gmra.mrb[2].mxu0 %vm7106_vm1, %v7104_v33  ;;  %s7127_s30 = smov 127  }
 0x47a   : > { %2339 = vmatprep.mubr.f32.mxu0 %v7100_v3 }
 0x47d   : > { %3064 = vperm.xlu1 %4130, %v3056_v57  }
 0x481   : > { %3172 = vperm.xlu1 %4130, %v3100_v61  }
 0x485   : > { %3186 = vperm.xlu1 %4130, %v3102_v41  }
 0x4b3   : > { %v2646_v50 = vpop.permute.xlu1 %2645  ;;  %v2644_v32 = vpop.permute.xlu0 %2643 }
 0x4b4   : > { %v2649_v4 = vsel %vm2647_vm13, %v2644_v32, %v2646_v50 }
 0x4b5   : > { %v2653_v20 = vmul.f32 %v2649_v4, %v2633_v63 }
 0x4b7   : > { %v2642_v23 = vpop.permute.xlu1 %2641  ;;  %v2716_v22 = vpop.permute.xlu0 %2715  ;;  %v2679_v34 = vadd.f32 %v2677_v6, %v2653_v20 }
 0x4b8   : > { %v2648_v55 = vsel %vm2647_vm13, %v2642_v23, %v2644_v32 }
 0x4b9   : > { %v2652_v2 = vmul.f32 %v2648_v55, %v2633_v63 }
 0x4bb   : > { %v2714_v35 = vpop.permute.xlu1 %2713  ;;  %v2759_v7 = vpop.permute.xlu0 %2758  ;;  %v2678_v21 = vadd.f32 %v2676_v43, %v2652_v2 }
 0x4bc   : > { %v2718_v47 = vsel %vm1994_vm2, %v2714_v35, %v2716_v22 }
 0x4bd   : > { %v2722_v29 = vmul.f32 %v2718_v47, %v6060_v54 }
 0x4bf   : > { %v2712_v59 = vpop.permute.xlu1 %2711  ;;  %v2724_v17 = vadd.f32 %v2722_v29, %v2679_v34 }
 0x4c0   : > { %v2717_v11 = vsel %vm1994_vm2, %v2712_v59, %v2714_v35 }
 0x4c1   : > { %v2721_v15 = vmul.f32 %v2717_v11, %v6060_v54  ;;  %v2875_v54 = vpop.permute.xlu0 %2874 }
 0x4c3   : > { %v2761_v48 = vpop.permute.xlu1 %2760  ;;  %v2723_v27 = vadd.f32 %v2721_v15, %v2678_v21 }
 0x4c4   : > { %v2763_v53 = vsel %vm2647_vm13, %v2759_v7, %v2761_v48 }
 0x4c5   : > { %v2767_v10 = vmul.f32 %v2763_v53, %v6124_v5  ;;  %v2944_v13 = vpop.permute.xlu0 %2943 }
 0x4c7   : > { %v2769_v8 = vadd.f32 %v2767_v10, %v2724_v17  ;;  %v2757_v14 = vpop.permute.xlu1 %2756 }
 0x4c8   : > { %v2762_v31 = vsel %vm2647_vm13, %v2757_v14, %v2759_v7 }
 0x4c9   : > { %v2766_v44 = vmul.f32 %v2762_v31, %v6124_v5  ;;  %v2793_v0 = vadd.f32 %v6082_v60, %v2769_v8  ;;  %v2940_v50 = vpop.permute.xlu0 %2939 }
 0x4cb   : > { %v2768_v9 = vadd.f32 %v2766_v44, %v2723_v27  ;;  %v2828_v19 = vpop.permute.xlu1 %2827 }
 0x4cd   : > { %v2792_v42 = vadd.f32 %v6080_v38, %v2768_v9 }
 0x4cf   : > { %v2830_v62 = vpop.permute.xlu1 %2829 }
 0x4d0   : > { %v2832_v16 = vsel %vm1994_vm2, %v2828_v19, %v2830_v62 }
 0x4d1   : > { %v2836_v18 = vmul.f32 %v2832_v16, %v6186_v45 }
 0x4d3   : > { %v2826_v63 = vpop.permute.xlu1 %2825  ;;  %v2838_v5 = vadd.f32 %v2836_v18, %v2793_v0 }
 0x4d4   : > { %v2831_v56 = vsel %vm1994_vm2, %v2826_v63, %v2828_v19 }
 0x4d5   : > { %v2835_v60 = vmul.f32 %v2831_v56, %v6186_v45  ;;  %v7114_v56 = vld [vmem:[#allocation3_spill] sm:$0xff] }
 0x4d7   : > { %v2873_v39 = vpop.permute.xlu1 %2872  ;;  %v2837_v57 = vadd.f32 %v2835_v60, %v2792_v42  ;;  %v7112_v42 = vld [vmem:[#allocation32_spill] sm:$0xff] }
 0x4d8   : > { %v2877_v51 = vsel %vm2647_vm13, %v2873_v39, %v2875_v54  ;;  %v7113_v54 = vld [vmem:[#allocation33_spill] sm:$0xff] }
 0x4d9   : > { %v2881_v24 = vmul.f32 %v2877_v51, %v6150_v52  ;;  %v7115_v51 = vld [vmem:[#allocation4_spill] sm:$0xff] }
 0x4db   : > { %v2883_v25 = vadd.f32 %v2881_v24, %v2838_v5  ;;  %v2871_v38 = vpop.permute.xlu1 %2870  ;;  %v4427_v5 = vld [vmem:[%s4613_s23] sm:$0xff]  ;;  %v4428_v24 = vld [vmem:[%s4613_s23 + $0x10] sm:$0xff] }
 0x4dc   : > { %v2876_v33 = vsel %vm2647_vm13, %v2871_v38, %v2873_v39  ;;  %vm7108_vm13 = vmmov %vm7106_vm1  ;;  %v4429_v38 = vld [vmem:[%s4613_s23 + $0x8] sm:$0xff] }
 0x4dd   : > { %v2880_v61 = vmul.f32 %v2876_v33, %v6150_v52  ;;  %v2907_v41 = vadd.f32 %v6180_v26, %v2883_v25 }
 0x4df   : > { %v2882_v12 = vadd.f32 %v2880_v61, %v2837_v57  ;;  %v2942_v46 = vpop.permute.xlu1 %2941  ;;  %v4430_v57 = vld [vmem:[%s4613_s23 + $0x18] sm:$0xff]  ;;  %s7124_s23 = smov 110  }
 0x4e0   : > { %v2945_v32 = vsel %vm1994_vm2, %v2940_v50, %v2942_v46  ;;  %v2946_v23 = vsel %vm1994_vm2, %v2942_v46, %v2944_v13  ;;  %vm7109_vm2 = vmmov %vm7106_vm1 }
 0x4e1   : > { %v2906_v45 = vadd.f32 %v6178_v28, %v2882_v12  ;;  %v2949_v1 = vmul.f32 %v2945_v32, %v6216_v58  ;;  %v2950_v30 = vmul.f32 %v2946_v23, %v6216_v58  ;;  %v2961_v28 = vpop.permute.xlu0 %2960 }
 0x4e3   : > { %v2951_v35 = vadd.f32 %v2949_v1, %v2906_v45  ;;  %v2952_v4 = vadd.f32 %v2950_v30, %v2907_v41  ;;  %v2253_v22 = vpop.permute.xlu1 %2252 }
 0x4e4   : > { %3972 = vmatmul.mubr.msk.f32.vlgmr.msra.gmra.mrb[0].mxu0 %vm7108_vm13, %v2253_v22 }
 0x4e5   : > { %v2958_v52 = vadd.f32 %v6266_v49, %v2951_v35  ;;  %v2959_v26 = vadd.f32 %v6266_v49, %v2952_v4  ;;  %2345 = vmatprep.mubr.f32.mxu0 %v7100_v3  ;;  %v3060_v49 = vpop.permute.xlu0 %3059 }
 0x4e7   : > { %v2255_v47 = vpop.permute.xlu1 %2254  ;;  %3984 = vmatprep.subr.msk.mxu0 %vm1533_vm8, %v2959_v26 }
 0x4e8   : > { %3973 = vmatmul.mubr.msk.f32.gmra.mrb[2].mxu0 %vm7109_vm2, %v2255_v47 }
 0x4e9   : > { %3985 = vmatpush1.msk.msra.mxu0 %vm1533_vm8, %v2958_v52  ;;  %3038 = vmatprep.mubr.f32.mxu0 %v7100_v3 }
 0x4eb   : > { %v2963_v58 = vpop.permute.xlu1 %2962 }
 0x4ec   : > { %3986 = vmatmul.mubr.msk.f32.vlgmr.msra.gmra.mrb[0].mxu0 %vm7110_vm3, %v2961_v28 }
 0x4ed   : > { %3044 = vmatprep.mubr.f32.mxu0 %v7100_v3 }
 0x4f0   : > { %3987 = vmatmul.mubr.msk.f32.gmra.mrb[2].mxu0 %vm7111_vm9, %v2963_v58 }
 0x4f1   : > { %3856 = vmatprep.mubr.f32.mxu0 %v7100_v3 }
 0x4fc   : > { %v3065_v6 = vpop.permute.xlu1 %3064 }
 0x5bf   : > { %v3040_v37 = vpop.f32.mrb[0].mxu0 }
 0x5c0   : > { %v3067_v36 = vadd.f32 %v3060_v49, %v3040_v37  ;;  %v3042_v20 = vpop.f32.mrb[1].mxu0 }
 0x5c1   : > { %v3068_v59 = vadd.f32 %v3060_v49, %v3042_v20 }
 0x5c2   : > { %v3075_v55 = vmul.f32 0.70710677, %v3067_v36  ;;  %v3071_v17 = vmul.f32 0.5, %v3067_v36 }
 0x5c3   : > { %v3076_v29 = vmul.f32 0.70710677, %v3068_v59  ;;  %v3046_v11 = vpop.f32.mrb[2].mxu0  ;;  %v3072_v10 = vmul.f32 0.5, %v3068_v59 }
 0x5c4   : > { %4389 = verf.f32 %v3075_v55  ;;  %v3069_v40 = vadd.f32 %v3065_v6, %v3046_v11  ;;  %v3048_v34 = vpop.f32.mrb[3].mxu0 }
 0x5c5   : > { %4391 = verf.f32 %v3076_v29  ;;  %v3070_v2 = vadd.f32 %v3065_v6, %v3048_v34 }
 0x5c6   : > { %v3077_v7 = vmul.f32 0.70710677, %v3069_v40  ;;  %v3073_v44 = vmul.f32 0.5, %v3069_v40 }
 0x5c7   : > { %v3078_v48 = vmul.f32 0.70710677, %v3070_v2  ;;  %v3074_v9 = vmul.f32 0.5, %v3070_v2 }
 0x5c8   : > { %4393 = verf.f32 %v3077_v7 }
 0x5c9   : > { %4395 = verf.f32 %v3078_v48 }
 0x5ce   : > { %v4390_v53 = vpop.eup %4389 }
 0x5cf   : > { %v4392_v43 = vpop.eup %4391  ;;  %v3083_v15 = vadd.f32 1.0, %v4390_v53 }
 0x5d0   : > { %v3084_v21 = vadd.f32 1.0, %v4392_v43 }
 0x5d1   : > { %v3087_v8 = vmul.f32 %v3083_v15, %v3071_v17 }
 0x5d2   : > { %v4394_v14 = vpop.eup %4393  ;;  %v3088_v31 = vmul.f32 %v3084_v21, %v3072_v10 }
 0x5d3   : > { %v4396_v27 = vpop.eup %4395  ;;  %v3085_v0 = vadd.f32 1.0, %v4394_v14  ;;  %v3091_v62 = vmul.f32 %v3087_v8, %v7112_v42 }
 0x5d4   : > { %v3086_v19 = vadd.f32 1.0, %v4396_v27  ;;  %v3092_v63 = vmul.f32 %v3088_v31, %v7113_v54 }
 0x5d5   : > { %v3089_v16 = vmul.f32 %v3085_v0, %v3073_v44  ;;  %v6319_v60 = vadd.f32 %v4427_v5, %v3091_v62 }
 0x5d6   : > { %v3090_v18 = vmul.f32 %v3086_v19, %v3074_v9  ;;  %v6325_v33 = vadd.f32 %v4429_v38, %v3092_v63 }
 0x5d7   : > { %v3093_v39 = vmul.f32 %v3089_v16, %v7114_v56 }
 0x5d8   : > { %v3094_v13 = vmul.f32 %v3090_v18, %v7115_v51  ;;  %v3173_v51 = vpop.permute.xlu1 %3172 }
 0x5d9   : > { %v6322_v25 = vadd.f32 %v4428_v24, %v3093_v39  ;;  %v3168_v39 = vpop.permute.xlu0 %3167 }
 0x5da   : > { %v6328_v61 = vadd.f32 %v4430_v57, %v3094_v13 }
 0x5db   : > { %v3103_v41 = vadd.f32 %v6322_v25, %v6319_v60 }
 0x5dc   : > { %v3110_v50 = vadd.f32 %v6328_v61, %v6325_v33 }
 0x5dd   : > { %v3104_v12 = vrot.slane %v3103_v41, 4 }
 0x5de   : > { %v3111_v46 = vrot.slane %v3110_v50, 4 }
 0x5df   : > { %v3105_v32 = vadd.f32 %v3104_v12, %v3103_v41 }
 0x5e0   : > { %v3112_v23 = vadd.f32 %v3111_v46, %v3110_v50  ;;  %v3182_v46 = vpop.permute.xlu0 %3181 }
 0x5e1   : > { %v3106_v45 = vrot.slane %v3105_v32, 2 }
 0x5e2   : > { %v3113_v1 = vrot.slane %v3112_v23, 2 }
 0x5e3   : > { %v3107_v30 = vadd.f32 %v3106_v45, %v3105_v32  ;;  %v3187_v32 = vpop.permute.xlu1 %3186 }
 0x5e4   : > { %v3114_v35 = vadd.f32 %v3113_v1, %v3112_v23 }
 0x5e5   : > { %v3108_v4 = vrot.slane %v3107_v30, 1 }
 0x5e6   : > { %v3115_v22 = vrot.slane %v3114_v35, 1 }
 0x5e7   : > { %v3109_v52 = vadd.f32 %v3108_v4, %v3107_v30  ;;  %v7116_v4 = vld [vmem:[#allocation18_spill] sm:$0xff] }
 0x5e8   : > { %v3116_v26 = vadd.f32 %v3115_v22, %v3114_v35 }
 0x5e9   : > { %v3117_v47 = vmul.f32 0.0625, %v3109_v52  ;;  %v7117_v52 = vld [vmem:[#allocation17_spill] sm:$0xff] }
 0x5ea   : > { %v3118_v28 = vmul.f32 0.0625, %v3116_v26 }
 0x5eb   : > { %v3119_v58 = vsub.f32 %v6319_v60, %v3117_v47  ;;  %v3121_v49 = vsub.f32 %v6322_v25, %v3117_v47  ;;  %v7118_v47 = vld [vmem:[#allocation13_spill] sm:$0xff] }
 0x5ec   : > { %v3120_v37 = vsub.f32 %v6325_v33, %v3118_v28  ;;  %v3122_v36 = vsub.f32 %v6328_v61, %v3118_v28 }
 0x5ed   : > { %v3123_v20 = vmul.f32 %v3119_v58, %v3119_v58  ;;  %v3125_v59 = vmul.f32 %v3121_v49, %v3121_v49 }
 0x5ee   : > { %v3124_v55 = vmul.f32 %v3120_v37, %v3120_v37  ;;  %v3126_v6 = vmul.f32 %v3122_v36, %v3122_v36 }
 0x5ef   : > { %v3127_v29 = vadd.f32 %v3125_v59, %v3123_v20  ;;  %v7121_v59 = vld [vmem:[#allocation7_spill] sm:$0xff] }
 0x5f0   : > { %v3134_v11 = vadd.f32 %v3126_v6, %v3124_v55 }
 0x5f1   : > { %v3128_v40 = vrot.slane %v3127_v29, 4 }
 0x5f2   : > { %v3135_v34 = vrot.slane %v3134_v11, 4 }
 0x5f3   : > { %v3129_v2 = vadd.f32 %v3128_v40, %v3127_v29 }
 0x5f4   : > { %v3136_v7 = vadd.f32 %v3135_v34, %v3134_v11  ;;  %v7122_v11 = vld [vmem:[#allocation25_spill] sm:$0xff]  ;;  %v7123_v34 = vld [vmem:[#allocation23_spill] sm:$0xff] }
 0x5f5   : > { %v3130_v48 = vrot.slane %v3129_v2, 2 }
 0x5f6   : > { %v3137_v53 = vrot.slane %v3136_v7, 2 }
 0x5f7   : > { %v3131_v43 = vadd.f32 %v3130_v48, %v3129_v2 }
 0x5f8   : > { %v3138_v17 = vadd.f32 %v3137_v53, %v3136_v7  ;;  %v7125_v7 = vld [vmem:[#allocation46_spill] sm:$0xff]  ;;  %v7126_v53 = vld [vmem:[#allocation9_spill] sm:$0xff] }
 0x5f9   : > { %v3132_v15 = vrot.slane %v3131_v43, 1 }
 0x5fa   : > { %v3139_v10 = vrot.slane %v3138_v17, 1 }
 0x5fb   : > { %v3133_v21 = vadd.f32 %v3132_v15, %v3131_v43 }
 0x5fc   : > { %v3140_v8 = vadd.f32 %v3139_v10, %v3138_v17 }
 0x5fd   : > { %v3141_v14 = vmul.f32 0.0625, %v3133_v21 }
 0x5fe   : > { %v3142_v31 = vmul.f32 0.0625, %v3140_v8  ;;  %v7129_v8 = vld [vmem:[#allocation8_spill] sm:$0xff] }
 0x5ff   : > { %v3143_v27 = vadd.f32 1e-06, %v3141_v14 }
 0x600   : > { %v3144_v44 = vadd.f32 1e-06, %v3142_v31 }
 0x601   : > { %4397 = vrsqrt.f32 %v3143_v27  ;;  %vm3147_vm8 = vcmp.eq.f32.partialorder %v3143_v27, inf  ;;  %v3150_v42 = vand.u32 2147483648, %v3143_v27  ;;  %vm3149_vm11 = vcmp.eq.f32.partialorder %v3143_v27, 0.0 }
 0x602   : > { %4399 = vrsqrt.f32 %v3144_v44  ;;  %vm3154_vm1 = vcmp.eq.f32.partialorder %v3144_v44, inf  ;;  %v3157_v54 = vand.u32 2147483648, %v3144_v44  ;;  %vm3156_vm13 = vcmp.eq.f32.partialorder %v3144_v44, 0.0 }
 0x60b   : > { %v4398_v0 = vpop.eup %4397 }
 0x60c   : > { %v4400_v9 = vpop.eup %4399  ;;  %v3146_v19 = vmul.f32 %v4398_v0, %v3143_v27  ;;  %v7130_v0 = vld [vmem:[#allocation6_spill] sm:$0xff] }
 0x60d   : > { %v3153_v62 = vmul.f32 %v4400_v9, %v3144_v44 }
 0x60e   : > { %v3148_v16 = vsel %vm3147_vm8, %v3143_v27, %v3146_v19 }
 0x60f   : > { %v3151_v63 = vsel %vm3149_vm11, %v3150_v42, %v3148_v16  ;;  %v3155_v18 = vsel %vm3154_vm1, %v3144_v44, %v3153_v62  ;;  %v7131_v62 = vld [vmem:[#allocation47_spill] sm:$0xff] }
 0x610   : > { %v3158_v56 = vsel %vm3156_vm13, %v3157_v54, %v3155_v18  ;;  %4401 = vrcp.f32 %v3151_v63  ;;  %v7132_v63 = vld [vmem:[#allocation10_spill] sm:$0xff] }
 0x611   : > { %4403 = vrcp.f32 %v3158_v56 }
 0x61a   : > { %v4402_v13 = vpop.eup %4401 }
 0x61b   : > { %v4404_v5 = vpop.eup %4403  ;;  %v3160_v24 = vmul.f32 %v4402_v13, %v3119_v58  ;;  %v3163_v38 = vmul.f32 %v4402_v13, %v3121_v49  ;;  %v7119_v58 = vld [vmem:[#allocation12_spill] sm:$0xff] }
 0x61c   : > { %v3162_v57 = vmul.f32 %v4404_v5, %v3120_v37  ;;  %v3164_v41 = vmul.f32 %v4404_v5, %v3122_v36  ;;  %v7120_v36 = vld [vmem:[#allocation34_spill] sm:$0xff]  ;;  %v7134_v5 = vld [vmem:[#allocation49_spill] sm:$0xff] }
 0x61d   : > { %v3175_v50 = vmul.f32 %v3168_v39, %v3160_v24  ;;  %v3177_v12 = vmul.f32 %v3173_v51, %v3163_v38 }
 0x61e   : > { %v3176_v23 = vmul.f32 %v3168_v39, %v3162_v57  ;;  %v3178_v45 = vmul.f32 %v3173_v51, %v3164_v41  ;;  %v7133_v51 = vld [vmem:[#allocation48_spill] sm:$0xff] }
 0x61f   : > { %v6338_v1 = vadd.f32 %v3182_v46, %v3175_v50  ;;  %v6340_v30 = vadd.f32 %v3187_v32, %v3177_v12 }
 0x620   : > { %v6342_v35 = vadd.f32 %v3187_v32, %v3178_v45  ;;  %v6352_v37 = vadd.f32 %v3182_v46, %v3176_v23  ;;  %v7136_v23 = vld [vmem:[#allocation50_spill] sm:$0xff] }
 0x621   : > { %v3229_v22 = vmul.f32 %v6338_v1, %v7116_v4  ;;  %v3230_v26 = vmul.f32 %v6340_v30, %v7117_v52  ;;  %v3223_v28 = vmul.f32 %v6338_v1, %v7118_v47  ;;  %v3224_v49 = vmul.f32 %v6340_v30, %v7119_v58 }
 0x622   : > { %v3203_v20 = vmul.f32 %v6340_v30, %v7120_v36  ;;  %v3204_v55 = vmul.f32 %v6342_v35, %v7121_v59  ;;  %v3235_v40 = vmul.f32 %v6338_v1, %v7122_v11  ;;  %v3236_v2 = vmul.f32 %v6340_v30, %v7123_v34 }
 0x623   : > { %v4136_v6 = vpack.i.bf16 %v3230_v26, %v3229_v22  ;;  %v4131_v29 = vpack.i.bf16 %v3224_v49, %v3223_v28  ;;  %v3206_v48 = vmul.f32 %v6338_v1, %v7125_v7  ;;  %v3207_v43 = vmul.f32 %v6352_v37, %v7126_v53  ;;  %v7137_v22 = vld [vmem:[#allocation15_spill] sm:$0xff] }
 0x624   : > { %v4151_v17 = vpack.i.bf16 %v3204_v55, %v3203_v20  ;;  %v4141_v15 = vpack.i.bf16 %v3236_v2, %v3235_v40  ;;  %v3200_v10 = vmul.f32 %v6338_v1, %v7120_v36  ;;  %v3201_v21 = vmul.f32 %v6352_v37, %v7121_v59 }
 0x625   : > { %4137 = vrot.lane.b32.xlu1 %v4136_v6, %s6999_s17  ;;  %4132 = vrot.lane.b32.xlu0 %v4131_v29, %s7124_s23  ;;  %v3205_v14 = vmul.f32 %v6352_v37, %v7129_v8  ;;  %v3208_v31 = vmul.f32 %v6342_v35, %v7129_v8  ;;  %v4161_v27 = vpack.i.bf16 %v3207_v43, %v3206_v48  ;;  %v7139_v29 = vld [vmem:[#allocation54_spill] sm:$0xff]  ;;  %v7140_v48 = vld [vmem:[#allocation51_spill] sm:$0xff] }
 0x626   : > { %v4146_v44 = vpack.i.bf16 %v3201_v21, %v3200_v10  ;;  %v3199_v9 = vmul.f32 %v6352_v37, %v7130_v0  ;;  %v3202_v19 = vmul.f32 %v6342_v35, %v7130_v0  ;;  %v3215_v16 = vmul.f32 %v6340_v30, %v7131_v62  ;;  %v7141_v21 = vld [vmem:[#allocation35_spill] sm:$0xff] }
 0x627   : > { %v4171_v42 = vpack.i.bf16 %v3208_v31, %v3205_v14  ;;  %v3216_v18 = vmul.f32 %v6342_v35, %v7132_v63  ;;  %v3209_v56 = vmul.f32 %v6340_v30, %v7125_v7  ;;  %v3210_v39 = vmul.f32 %v6342_v35, %v7126_v53  ;;  %v7142_v14 = vld [vmem:[#allocation29_spill] sm:$0xff]  ;;  %v7143_v0 = vld [vmem:[#allocation55_spill] sm:$0xff] }
 0x628   : > { %v4156_v54 = vpack.i.bf16 %v3202_v19, %v3199_v9  ;;  %v3217_v13 = vmul.f32 %v6338_v1, %v7133_v51  ;;  %v3218_v24 = vmul.f32 %v6352_v37, %v7134_v5  ;;  %v3212_v41 = vmul.f32 %v6338_v1, %v7131_v62 }
 0x629   : > { %4152 = vrot.lane.b32.xlu1 %v4151_v17, %s7127_s30  ;;  %4142 = vrot.lane.b32.xlu0 %v4141_v15, %s7128_s20  ;;  %v4181_v38 = vpack.i.bf16 %v3216_v18, %v3215_v16  ;;  %v4166_v57 = vpack.i.bf16 %v3210_v39, %v3209_v56  ;;  %v3213_v50 = vmul.f32 %v6352_v37, %v7132_v63  ;;  %v7144_v16 = vld [vmem:[#allocation14_spill] sm:$0xff]  ;;  %v7145_v63 = vld [vmem:[#allocation53_spill] sm:$0xff] }
 0x62a   : > { %v4191_v12 = vpack.i.bf16 %v3218_v24, %v3217_v13  ;;  %v3221_v46 = vmul.f32 %v6338_v1, %v7119_v58  ;;  %v3222_v45 = vmul.f32 %v6352_v37, %v7136_v23  ;;  %v3211_v26 = vmul.f32 %v6352_v37, %v7137_v22 }
 0x62b   : > { %v4176_v32 = vpack.i.bf16 %v3213_v50, %v3212_v41  ;;  %v3214_v28 = vmul.f32 %v6342_v35, %v7137_v22  ;;  %v3225_v49 = vmul.f32 %v6342_v35, %v7136_v23  ;;  %v3226_v58 = vmul.f32 %v6340_v30, %v7118_v47 }
 0x62c   : > { %v4201_v36 = vpack.i.bf16 %v3222_v45, %v3221_v46  ;;  %v3219_v59 = vmul.f32 %v6340_v30, %v7133_v51  ;;  %v3220_v55 = vmul.f32 %v6342_v35, %v7134_v5  ;;  %v3233_v6 = vmul.f32 %v6338_v1, %v7123_v34  ;;  %v7146_v5 = vld [vmem:[#allocation52_spill] sm:$0xff] }
 0x62d   : > { %4162 = vrot.lane.b32.xlu1 %v4161_v27, %s7058_s21  ;;  %4147 = vrot.lane.b32.xlu0 %v4146_v44, %s7127_s30  ;;  %v4186_v20 = vpack.i.bf16 %v3214_v28, %v3211_v26  ;;  %v3234_v40 = vmul.f32 %v6352_v37, %v7139_v29  ;;  %v4206_v2 = vpack.i.bf16 %v3226_v58, %v3225_v49 }
 0x62e   : > { %v4196_v47 = vpack.i.bf16 %v3220_v55, %v3219_v59  ;;  %v3227_v7 = vmul.f32 %v6338_v1, %v7117_v52  ;;  %v3228_v53 = vmul.f32 %v6352_v37, %v7140_v48  ;;  %v3237_v17 = vmul.f32 %v6342_v35, %v7139_v29 }
 0x62f   : > { %v4221_v43 = vpack.i.bf16 %v3234_v40, %v3233_v6  ;;  %v3238_v15 = vmul.f32 %v6340_v30, %v7122_v11  ;;  %v3231_v10 = vmul.f32 %v6342_v35, %v7140_v48  ;;  %v3232_v52 = vmul.f32 %v6340_v30, %v7116_v4 }
 0x630   : > { %v4211_v34 = vpack.i.bf16 %v3228_v53, %v3227_v7  ;;  %v3241_v8 = vmul.f32 %v6338_v1, %v7141_v21  ;;  %v3242_v31 = vmul.f32 %v6340_v30, %v7142_v14  ;;  %v3239_v11 = vmul.f32 %v6338_v1, %v7142_v14 }
 0x631   : > { %4172 = vrot.lane.b32.xlu1 %v4171_v42, %s7058_s21  ;;  %4157 = vrot.lane.b32.xlu0 %v4156_v54, %s7127_s30  ;;  %v4226_v27 = vpack.i.bf16 %v3238_v15, %v3237_v17  ;;  %v4216_v44 = vpack.i.bf16 %v3232_v52, %v3231_v10  ;;  %v3240_v9 = vmul.f32 %v6352_v37, %v7143_v0 }
 0x632   : > { %v4231_v4 = vpack.i.bf16 %v3242_v31, %v3241_v8  ;;  %v3243_v19 = vmul.f32 %v6342_v35, %v7143_v0  ;;  %v3244_v62 = vmul.f32 %v6340_v30, %v7141_v21  ;;  %v3194_v54 = vmul.f32 %v6338_v1, %v7144_v16 }
 0x633   : > { %v4236_v42 = vpack.i.bf16 %v3240_v9, %v3239_v11  ;;  %v3195_v18 = vmul.f32 %v6352_v37, %v7145_v63  ;;  %v3197_v56 = vmul.f32 %v6340_v30, %v7144_v16  ;;  %v3198_v39 = vmul.f32 %v6342_v35, %v7145_v63 }
 0x634   : > { %v4241_v51 = vpack.i.bf16 %v3244_v62, %v3243_v19  ;;  %v3193_v24 = vmul.f32 %v6352_v37, %v7146_v5  ;;  %v3196_v1 = vmul.f32 %v6342_v35, %v7146_v5 }
 0x635   : > { %4182 = vrot.lane.b32.xlu1 %v4181_v38, %s7135_s16  ;;  %4167 = vrot.lane.b32.xlu0 %v4166_v57, %s7058_s21  ;;  %v4246_v13 = vpack.i.bf16 %v3195_v18, %v3194_v54  ;;  %v4251_v38 = vpack.i.bf16 %v3198_v39, %v3197_v56 }
 0x636   : > { %v4256_v57 = vpack.i.bf16 %v3196_v1, %v3193_v24 }
 0x639   : > { %4192 = vrot.lane.b32.xlu1 %v4191_v12, %s7138_s26  ;;  %4177 = vrot.lane.b32.xlu0 %v4176_v32, %s7135_s16 }
 0x63d   : > { %4202 = vrot.lane.b32.xlu1 %v4201_v36, %s7124_s23  ;;  %4187 = vrot.lane.b32.xlu0 %v4186_v20, %s7135_s16 }
 0x641   : > { %4207 = vrot.lane.b32.xlu1 %v4206_v2, %s7124_s23  ;;  %4197 = vrot.lane.b32.xlu0 %v4196_v47, %s7138_s26 }
 0x645   : > { %4222 = vrot.lane.b32.xlu1 %v4221_v43, %s7128_s20  ;;  %4212 = vrot.lane.b32.xlu0 %v4211_v34, %s6999_s17 }
 0x649   : > { %4227 = vrot.lane.b32.xlu1 %v4226_v27, %s7128_s20  ;;  %4217 = vrot.lane.b32.xlu0 %v4216_v44, %s6999_s17  ;;  %s494_s20 = scalar_lea.vmem %s6776_s15, %s7153_s24 }
 0x64d   : > { %4232 = vrot.lane.b32.xlu1 %v4231_v4, %s7005_s28  ;;  %4237 = vrot.lane.b32.xlu0 %v4236_v42, %s7005_s28 }
 0x651   : > { %4242 = vrot.lane.b32.xlu0 %v4241_v51, %s7005_s28  ;;  %4247 = vrot.lane.b32.xlu1 %v4246_v13, %s7084_s22 }
 0x655   : > { %4252 = vrot.lane.b32.xlu0 %v4251_v38, %s7084_s22  ;;  %4257 = vrot.lane.b32.xlu1 %v4256_v57, %s7084_s22 }
 0x697   : > { %v6476_v30 = vpop.permute.xlu1 %4137  ;;  %v6478_v41 = vpop.permute.xlu0 %4132 }
 0x698   : > { %v4135_v58 = vunpack.i.h.bf16 %v6478_v41  ;;  %v4140_v15 = vunpack.i.h.bf16 %v6476_v30 }
 0x69b   : > { %v4153_v50 = vpop.permute.xlu1 %4152  ;;  %v6480_v12 = vpop.permute.xlu0 %4142 }
 0x69c   : > { %v4155_v40 = vunpack.i.h.bf16 %v4153_v50  ;;  %v4154_v2 = vunpack.i.l.bf16 %v4153_v50  ;;  %v4145_v17 = vunpack.i.h.bf16 %v6480_v12 }
 0x69e   : > { %v3266_v52 = vsel %vm673_vm5, %v4154_v2, %v4155_v40 }
 0x69f   : > { %v6482_v37 = vpop.permute.xlu1 %4162  ;;  %v4148_v35 = vpop.permute.xlu0 %4147  ;;  %v4286_v4 = vpack.i.bf16 %v4155_v40, %v3266_v52 }
 0x6a0   : > { %v4150_v47 = vunpack.i.h.bf16 %v4148_v35  ;;  %v4149_v7 = vunpack.i.l.bf16 %v4148_v35  ;;  %v4165_v0 = vunpack.i.h.bf16 %v6482_v37  ;;  %v4164_v9 = vunpack.i.l.bf16 %v6482_v37 }
 0x6a2   : > { %v3264_v8 = vsel %vm673_vm5, %v4149_v7, %v4150_v47  ;;  %v3286_v56 = vsel %vm720_vm7, %v4164_v9, %v4165_v0 }
 0x6a3   : > { %v6484_v46 = vpop.permute.xlu1 %4172  ;;  %v4158_v32 = vpop.permute.xlu0 %4157  ;;  %v4281_v19 = vpack.i.bf16 %v4150_v47, %v3264_v8  ;;  %v4296_v57 = vpack.i.bf16 %v4165_v0, %v3286_v56 }
 0x6a4   : > { %v4160_v14 = vunpack.i.h.bf16 %v4158_v32  ;;  %v4159_v31 = vunpack.i.l.bf16 %v4158_v32  ;;  %v4174_v39 = vunpack.i.l.bf16 %v6484_v46  ;;  %v4175_v5 = vunpack.i.h.bf16 %v6484_v46 }
 0x6a6   : > { %v3265_v42 = vsel %vm673_vm5, %v4160_v14, %v4154_v2  ;;  %v3263_v62 = vsel %vm673_vm5, %v4159_v31, %v4149_v7  ;;  %vm7147_vm5 = vcmask 908288  }
 0x6a7   : > { %v6486_v23 = vpop.permute.xlu1 %4182  ;;  %v6488_v45 = vpop.permute.xlu0 %4167  ;;  %v4291_v24 = vpack.i.bf16 %v3265_v42, %v3263_v62 }
 0x6a8   : > { %v4170_v16 = vunpack.i.h.bf16 %v6488_v45  ;;  %v4169_v54 = vunpack.i.l.bf16 %v6488_v45  ;;  %v4185_v51 = vunpack.i.h.bf16 %v6486_v23  ;;  %v4184_v13 = vunpack.i.l.bf16 %v6486_v23 }
 0x6a9   : > { %v3285_v23 = vsel %vm720_vm7, %v4174_v39, %v4164_v9 }
 0x6aa   : > { %v3288_v50 = vsel %vm720_vm7, %v4169_v54, %v4170_v16  ;;  %v3287_v32 = vsel %vm720_vm7, %v4175_v5, %v4169_v54  ;;  %v3310_v45 = vsel %vm649_vm6, %v4184_v13, %v4185_v51  ;;  %vm7149_vm7 = vcmask 130048  }
 0x6ab   : > { %v6490_v22 = vpop.permute.xlu1 %4192  ;;  %v6492_v26 = vpop.permute.xlu0 %4177  ;;  %v4306_v47 = vpack.i.bf16 %v3287_v32, %v3285_v23  ;;  %v4316_v0 = vpack.i.bf16 %v4185_v51, %v3310_v45 }
 0x6ac   : > { %v4194_v6 = vunpack.i.l.bf16 %v6490_v22  ;;  %v4180_v1 = vunpack.i.h.bf16 %v6492_v26  ;;  %v4179_v38 = vunpack.i.l.bf16 %v6492_v26  ;;  %v4195_v7 = vunpack.i.h.bf16 %v6490_v22 }
 0x6ae   : > { %v3308_v26 = vsel %vm649_vm6, %v4179_v38, %v4180_v1  ;;  %v3323_v51 = vsel %vm7147_vm5, %v4194_v6, %v4195_v7 }
 0x6af   : > { %v6494_v28 = vpop.permute.xlu1 %4202  ;;  %v6496_v49 = vpop.permute.xlu0 %4187  ;;  %v4311_v9 = vpack.i.bf16 %v4180_v1, %v3308_v26 }
 0x6b0   : > { %v4204_v36 = vunpack.i.l.bf16 %v6494_v28  ;;  %v4190_v46 = vunpack.i.h.bf16 %v6496_v49 }
 0x6b2   : > { %v4266_v20 = vpack.i.bf16 %v4135_v58, %v4204_v36 }
 0x6b3   : > { %v6504_v59 = vpop.permute.xlu1 %4207  ;;  %v6506_v55 = vpop.permute.xlu0 %4197 }
 0x6b4   : > { %4267 = vrot.lane.b32.xlu0 %v4266_v20, %s7084_s22  ;;  %v4199_v29 = vunpack.i.l.bf16 %v6506_v55  ;;  %v4301_v20 = vpack.i.bf16 %v4170_v16, %v3288_v50  ;;  %v4200_v54 = vunpack.i.h.bf16 %v6506_v55  ;;  %v4209_v5 = vunpack.i.l.bf16 %v6504_v59 }
 0x6b6   : > { %v4261_v48 = vpack.i.bf16 %v4199_v29, %v4194_v6  ;;  %v4134_v6 = vunpack.i.l.bf16 %v6478_v41 }
 0x6b7   : > { %v6515_v53 = vpop.permute.xlu1 %4222  ;;  %v6517_v43 = vpop.permute.xlu0 %4212 }
 0x6b8   : > { %v4224_v34 = vunpack.i.l.bf16 %v6515_v53  ;;  %v4214_v10 = vunpack.i.l.bf16 %v6517_v43  ;;  %4262 = vrot.lane.b32.xlu1 %v4261_v48, %s7084_s22  ;;  %v4189_v48 = vunpack.i.l.bf16 %v6496_v49  ;;  %v4215_v50 = vunpack.i.h.bf16 %v6517_v43 }
 0x6ba   : > { %v4276_v21 = vpack.i.bf16 %v4145_v17, %v4224_v34  ;;  %v4271_v27 = vpack.i.bf16 %v4140_v15, %v4214_v10  ;;  %v3307_v16 = vsel %vm649_vm6, %v4189_v48, %v4179_v38  ;;  %v4326_v38 = vpack.i.bf16 %v4195_v7, %v3323_v51 }
 0x6bb   : > { %v6534_v44 = vpop.permute.xlu1 %4227  ;;  %v6536_v11 = vpop.permute.xlu0 %4217 }
 0x6bc   : > { %4277 = vrot.lane.b32.xlu0 %v4276_v21, %s7084_s22  ;;  %4272 = vrot.lane.b32.xlu1 %v4271_v27, %s7084_s22  ;;  %v4220_v23 = vunpack.i.h.bf16 %v6536_v11  ;;  %v4219_v45 = vunpack.i.l.bf16 %v6536_v11  ;;  %v4230_v26 = vunpack.i.h.bf16 %v6534_v44 }
 0x6be   : > { %v3367_v43 = vsel %vm888_vm15, %v4140_v15, %v4219_v45 }
 0x6bf   : > { %v6546_v63 = vpop.permute.xlu1 %4232  ;;  %v6548_v18 = vpop.permute.xlu0 %4237 }
 0x6c0   : > { %4282 = vrot.lane.b32.xlu0 %v4281_v19, %s7084_s22  ;;  %4287 = vrot.lane.b32.xlu1 %v4286_v4, %s7084_s22  ;;  %v3309_v4 = vsel %vm649_vm6, %v4190_v46, %v4184_v13  ;;  %v4210_v13 = vunpack.i.h.bf16 %v6504_v59  ;;  %vm7148_vm6 = vmmov %vm7147_vm5  ;;  %v3345_v59 = vsel %vm841_vm10, %v4135_v58, %v4209_v5  ;;  %v4229_v58 = vunpack.i.l.bf16 %v6534_v44 }
 0x6c1   : > { %v4321_v1 = vpack.i.bf16 %v3309_v4, %v3307_v16  ;;  %v3324_v22 = vsel %vm7148_vm6, %v4199_v29, %v4200_v54  ;;  %v4240_v7 = vunpack.i.h.bf16 %v6548_v18  ;;  %v4239_v48 = vunpack.i.l.bf16 %v6548_v18  ;;  %v3422_v4 = vld [vmem:[%s6771_s10 + $0x8] sm:$0xff] }
 0x6c2   : > { %v4331_v32 = vpack.i.bf16 %v4200_v54, %v3324_v22  ;;  %v3389_v11 = vsel %vm935_vm14, %v4145_v17, %v4229_v58  ;;  %v3390_v44 = vsel %vm935_vm14, %v4229_v58, %v4230_v26 }
 0x6c3   : > { %v6560_v37 = vpop.permute.xlu0 %4242  ;;  %v4248_v35 = vpop.permute.xlu1 %4247  ;;  %v4361_v15 = vpack.i.bf16 %v3390_v44, %v3389_v11  ;;  %v3409_v18 = vsel %vm982_vm4, %v4239_v48, %v4240_v7 }
 0x6c4   : > { %4292 = vrot.lane.b32.xlu0 %v4291_v24, %s7084_s22  ;;  %4297 = vrot.lane.b32.xlu1 %v4296_v57, %s7084_s22  ;;  %v4250_v40 = vunpack.i.h.bf16 %v4248_v35  ;;  %v4249_v2 = vunpack.i.l.bf16 %v4248_v35  ;;  %v4205_v24 = vunpack.i.h.bf16 %v6494_v28  ;;  %v3346_v57 = vsel %vm841_vm10, %v4209_v5, %v4210_v13 }
 0x6c5   : > { %v4139_v35 = vunpack.i.l.bf16 %v6476_v30  ;;  %v4341_v41 = vpack.i.bf16 %v3346_v57, %v3345_v59  ;;  %v4144_v28 = vunpack.i.l.bf16 %v6480_v12 }
 0x6c6   : > { %v3560_v19 = vsel %vm958_vm12, %v4249_v2, %v4250_v40  ;;  %v3344_v55 = vsel %vm841_vm10, %v4205_v24, %v4134_v6  ;;  %v3343_v29 = vsel %vm841_vm10, %v4204_v36, %v4205_v24  ;;  %v4225_v40 = vunpack.i.h.bf16 %v6515_v53  ;;  %v3414_v53 = vld [vmem:[%s6770_s9 + $0x8] sm:$0xff] }
 0x6c7   : > { %v4253_v52 = vpop.permute.xlu0 %4252  ;;  %v4258_v21 = vpop.permute.xlu1 %4257  ;;  %v3366_v46 = vsel %vm888_vm15, %v4215_v50, %v4139_v35  ;;  %v4336_v36 = vpack.i.bf16 %v3344_v55, %v3343_v29  ;;  %3988 = vmatprep.mubr.msk.f32.mxu1 %vm7149_vm7, %v3414_v53 }
 0x6c8   : > { %v4255_v8 = vunpack.i.h.bf16 %v4253_v52  ;;  %v4254_v14 = vunpack.i.l.bf16 %v4253_v52  ;;  %v4260_v31 = vunpack.i.h.bf16 %v4258_v21  ;;  %v4259_v27 = vunpack.i.l.bf16 %v4258_v21  ;;  %4302 = vrot.lane.b32.xlu0 %v4301_v20, %s7084_s22  ;;  %4307 = vrot.lane.b32.xlu1 %v4306_v47, %s7084_s22 }
 0x6c9   : > { %v3365_v20 = vsel %vm888_vm15, %v4214_v10, %v4215_v50  ;;  %v3368_v10 = vsel %vm888_vm15, %v4219_v45, %v4220_v23  ;;  %v4234_v47 = vunpack.i.l.bf16 %v6546_v63  ;;  %v3388_v12 = vsel %vm935_vm14, %v4225_v40, %v4144_v28  ;;  %vm7150_vm15 = vmmov %vm7149_vm7 }
 0x6ca   : > { %v3562_v42 = vsel %vm958_vm12, %v4254_v14, %v4255_v8  ;;  %v3559_v49 = vsel %vm958_vm12, %v4259_v27, %v4249_v2  ;;  %v3561_v62 = vsel %vm958_vm12, %v4260_v31, %v4254_v14  ;;  %v4346_v2 = vpack.i.bf16 %v3366_v46, %v3365_v20 }
 0x6cb   : > { %v3998_v56 = vpack.c.bf16 %v3562_v42, %v3560_v19  ;;  %v4000_v39 = vpack.c.bf16 %v3561_v62, %v3559_v49  ;;  %v4351_v17 = vpack.i.bf16 %v3368_v10, %v3367_v43  ;;  %v3387_v30 = vsel %vm935_vm14, %v4224_v34, %v4225_v40  ;;  %v3423_v19 = vld [vmem:[%s6771_s10 + $0x10] sm:$0xff]  ;;  %v3424_v42 = vld [vmem:[%s6771_s10 + $0x18] sm:$0xff]  ;;  %v3774_v49 = vld [vmem:[%s6773_s12] sm:$0xff] }
 0x6cc   : > { %4312 = vrot.lane.b32.xlu0 %v4311_v9, %s7084_s22  ;;  %4317 = vrot.lane.b32.xlu1 %v4316_v0, %s7084_s22  ;;  %v4245_v52 = vunpack.i.h.bf16 %v6560_v37  ;;  %v4244_v21 = vunpack.i.l.bf16 %v6560_v37  ;;  %v3410_v8 = vsel %vm982_vm4, %v4240_v7, %v4234_v47  ;;  %v4235_v14 = vunpack.i.h.bf16 %v6546_v63  ;;  %v3421_v9 = vld [vmem:[%s6771_s10] sm:$0xff]  ;;  %v3775_v62 = vld [vmem:[%s6773_s12 + $0x8] sm:$0xff] }
 0x6cd   : > { %3999 = vmatprep.subr.bf16.mxu1 %v3998_v56  ;;  %v4356_v34 = vpack.i.bf16 %v3388_v12, %v3387_v30  ;;  %v4366_v31 = vpack.i.bf16 %v3410_v8, %v3409_v18 }
 0x6ce   : > { %4001 = vmatpush1.bf16.msra.mxu1 %v4000_v39  ;;  %v3411_v37 = vsel %vm982_vm4, %v4235_v14, %v4244_v21  ;;  %v3412_v27 = vsel %vm982_vm4, %v4244_v21, %v4245_v52  ;;  %v4376_v63 = vpack.i.bf16 %v4235_v14, %v4239_v48  ;;  %vm7152_vm4 = vmmov %vm7149_vm7 }
 0x6cf   : > { %v4371_v0 = vpack.i.bf16 %v3412_v27, %v3411_v37 }
 0x6d0   : > { %4322 = vrot.lane.b32.xlu0 %v4321_v1, %s7084_s22  ;;  %4327 = vrot.lane.b32.xlu1 %v4326_v38, %s7084_s22 }
 0x6d4   : > { %4332 = vrot.lane.b32.xlu0 %v4331_v32, %s7084_s22  ;;  %4342 = vrot.lane.b32.xlu1 %v4341_v41, %s7084_s22 }
 0x6d8   : > { %4337 = vrot.lane.b32.xlu0 %v4336_v36, %s7084_s22  ;;  %4347 = vrot.lane.b32.xlu1 %v4346_v2, %s7084_s22 }
 0x6dc   : > { %4352 = vrot.lane.b32.xlu0 %v4351_v17, %s7084_s22  ;;  %4362 = vrot.lane.b32.xlu1 %v4361_v15, %s7084_s22 }
 0x6e0   : > { %4357 = vrot.lane.b32.xlu0 %v4356_v34, %s7084_s22  ;;  %4367 = vrot.lane.b32.xlu1 %v4366_v31, %s7084_s22 }
 0x6e4   : > { %4372 = vrot.lane.b32.xlu0 %v4371_v0, %s7084_s22  ;;  %4377 = vrot.lane.b32.xlu1 %v4376_v63, %s7084_s22 }
 0x6e8   : > { %3427 = vperm.xlu0 %4129, %v3421_v9   ;;  %3432 = vperm.xlu1 %4130, %v3422_v4  }
 0x6ec   : > { %3437 = vperm.xlu0 %4129, %v3423_v19   ;;  %3442 = vperm.xlu1 %4130, %v3424_v42  }
 0x6f0   : > { %3778 = vperm.xlu0 %4129, %v3774_v49   ;;  %3783 = vperm.xlu1 %4130, %v3775_v62  }
 0x726   : > { %v6668_v16 = vpop.permute.xlu0 %4267 }
 0x72a   : > { %v6670_v54 = vpop.permute.xlu1 %4262 }
 0x72b   : > { %v4265_v9 = vunpack.i.h.bf16 %v6670_v54  ;;  %v4264_v4 = vunpack.i.l.bf16 %v6670_v54  ;;  %v4269_v54 = vunpack.i.l.bf16 %v6668_v16 }
 0x72e   : > { %v6672_v56 = vpop.permute.xlu0 %4277  ;;  %v6674_v39 = vpop.permute.xlu1 %4272 }
 0x732   : > { %v4283_v51 = vpop.permute.xlu0 %4282  ;;  %v4288_v24 = vpop.permute.xlu1 %4287 }
 0x733   : > { %v4285_v13 = vunpack.i.h.bf16 %v4283_v51  ;;  %v4284_v5 = vunpack.i.l.bf16 %v4283_v51  ;;  %v4290_v1 = vunpack.i.h.bf16 %v4288_v24  ;;  %v4289_v38 = vunpack.i.l.bf16 %v4288_v24 }
 0x735   : > { %v3564_v22 = vsel %vm958_vm12, %v4284_v5, %v4285_v13  ;;  %v3566_v59 = vsel %vm958_vm12, %v4289_v38, %v4290_v1 }
 0x736   : > { %v4293_v6 = vpop.permute.xlu0 %4292  ;;  %v4298_v35 = vpop.permute.xlu1 %4297  ;;  %v4002_v55 = vpack.c.bf16 %v3566_v59, %v3564_v22 }
 0x737   : > { %v4295_v57 = vunpack.i.h.bf16 %v4293_v6  ;;  %v4294_v50 = vunpack.i.l.bf16 %v4293_v6  ;;  %v4300_v29 = vunpack.i.h.bf16 %v4298_v35  ;;  %v4299_v32 = vunpack.i.l.bf16 %v4298_v35 }
 0x738   : > { %4003 = vmatprep.subr.bf16.mxu1 %v4002_v55 }
 0x739   : > { %v3563_v41 = vsel %vm958_vm12, %v4294_v50, %v4284_v5  ;;  %v3565_v58 = vsel %vm958_vm12, %v4295_v57, %v4289_v38  ;;  %v3568_v40 = vsel %vm958_vm12, %v4299_v32, %v4300_v29  ;;  %v4270_v38 = vunpack.i.h.bf16 %v6668_v16 }
 0x73a   : > { %v4303_v23 = vpop.permute.xlu0 %4302  ;;  %v4004_v45 = vpack.c.bf16 %v3565_v58, %v3563_v41  ;;  %v4308_v26 = vpop.permute.xlu1 %4307  ;;  %v4275_v16 = vunpack.i.h.bf16 %v6674_v39 }
 0x73b   : > { %v4305_v46 = vunpack.i.h.bf16 %v4303_v23  ;;  %v4304_v20 = vunpack.i.l.bf16 %v4303_v23  ;;  %v4310_v28 = vunpack.i.h.bf16 %v4308_v26  ;;  %v4309_v36 = vunpack.i.l.bf16 %v4308_v26 }
 0x73c   : > { %4005 = vmatpush1.bf16.msra.mxu1 %v4004_v45  ;;  %v4274_v26 = vunpack.i.l.bf16 %v6674_v39 }
 0x73d   : > { %v3570_v2 = vsel %vm958_vm12, %v4304_v20, %v4305_v46  ;;  %v3567_v10 = vsel %vm958_vm12, %v4309_v36, %v4299_v32  ;;  %v3569_v44 = vsel %vm958_vm12, %v4310_v28, %v4304_v20 }
 0x73e   : > { %v4313_v11 = vpop.permute.xlu0 %4312  ;;  %v4006_v43 = vpack.c.bf16 %v3570_v2, %v3568_v40  ;;  %v4318_v48 = vpop.permute.xlu1 %4317  ;;  %v4008_v12 = vpack.c.bf16 %v3569_v44, %v3567_v10 }
 0x73f   : > { %v4315_v47 = vunpack.i.h.bf16 %v4313_v11  ;;  %v4314_v7 = vunpack.i.l.bf16 %v4313_v11  ;;  %v4320_v17 = vunpack.i.h.bf16 %v4318_v48  ;;  %v4319_v30 = vunpack.i.l.bf16 %v4318_v48 }
 0x740   : > { %4007 = vmatprep.subr.bf16.mxu1 %v4006_v43 }
 0x741   : > { %4009 = vmatpush1.bf16.msra.mxu1 %v4008_v12  ;;  %v3572_v15 = vsel %vm958_vm12, %v4314_v7, %v4315_v47  ;;  %v3574_v21 = vsel %vm958_vm12, %v4319_v30, %v4320_v17  ;;  %v4279_v17 = vunpack.i.l.bf16 %v6672_v56 }
 0x742   : > { %v4323_v52 = vpop.permute.xlu0 %4322  ;;  %v4328_v14 = vpop.permute.xlu1 %4327  ;;  %v4010_v53 = vpack.c.bf16 %v3574_v21, %v3572_v15 }
 0x743   : > { %v4325_v8 = vunpack.i.h.bf16 %v4323_v52  ;;  %v4324_v18 = vunpack.i.l.bf16 %v4323_v52  ;;  %v4330_v34 = vunpack.i.h.bf16 %v4328_v14  ;;  %v4329_v31 = vunpack.i.l.bf16 %v4328_v14 }
 0x744   : > { %4011 = vmatprep.subr.bf16.mxu1 %v4010_v53 }
 0x745   : > { %v3571_v37 = vsel %vm958_vm12, %v4324_v18, %v4314_v7  ;;  %v3573_v27 = vsel %vm958_vm12, %v4325_v8, %v4319_v30  ;;  %v3576_v13 = vsel %vm958_vm12, %v4329_v31, %v4330_v34  ;;  %v3575_v24 = vsel %vm958_vm12, %v4264_v4, %v4329_v31 }
 0x746   : > { %v4333_v0 = vpop.permute.xlu0 %4332  ;;  %v4012_v63 = vpack.c.bf16 %v3573_v27, %v3571_v37  ;;  %v4343_v49 = vpop.permute.xlu1 %4342  ;;  %v4280_v7 = vunpack.i.h.bf16 %v6672_v56 }
 0x747   : > { %v4335_v19 = vunpack.i.h.bf16 %v4333_v0  ;;  %v4334_v42 = vunpack.i.l.bf16 %v4333_v0  ;;  %v4345_v62 = vunpack.i.h.bf16 %v4343_v49  ;;  %v4344_v51 = vunpack.i.l.bf16 %v4343_v49 }
 0x748   : > { %4013 = vmatpush1.bf16.msra.mxu1 %v4012_v63 }
 0x749   : > { %v3578_v5 = vsel %vm958_vm12, %v4334_v42, %v4335_v19  ;;  %v3577_v1 = vsel %vm958_vm12, %v4265_v9, %v4334_v42  ;;  %v3582_v55 = vsel %vm958_vm12, %v4344_v51, %v4345_v62  ;;  %v3581_v29 = vsel %vm958_vm12, %v4270_v38, %v4344_v51  ;;  %v3418_v38 = vld [vmem:[%s6770_s9 + $0x28] sm:$0xff] }
 0x74a   : > { %v4338_v22 = vpop.permute.xlu0 %4337  ;;  %v4014_v6 = vpack.c.bf16 %v3578_v5, %v3576_v13  ;;  %v4016_v59 = vpack.c.bf16 %v3577_v1, %v3575_v24  ;;  %v4348_v35 = vpop.permute.xlu1 %4347  ;;  %v3413_v5 = vld [vmem:[%s6770_s9] sm:$0xff]  ;;  %v3416_v24 = vld [vmem:[%s6770_s9 + $0x18] sm:$0xff]  ;;  %v3415_v1 = vld [vmem:[%s6770_s9 + $0x10] sm:$0xff] }
 0x74b   : > { %v4340_v57 = vunpack.i.h.bf16 %v4338_v22  ;;  %v4339_v50 = vunpack.i.l.bf16 %v4338_v22  ;;  %v4350_v32 = vunpack.i.h.bf16 %v4348_v35  ;;  %v4349_v41 = vunpack.i.l.bf16 %v4348_v35  ;;  %v3417_v22 = vld [vmem:[%s6770_s9 + $0x20] sm:$0xff] }
 0x74c   : > { %4015 = vmatprep.subr.bf16.mxu1 %v4014_v6  ;;  %v3420_v6 = vld [vmem:[%s6770_s9 + $0x38] sm:$0xff] }
 0x74d   : > { %4017 = vmatpush1.bf16.msra.mxu1 %v4016_v59  ;;  %v3580_v58 = vsel %vm958_vm12, %v4339_v50, %v4340_v57  ;;  %v3579_v23 = vsel %vm958_vm12, %v4269_v54, %v4339_v50  ;;  %v3584_v43 = vsel %vm958_vm12, %v4349_v41, %v4350_v32  ;;  %v3583_v44 = vsel %vm958_vm12, %v4274_v26, %v4349_v41  ;;  %v3419_v59 = vld [vmem:[%s6770_s9 + $0x30] sm:$0xff] }
 0x74e   : > { %v4353_v45 = vpop.permute.xlu0 %4352  ;;  %v4018_v46 = vpack.c.bf16 %v3582_v55, %v3580_v58  ;;  %v4020_v20 = vpack.c.bf16 %v3581_v29, %v3579_v23  ;;  %v4363_v40 = vpop.permute.xlu1 %4362 }
 0x74f   : > { %v4355_v28 = vunpack.i.h.bf16 %v4353_v45  ;;  %v4354_v36 = vunpack.i.l.bf16 %v4353_v45  ;;  %v4365_v2 = vunpack.i.h.bf16 %v4363_v40  ;;  %v4364_v11 = vunpack.i.l.bf16 %v4363_v40 }
 0x750   : > { %4019 = vmatprep.subr.bf16.mxu1 %v4018_v46 }
 0x751   : > { %4021 = vmatpush1.bf16.msra.mxu1 %v4020_v20  ;;  %v3586_v10 = vsel %vm958_vm12, %v4354_v36, %v4355_v28  ;;  %v3585_v47 = vsel %vm958_vm12, %v4275_v16, %v4354_v36  ;;  %v3590_v21 = vsel %vm958_vm12, %v4364_v11, %v4365_v2  ;;  %v3589_v8 = vsel %vm958_vm12, %v4280_v7, %v4364_v11 }
 0x752   : > { %v4358_v48 = vpop.permute.xlu0 %4357  ;;  %v4022_v12 = vpack.c.bf16 %v3586_v10, %v3584_v43  ;;  %v4024_v39 = vpack.c.bf16 %v3585_v47, %v3583_v44  ;;  %v4368_v52 = vpop.permute.xlu1 %4367 }
 0x753   : > { %v4360_v30 = vunpack.i.h.bf16 %v4358_v48  ;;  %v4359_v15 = vunpack.i.l.bf16 %v4358_v48  ;;  %v4370_v18 = vunpack.i.h.bf16 %v4368_v52  ;;  %v4369_v14 = vunpack.i.l.bf16 %v4368_v52 }
 0x754   : > { %4023 = vmatprep.subr.bf16.mxu1 %v4022_v12 }
 0x755   : > { %4025 = vmatpush1.bf16.msra.mxu1 %v4024_v39  ;;  %v3588_v53 = vsel %vm958_vm12, %v4359_v15, %v4360_v30  ;;  %v3587_v34 = vsel %vm958_vm12, %v4279_v17, %v4359_v15  ;;  %v3592_v19 = vsel %vm958_vm12, %v4369_v14, %v4370_v18 }
 0x756   : > { %v4373_v31 = vpop.permute.xlu0 %4372  ;;  %v4026_v37 = vpack.c.bf16 %v3590_v21, %v3588_v53  ;;  %v4028_v27 = vpack.c.bf16 %v3589_v8, %v3587_v34  ;;  %v4378_v63 = vpop.permute.xlu1 %4377 }
 0x757   : > { %v4375_v0 = vunpack.i.h.bf16 %v4373_v31  ;;  %v4374_v56 = vunpack.i.l.bf16 %v4373_v31  ;;  %v4380_v9 = vunpack.i.h.bf16 %v4378_v63  ;;  %v4379_v4 = vunpack.i.l.bf16 %v4378_v63 }
 0x758   : > { %4027 = vmatprep.subr.bf16.mxu1 %v4026_v37 }
 0x759   : > { %4029 = vmatpush1.bf16.msra.mxu1 %v4028_v27  ;;  %v3594_v42 = vsel %vm958_vm12, %v4374_v56, %v4375_v0  ;;  %v3591_v62 = vsel %vm958_vm12, %v4379_v4, %v4369_v14  ;;  %v3593_v51 = vsel %vm958_vm12, %v4380_v9, %v4374_v56  ;;  %vm7151_vm12 = vmmov %vm7149_vm7 }
 0x75a   : > { %v4030_v49 = vpack.c.bf16 %v3594_v42, %v3592_v19  ;;  %v4032_v13 = vpack.c.bf16 %v3593_v51, %v3591_v62 }
 0x75c   : > { %4031 = vmatprep.subr.bf16.mxu1 %v4030_v49 }
 0x75d   : > { %4033 = vmatpush1.bf16.msra.mxu1 %v4032_v13 }
 0x760   : > { %3708 = vmatmul.mubr.f32.vlgmr.msra.gmra.mrb[0].mxu1 %v3413_v5 }
 0x761   : > { %3989 = vmatprep.mubr.msk.f32.mxu1 %vm7150_vm15, %v3416_v24 }
 0x764   : > { %3714 = vmatmul.mubr.f32.gmra.mrb[2].mxu1 %v3415_v1 }
 0x765   : > { %3990 = vmatprep.mubr.msk.f32.mxu1 %vm7151_vm12, %v3418_v38 }
 0x767   : > { %v3428_v54 = vpop.permute.xlu0 %3427  ;;  %v3433_v32 = vpop.permute.xlu1 %3432 }
 0x768   : > { %3720 = vmatmul.mubr.f32.gmra.mrb[4].mxu1 %v3417_v22 }
 0x769   : > { %3991 = vmatprep.mubr.msk.f32.mxu1 %vm7152_vm4, %v3420_v6 }
 0x76b   : > { %v3438_v16 = vpop.permute.xlu0 %3437  ;;  %v3443_v43 = vpop.permute.xlu1 %3442 }
 0x76c   : > { %3726 = vmatmul.mubr.f32.gmra.mrb[6].mxu1 %v3419_v59 }
 0x833   : > { %v3709_v57 = vpop.f32.mrb[0].mxu1 }
 0x834   : > { %v3710_v50 = vadd.f32 %v3709_v57, %v3428_v54  ;;  %v3711_v35 = vpop.f32.mrb[1].mxu1 }
 0x835   : > { %v3712_v55 = vadd.f32 %v3711_v35, %v3428_v54 }
 0x836   : > { %v3740_v29 = vmul.f32 0.70710677, %v3710_v50  ;;  %v3732_v18 = vmul.f32 0.5, %v3710_v50 }
 0x837   : > { %v3741_v41 = vmul.f32 0.70710677, %v3712_v55  ;;  %v3715_v58 = vpop.f32.mrb[2].mxu1  ;;  %v3733_v34 = vmul.f32 0.5, %v3712_v55 }
 0x838   : > { %4405 = verf.f32 %v3740_v29  ;;  %v3716_v23 = vadd.f32 %v3715_v58, %v3433_v32  ;;  %v3717_v45 = vpop.f32.mrb[3].mxu1  ;;  %v3772_v29 = vld [vmem:[%s6772_s11] sm:$0xff] }
 0x839   : > { %4407 = verf.f32 %v3741_v41  ;;  %v3718_v46 = vadd.f32 %v3717_v45, %v3433_v32  ;;  %v3773_v32 = vld [vmem:[%s6772_s11 + $0x8] sm:$0xff]  ;;  %v3779_v41 = vpop.permute.xlu0 %3778 }
 0x83a   : > { %v3742_v20 = vmul.f32 0.70710677, %v3716_v23  ;;  %v3734_v14 = vmul.f32 0.5, %v3716_v23 }
 0x83b   : > { %v3743_v26 = vmul.f32 0.70710677, %v3718_v46  ;;  %v3721_v28 = vpop.f32.mrb[4].mxu1  ;;  %v3735_v31 = vmul.f32 0.5, %v3718_v46 }
 0x83c   : > { %4409 = verf.f32 %v3742_v20  ;;  %v3722_v36 = vadd.f32 %v3721_v28, %v3438_v16  ;;  %v3723_v40 = vpop.f32.mrb[5].mxu1 }
 0x83d   : > { %4411 = verf.f32 %v3743_v26  ;;  %v3724_v2 = vadd.f32 %v3723_v40, %v3438_v16  ;;  %v3784_v16 = vpop.permute.xlu1 %3783 }
 0x83e   : > { %v3744_v11 = vmul.f32 0.70710677, %v3722_v36  ;;  %v3736_v5 = vmul.f32 0.5, %v3722_v36 }
 0x83f   : > { %v3745_v10 = vmul.f32 0.70710677, %v3724_v2  ;;  %v3727_v44 = vpop.f32.mrb[6].mxu1  ;;  %v3737_v38 = vmul.f32 0.5, %v3724_v2 }
 0x840   : > { %4413 = verf.f32 %v3744_v11  ;;  %v3728_v47 = vadd.f32 %v3727_v44, %v3443_v43  ;;  %v3729_v7 = vpop.f32.mrb[7].mxu1 }
 0x841   : > { %4415 = verf.f32 %v3745_v10  ;;  %v3730_v48 = vadd.f32 %v3729_v7, %v3443_v43 }
 0x842   : > { %v4406_v12 = vpop.eup %4405  ;;  %v3746_v39 = vmul.f32 0.70710677, %v3728_v47  ;;  %v3738_v24 = vmul.f32 0.5, %v3728_v47 }
 0x843   : > { %v4408_v17 = vpop.eup %4407  ;;  %v3747_v30 = vmul.f32 0.70710677, %v3730_v48  ;;  %v3756_v15 = vadd.f32 1.0, %v4406_v12  ;;  %v3739_v22 = vmul.f32 0.5, %v3730_v48 }
 0x844   : > { %4417 = verf.f32 %v3746_v39  ;;  %v3757_v21 = vadd.f32 1.0, %v4408_v17 }
 0x845   : > { %4419 = verf.f32 %v3747_v30  ;;  %v3764_v27 = vmul.f32 %v3756_v15, %v3732_v18 }
 0x846   : > { %v4410_v52 = vpop.eup %4409  ;;  %v3765_v63 = vmul.f32 %v3757_v21, %v3733_v34 }
 0x847   : > { %v4412_v8 = vpop.eup %4411  ;;  %v3758_v53 = vadd.f32 1.0, %v4410_v52 }
 0x848   : > { %v3759_v37 = vadd.f32 1.0, %v4412_v8 }
 0x849   : > { %v3766_v0 = vmul.f32 %v3758_v53, %v3734_v14 }
 0x84a   : > { %v4414_v56 = vpop.eup %4413  ;;  %v3767_v9 = vmul.f32 %v3759_v37, %v3735_v31 }
 0x84b   : > { %v4416_v4 = vpop.eup %4415  ;;  %v4036_v19 = vpack.c.bf16 %v3766_v0, %v3764_v27  ;;  %v3760_v49 = vadd.f32 1.0, %v4414_v56 }
 0x84c   : > { %v4034_v42 = vpack.c.bf16 %v3767_v9, %v3765_v63  ;;  %v3761_v51 = vadd.f32 1.0, %v4416_v4 }
 0x84d   : > { %v3768_v59 = vmul.f32 %v3760_v49, %v3736_v5 }
 0x84e   : > { %v4418_v62 = vpop.eup %4417  ;;  %4035 = vmatprep.subr.bf16.mxu0 %v4034_v42  ;;  %v3769_v57 = vmul.f32 %v3761_v51, %v3737_v38 }
 0x84f   : > { %v4420_v13 = vpop.eup %4419  ;;  %v3762_v1 = vadd.f32 1.0, %v4418_v62  ;;  %4037 = vmatpush1.bf16.msra.mxu0 %v4036_v19 }
 0x850   : > { %v3763_v6 = vadd.f32 1.0, %v4420_v13 }
 0x851   : > { %v3770_v54 = vmul.f32 %v3762_v1, %v3738_v24 }
 0x852   : > { %v3771_v50 = vmul.f32 %v3763_v6, %v3739_v22 }
 0x853   : > { %v4040_v35 = vpack.c.bf16 %v3770_v54, %v3768_v59 }
 0x854   : > { %v4038_v55 = vpack.c.bf16 %v3771_v50, %v3769_v57 }
 0x856   : > { %4039 = vmatprep.subr.bf16.mxu0 %v4038_v55 }
 0x857   : > { %4041 = vmatpush1.bf16.msra.mxu0 %v4040_v35 }
 0x85a   : > { %3992 = vmatmul.mubr.msk.f32.vlgmr.msra.gmra.mrb[4].mxu0 %vm1209_vm0, %v3772_v29 }
 0x85b   : > { %3862 = vmatprep.mubr.f32.mxu0 %v7100_v3 }
 0x85e   : > { %3993 = vmatmul.mubr.msk.f32.gmra.mrb[6].mxu0 %vm1209_vm0, %v3773_v32 }
 0x92d   : > { %v3858_v58 = vpop.f32.mrb[4].mxu0 }
 0x92e   : > { %v3859_v23 = vadd.f32 %v3858_v58, %v3779_v41  ;;  %v3860_v45 = vpop.f32.mrb[5].mxu0 }
 0x92f   : > { %v3861_v46 = vadd.f32 %v3860_v45, %v3779_v41 }
 0x930   : > { %v3869_v20 = vadd.f32 %v3859_v23, %v6319_v60 }
 0x931   : > { %v3870_v3 = vadd.f32 %v3861_v46, %v6325_v33  ;;  %v3864_v26 = vpop.f32.mrb[6].mxu0 }
 0x932   : > { %3873 = vst [vmem:[%s494_s20] sm:$0xff] %v3869_v20  ;;  %v3865_v28 = vadd.f32 %v3864_v26, %v3784_v16  ;;  %v3866_v36 = vpop.f32.mrb[7].mxu0 }
 0x933   : > { %3874 = vst [vmem:[%s494_s20 + $0x8] sm:$0xff] %v3870_v3  ;;  %v3867_v40 = vadd.f32 %v3866_v36, %v3784_v16 }
 0x934   : > { %v3871_v2 = vadd.f32 %v3865_v28, %v6322_v25 }
 0x935   : > { %v3872_v11 = vadd.f32 %v3867_v40, %v6328_v61 }
 0x936   : > { %3875 = vst [vmem:[%s494_s20 + $0x10] sm:$0xff] %v3871_v2 }
 0x937   : > { %3876 = vst [vmem:[%s494_s20 + $0x18] sm:$0xff] %v3872_v11 }
 0x938 PF: > { %s25_s18 = sadd.s32 1, %s4437_s18  }
 0x939   : > { %p22_p4 = scmp.ge.s32.totalorder %s25_s18, 4  }
 0x93b   :  { %24 = sbr.rel (!%p22_p4) target bundleno = 1 (0x1), region = 124 }

</bundles_post_ra>
